<compile_context>
chip_gen: v5e
topology: v5e:2x2
jax: 0.10.0
libtpu: 0.0.40
codegen_flags: <defaults>
</compile_context>

<pallas_src>
import jax
import jax.numpy as jnp
from jax.experimental import pallas as pl
from jax.experimental.pallas import tpu as pltpu


def _layer1_kernel(x_ref, w1_ref, part_ref, acc_ref):
    """Accumulate one core's half of x @ W1 over the K grid axis (axis 1)."""
    k = pl.program_id(1)

    @pl.when(k == 0)
    def _():
        acc_ref[...] = jnp.zeros_like(acc_ref)

    # Hot path: (Bp, tk) bf16 @ (tk, 128) bf16 accumulated in f32 on the MXU.
    acc_ref[...] += jnp.dot(x_ref[...], w1_ref[...],
                            preferred_element_type=jnp.float32)

    @pl.when(k == pl.num_programs(1) - 1)
    def _():
        part_ref[...] = acc_ref[...]           # (Bp, 128) f32 partial for this core


def _tail_kernel(p_ref, b1_ref, w2_ref, b2_ref, w3_ref, b3_ref, o_ref):
    """Combine per-core partials, apply bias+ReLU and the two small layers."""
    # Sum the (ncores, Bp, 128) partials with an unrolled add (ncores is static).
    acc = p_ref[0]
    for c in range(1, p_ref.shape[0]):
        acc = acc + p_ref[c]
    h1 = jnp.maximum(acc + b1_ref[...], 0.0)                              # (Bp, 128)
    h2 = jnp.dot(h1, w2_ref[...],
                 preferred_element_type=jnp.float32) + b2_ref[...]
    h2 = jnp.maximum(h2, 0.0)                                             # (Bp, 64)
    out = jnp.dot(h2, w3_ref[...],
                  preferred_element_type=jnp.float32) + b3_ref[...]
    o_ref[...] = out.astype(o_ref.dtype)                                  # (Bp, CP)


def basic_nn_forward(x_nchw, params, *, tk=8192, ncores=2):
    """x_nchw: (B, 3, 128, 128) float32. Returns (B, num_classes) float32."""
    w1, b1, w2, b2, w3, b3 = params
    B = x_nchw.shape[0]
    K, H1 = w1.shape                    # 49152, 128
    H2 = w2.shape[1]                    # 64
    C = w3.shape[1]                     # num_classes

    # Flatten exactly like nn.Flatten on NCHW, stream activations in bf16.
    x = x_nchw.reshape(B, K).astype(jnp.bfloat16)

    # Pad batch to a multiple of 16 (bf16 packs 16 sublanes per vreg).
    Bp = max(16, ((B + 15) // 16) * 16)
    x = jnp.pad(x, ((0, Bp - B), (0, 0)))

    # Lane-dense classifier: pad output width to a multiple of 128, slice back after.
    CP = max(128, ((C + 127) // 128) * 128)
    w3p = jnp.pad(w3, ((0, 0), (0, CP - C)))
    b3p = jnp.pad(b3, ((0, 0), (0, CP - C)))

    assert K % (ncores * tk) == 0, "tk must divide K / ncores"
    kpc = K // (ncores * tk)            # K-steps per core (3 with defaults)

    w1_bf = w1.astype(jnp.bfloat16)     # halve the dominant HBM stream

    # Stage 1: the HBM-bound x @ W1 stream. Leading grid axis is 'parallel' so on
    # v7x each TensorCore streams half of W1 into its own partial accumulator.
    partials = pl.pallas_call(
        _layer1_kernel,
        out_shape=jax.ShapeDtypeStruct((ncores, Bp, H1), jnp.float32),
        grid_spec=pltpu.PrefetchScalarGridSpec(
            num_scalar_prefetch=0,
            grid=(ncores, kpc),
            in_specs=[
                pl.BlockSpec((Bp, tk), lambda c, k: (0, c * kpc + k)),   # x tile (bf16)
                pl.BlockSpec((tk, H1), lambda c, k: (c * kpc + k, 0)),   # W1 tile (bf16)
            ],
            out_specs=pl.BlockSpec((None, Bp, H1), lambda c, k: (c, 0, 0)),
            scratch_shapes=[pltpu.VMEM((Bp, H1), jnp.float32)],
        ),
        compiler_params=pltpu.CompilerParams(
            dimension_semantics=("parallel", "arbitrary"),
        ),
    )(x, w1_bf)

    # Stage 2: tiny fused tail (bias+ReLU, layers 2 & 3); gridless, everything
    # (partials + small weights) is VMEM-resident. Output is lane-dense (Bp, CP).
    out_p = pl.pallas_call(
        _tail_kernel,
        out_shape=jax.ShapeDtypeStruct((Bp, CP), jnp.float32),
    )(partials, b1, w2, b2, w3p, b3p)

    return out_p[:B, :C]


def init_params(key, num_classes):
    """Deterministic init mirroring nn.Linear default (uniform +-1/sqrt(fan_in)).

    Weights stored as (in_features, out_features)."""
    dims = [(128 * 128 * 3, 128), (128, 64), (64, num_classes)]
    params = []
    for (fan_in, fan_out) in dims:
        key, kw, kb = jax.random.split(key, 3)
        bound = 1.0 / jnp.sqrt(jnp.float32(fan_in))
        w = jax.random.uniform(kw, (fan_in, fan_out), jnp.float32, -bound, bound)
        b = jax.random.uniform(kb, (1, fan_out), jnp.float32, -bound, bound)
        params += [w, b]
    return tuple(params)


if __name__ == "__main__":
    num_classes = 10
    key = jax.random.PRNGKey(0)
    key, kx = jax.random.split(key)

    # Spatial dims are fixed by the module (128*128*3 input features); small batch.
    x = jax.random.normal(kx, (2, 3, 128, 128), jnp.float32)
    params = init_params(key, num_classes)

    # jit so the flatten/pad/bf16-cast fuse into a single pass over x.
    fwd = jax.jit(basic_nn_forward)
    out = jax.block_until_ready(fwd(x, params))
    assert out.shape == (2, num_classes)

    w1, b1, w2, b2, w3, b3 = params
    xf = x.reshape(2, -1)

    # Reference matching the kernel's mixed precision (bf16 x/W1, f32 accumulation).
    h1 = jnp.dot(xf.astype(jnp.bfloat16), w1.astype(jnp.bfloat16),
                 preferred_element_type=jnp.float32)
    h1 = jnp.maximum(h1 + b1, 0.0)
    h2 = jnp.maximum(h1 @ w2 + b2, 0.0)
    ref_bf16 = h2 @ w3 + b3
    assert jnp.allclose(out, ref_bf16, atol=2e-3, rtol=2e-3), "mismatch vs bf16-matched reference"

    # Looser sanity check against the full-f32 (PyTorch-style) reference.
    h1f = jnp.maximum(xf @ w1 + b1, 0.0)
    h2f = jnp.maximum(h1f @ w2 + b2, 0.0)
    ref_f32 = h2f @ w3 + b3
    assert jnp.allclose(out, ref_f32, atol=5e-2, rtol=5e-2), "mismatch vs f32 reference"

    print("KERNEL_OK")
</pallas_src>

<mosaic_0001>
module attributes {stable_mosaic.version = 11 : i64} {
  func.func @_layer1_kernel(%arg0: i32, %arg1: i32, %arg2: memref<16x8192xbf16, #tpu.memory_space<vmem>>, %arg3: memref<8192x128xbf16, #tpu.memory_space<vmem>>, %arg4: memref<1x16x128xf32, #tpu.memory_space<vmem>>, %arg5: memref<16x128xf32, #tpu.memory_space<vmem>>) attributes {dimension_semantics = [#tpu.dimension_semantics<parallel>, #tpu.dimension_semantics<arbitrary>], iteration_bounds = array<i64: 2, 3>, scalar_prefetch = 0 : i64, scratch_operands = 1 : i64, tpu.core_type = #tpu.core_type<tc>, window_params = [{transform_indices = @transform_0, window_bounds = array<i64: 16, 8192>}, {transform_indices = @transform_1, window_bounds = array<i64: 8192, 128>}, {transform_indices = @transform_2, window_bounds = array<i64: 1, 16, 128>}]} {
    %c0_i32 = arith.constant 0 : i32
    %0 = arith.cmpi eq, %arg1, %c0_i32 : i32
    %1 = arith.extui %0 : i1 to i32
    %c0_i32_0 = arith.constant 0 : i32
    %2 = arith.cmpi ne, %1, %c0_i32_0 : i32
    scf.if %2 {
      %cst_9 = arith.constant 0.000000e+00 : f32
      %12 = vector.broadcast %cst_9 : f32 to vector<16x128xf32>
      %c0_10 = arith.constant 0 : index
      %c0_11 = arith.constant 0 : index
      %13 = vector.load %arg5[%c0_10, %c0_11] : memref<16x128xf32, #tpu.memory_space<vmem>>, vector<16x128xf32>
      tpu.vector_store %arg5[%c0_10, %c0_11], %12 {strides = array<i32>} : memref<16x128xf32, #tpu.memory_space<vmem>>, vector<16x128xf32>,
    } else {
    }
    %c0 = arith.constant 0 : index
    %c0_1 = arith.constant 0 : index
    %3 = vector.load %arg5[%c0, %c0_1] : memref<16x128xf32, #tpu.memory_space<vmem>>, vector<16x128xf32>
    %c0_2 = arith.constant 0 : index
    %c0_3 = arith.constant 0 : index
    %4 = vector.load %arg2[%c0_2, %c0_3] : memref<16x8192xbf16, #tpu.memory_space<vmem>>, vector<16x8192xbf16>
    %c0_4 = arith.constant 0 : index
    %c0_5 = arith.constant 0 : index
    %5 = vector.load %arg3[%c0_4, %c0_5] : memref<8192x128xbf16, #tpu.memory_space<vmem>>, vector<8192x128xbf16>
    %cst = arith.constant dense<0.000000e+00> : vector<16x128xf32>
    %6 = tpu.matmul %4, %5, %cst {dimension_numbers = #tpu.dot_dimension_numbers<[1], [0], [0], [1], [0, 0, 1, 1], [], []>} : vector<16x8192xbf16>, vector<8192x128xbf16>, vector<16x128xf32> -> vector<16x128xf32>
    %7 = arith.addf %3, %6 : vector<16x128xf32>
    %c0_6 = arith.constant 0 : index
    %c0_7 = arith.constant 0 : index
    %8 = vector.load %arg5[%c0_6, %c0_7] : memref<16x128xf32, #tpu.memory_space<vmem>>, vector<16x128xf32>
    tpu.vector_store %arg5[%c0_6, %c0_7], %7 {strides = array<i32>} : memref<16x128xf32, #tpu.memory_space<vmem>>, vector<16x128xf32>,
    %c2_i32 = arith.constant 2 : i32
    %9 = arith.cmpi eq, %arg1, %c2_i32 : i32
    %10 = arith.extui %9 : i1 to i32
    %c0_i32_8 = arith.constant 0 : i32
    %11 = arith.cmpi ne, %10, %c0_i32_8 : i32
    scf.if %11 {
      %c0_9 = arith.constant 0 : index
      %c0_10 = arith.constant 0 : index
      %12 = vector.load %arg5[%c0_9, %c0_10] : memref<16x128xf32, #tpu.memory_space<vmem>>, vector<16x128xf32>
      %c0_11 = arith.constant 0 : index
      %c0_12 = arith.constant 0 : index
      %c0_13 = arith.constant 0 : index
      %13 = vector.load %arg4[%c0_11, %c0_12, %c0_13] : memref<1x16x128xf32, #tpu.memory_space<vmem>>, vector<1x16x128xf32>
      %14 = vector.shape_cast %13 : vector<1x16x128xf32> to vector<16x128xf32>
      %15 = vector.shape_cast %12 : vector<16x128xf32> to vector<1x16x128xf32>
      tpu.vector_store %arg4[%c0_11, %c0_12, %c0_13], %15 {strides = array<i32>} : memref<1x16x128xf32, #tpu.memory_space<vmem>>, vector<1x16x128xf32>,
    } else {
    }
    return
  }
  func.func @transform_0(%arg0: i32, %arg1: i32) -> (i32, i32) {
    %c3_i32 = arith.constant 3 : i32
    %0 = arith.muli %arg0, %c3_i32 : i32
    %1 = arith.addi %0, %arg1 : i32
    %c0_i32 = arith.constant 0 : i32
    %c0_i32_0 = arith.constant 0 : i32
    return %c0_i32, %1 : i32, i32
  }
  func.func @transform_1(%arg0: i32, %arg1: i32) -> (i32, i32) {
    %c3_i32 = arith.constant 3 : i32
    %0 = arith.muli %arg0, %c3_i32 : i32
    %1 = arith.addi %0, %arg1 : i32
    %c0_i32 = arith.constant 0 : i32
    %c0_i32_0 = arith.constant 0 : i32
    return %1, %c0_i32 : i32, i32
  }
  func.func @transform_2(%arg0: i32, %arg1: i32) -> (i32, i32, i32) {
    %c0_i32 = arith.constant 0 : i32
    %c0_i32_0 = arith.constant 0 : i32
    %c0_i32_1 = arith.constant 0 : i32
    return %arg0, %c0_i32, %c0_i32_0 : i32, i32, i32
  }
}

module attributes {stable_mosaic.version = 11 : i64} {
  func.func @_tail_kernel(%arg0: memref<2x16x128xf32, #tpu.memory_space<vmem>>, %arg1: memref<1x128xf32, #tpu.memory_space<vmem>>, %arg2: memref<128x64xf32, #tpu.memory_space<vmem>>, %arg3: memref<1x64xf32, #tpu.memory_space<vmem>>, %arg4: memref<64x128xf32, #tpu.memory_space<vmem>>, %arg5: memref<1x128xf32, #tpu.memory_space<vmem>>, %arg6: memref<16x128xf32, #tpu.memory_space<vmem>>) attributes {dimension_semantics = [], scalar_prefetch = 0 : i64, scratch_operands = 0 : i64, tpu.core_type = #tpu.core_type<tc>} {
    %c0 = arith.constant 0 : index
    %c0_0 = arith.constant 0 : index
    %c0_1 = arith.constant 0 : index
    %0 = vector.load %arg0[%c0, %c0_0, %c0_1] : memref<2x16x128xf32, #tpu.memory_space<vmem>>, vector<1x16x128xf32>
    %1 = vector.shape_cast %0 : vector<1x16x128xf32> to vector<16x128xf32>
    %c1 = arith.constant 1 : index
    %c0_2 = arith.constant 0 : index
    %c0_3 = arith.constant 0 : index
    %2 = vector.load %arg0[%c1, %c0_2, %c0_3] : memref<2x16x128xf32, #tpu.memory_space<vmem>>, vector<1x16x128xf32>
    %3 = vector.shape_cast %2 : vector<1x16x128xf32> to vector<16x128xf32>
    %4 = arith.addf %1, %3 : vector<16x128xf32>
    %c0_4 = arith.constant 0 : index
    %c0_5 = arith.constant 0 : index
    %5 = vector.load %arg1[%c0_4, %c0_5] : memref<1x128xf32, #tpu.memory_space<vmem>>, vector<1x128xf32>
    %6 = vector.broadcast %5 : vector<1x128xf32> to vector<16x128xf32>
    %7 = arith.addf %4, %6 : vector<16x128xf32>
    %cst = arith.constant 0.000000e+00 : f32
    %8 = vector.broadcast %cst : f32 to vector<16x128xf32>
    %9 = arith.maximumf %7, %8 : vector<16x128xf32>
    %c0_6 = arith.constant 0 : index
    %c0_7 = arith.constant 0 : index
    %10 = vector.load %arg2[%c0_6, %c0_7] : memref<128x64xf32, #tpu.memory_space<vmem>>, vector<128x64xf32>
    %cst_8 = arith.constant dense<0.000000e+00> : vector<16x64xf32>
    %11 = tpu.matmul %9, %10, %cst_8 {dimension_numbers = #tpu.dot_dimension_numbers<[1], [0], [0], [1], [0, 0, 1, 1], [], []>} : vector<16x128xf32>, vector<128x64xf32>, vector<16x64xf32> -> vector<16x64xf32>
    %c0_9 = arith.constant 0 : index
    %c0_10 = arith.constant 0 : index
    %12 = vector.load %arg3[%c0_9, %c0_10] : memref<1x64xf32, #tpu.memory_space<vmem>>, vector<1x64xf32>
    %13 = vector.broadcast %12 : vector<1x64xf32> to vector<16x64xf32>
    %14 = arith.addf %11, %13 : vector<16x64xf32>
    %cst_11 = arith.constant 0.000000e+00 : f32
    %15 = vector.broadcast %cst_11 : f32 to vector<16x64xf32>
    %16 = arith.maximumf %14, %15 : vector<16x64xf32>
    %c0_12 = arith.constant 0 : index
    %c0_13 = arith.constant 0 : index
    %17 = vector.load %arg4[%c0_12, %c0_13] : memref<64x128xf32, #tpu.memory_space<vmem>>, vector<64x128xf32>
    %cst_14 = arith.constant dense<0.000000e+00> : vector<16x128xf32>
    %18 = tpu.matmul %16, %17, %cst_14 {dimension_numbers = #tpu.dot_dimension_numbers<[1], [0], [0], [1], [0, 0, 1, 1], [], []>} : vector<16x64xf32>, vector<64x128xf32>, vector<16x128xf32> -> vector<16x128xf32>
    %c0_15 = arith.constant 0 : index
    %c0_16 = arith.constant 0 : index
    %19 = vector.load %arg5[%c0_15, %c0_16] : memref<1x128xf32, #tpu.memory_space<vmem>>, vector<1x128xf32>
    %20 = vector.broadcast %19 : vector<1x128xf32> to vector<16x128xf32>
    %21 = arith.addf %18, %20 : vector<16x128xf32>
    %c0_17 = arith.constant 0 : index
    %c0_18 = arith.constant 0 : index
    %22 = vector.load %arg6[%c0_17, %c0_18] : memref<16x128xf32, #tpu.memory_space<vmem>>, vector<16x128xf32>
    tpu.vector_store %arg6[%c0_17, %c0_18], %21 {strides = array<i32>} : memref<16x128xf32, #tpu.memory_space<vmem>>, vector<16x128xf32>,
    return
  }
}

</mosaic_0001>

<bundles_post_ra>
// kernel: basic_nn_forward.3
= control target key start
LH: loop header
LB: loop body
LE: loop exit
PB: predicated region body
PF: predicated region fallthrough
CT: control target
= control target key end

     0   :  { %vm95_vm0 = vcmask 523264   ;;  %s288_s2 = inlined_call_operand.vmem [shape: f32[128,64], index: 2, kind: input, shape index: {}]   ;;  %s289_s4 = inlined_call_operand.vmem [shape: f32[64,128], index: 4, kind: input, shape index: {}]   ;;  %s290_s1 = inlined_call_operand.vmem [shape: f32[1,128], index: 1, kind: input, shape index: {}]   ;;  %s291_s3 = inlined_call_operand.vmem [shape: f32[1,64], index: 3, kind: input, shape index: {}]   ;;  %s292_s0 = inlined_call_operand.vmem [shape: f32[2,16,128], index: 0, kind: input, shape index: {}]   ;;  %s293_s5 = inlined_call_operand.vmem [shape: f32[1,128], index: 5, kind: input, shape index: {}]   ;;  %s294_s6 = inlined_call_operand.vmem [shape: f32[16,128], index: 6, kind: output, shape index: {}]  }
   0x1   :  { %v53_v0 = vld [vmem:[%s288_s2 + $0x78] sm:$0xff]  ;;  %v52_v1 = vld [vmem:[%s288_s2 + $0x70] sm:$0xff]  ;;  %v51_v2 = vld [vmem:[%s288_s2 + $0x68] sm:$0xff] }
   0x2   :  { %58 = vmatpush.msra.mxu0 %v53_v0  ;;  %135 = vmatpush.msra.mxu2 %v53_v0  ;;  %v50_v3 = vld [vmem:[%s288_s2 + $0x60] sm:$0xff]  ;;  %v49_v4 = vld [vmem:[%s288_s2 + $0x58] sm:$0xff]  ;;  %v89_v6 = vld [vmem:[%s289_s4 + $0x30] sm:$0xff] }
   0x3   :  { %v90_v5 = vld [vmem:[%s289_s4 + $0x38] sm:$0xff]  ;;  %v48_v7 = vld [vmem:[%s288_s2 + $0x50] sm:$0xff]  ;;  %v88_v8 = vld [vmem:[%s289_s4 + $0x28] sm:$0xff] }
   0x4   :  { %59 = vmatpush.msra.mxu0 %v52_v1  ;;  %136 = vmatpush.msra.mxu2 %v52_v1  ;;  %v47_v9 = vld [vmem:[%s288_s2 + $0x48] sm:$0xff]  ;;  %v87_v10 = vld [vmem:[%s289_s4 + $0x20] sm:$0xff]  ;;  %v86_v12 = vld [vmem:[%s289_s4 + $0x18] sm:$0xff] }
   0x5   :  { %110 = vmatpush.msra.mxu1 %v90_v5  ;;  %v46_v11 = vld [vmem:[%s288_s2 + $0x40] sm:$0xff]  ;;  %v45_v13 = vld [vmem:[%s288_s2 + $0x38] sm:$0xff]  ;;  %v44_v14 = vld [vmem:[%s288_s2 + $0x30] sm:$0xff] }
   0x6   :  { %60 = vmatpush.msra.mxu0 %v51_v2  ;;  %137 = vmatpush.msra.mxu2 %v51_v2  ;;  %v23_v15 = vld [vmem:[%s292_s0] sm:$0xff]  ;;  %v131_v16 = vld [vmem:[%s292_s0 + $0x10] sm:$0xff]  ;;  %v24_v17 = vld [vmem:[%s292_s0 + $0x8] sm:$0xff] }
   0x7   :  { %111 = vmatpush.msra.mxu1 %v89_v6  ;;  %v132_v18 = vld [vmem:[%s292_s0 + $0x18] sm:$0xff]  ;;  %v43_v19 = vld [vmem:[%s288_s2 + $0x28] sm:$0xff]  ;;  %v42_v20 = vld [vmem:[%s288_s2 + $0x20] sm:$0xff]  ;;  %v28_v21 = vadd.f32 %v131_v16, %v23_v15 }
   0x8   :  { %61 = vmatpush.msra.mxu0 %v50_v3  ;;  %138 = vmatpush.msra.mxu2 %v50_v3  ;;  %v151_v22 = vld [vmem:[%s290_s1] ss:$0 sm:$0xff]  ;;  %v29_v23 = vadd.f32 %v132_v18, %v24_v17  ;;  %v41_v24 = vld [vmem:[%s288_s2 + $0x18] sm:$0xff]  ;;  %v40_v25 = vld [vmem:[%s288_s2 + $0x10] sm:$0xff] }
   0x9   :  { %112 = vmatpush.msra.mxu1 %v88_v8  ;;  %v34_v26 = vadd.f32 %v151_v22, %v28_v21  ;;  %v39_v28 = vld [vmem:[%s288_s2 + $0x8] sm:$0xff]  ;;  %v38_v29 = vld [vmem:[%s288_s2] sm:$0xff]  ;;  %v85_v32 = vld [vmem:[%s289_s4 + $0x10] sm:$0xff] }
   0xa   :  { %62 = vmatpush.msra.mxu0 %v49_v4  ;;  %139 = vmatpush.msra.mxu2 %v49_v4  ;;  %v35_v27 = vadd.f32 %v151_v22, %v29_v23  ;;  %v84_v33 = vld [vmem:[%s289_s4 + $0x8] sm:$0xff]  ;;  %v83_v34 = vld [vmem:[%s289_s4] sm:$0xff] }
   0xb   :  { %113 = vmatpush.msra.mxu1 %v87_v10  ;;  %v36_v30 = vmax.f32 %v34_v26, 0.0  ;;  %v152_v35 = vld [vmem:[%s291_s3] ss:$0 sm:$0xff] }
   0xc   :  { %63 = vmatpush.msra.mxu0 %v48_v7  ;;  %140 = vmatpush.msra.mxu2 %v48_v7  ;;  %v37_v31 = vmax.f32 %v35_v27, 0.0  ;;  %v153_v42 = vld [vmem:[%s293_s5] ss:$0 sm:$0xff] }
   0xd   :  { %114 = vmatpush.msra.mxu1 %v86_v12 }
   0xe   :  { %64 = vmatpush.msra.mxu0 %v47_v9  ;;  %141 = vmatpush.msra.mxu2 %v47_v9 }
   0xf   :  { %115 = vmatpush.msra.mxu1 %v85_v32 }
  0x10   :  { %65 = vmatpush.msra.mxu0 %v46_v11  ;;  %142 = vmatpush.msra.mxu2 %v46_v11 }
  0x11   :  { %116 = vmatpush.msra.mxu1 %v84_v33 }
  0x12   :  { %66 = vmatpush.msra.mxu0 %v45_v13  ;;  %143 = vmatpush.msra.mxu2 %v45_v13 }
  0x13   :  { %117 = vmatpush.msra.mxu1 %v83_v34 }
  0x14   :  { %67 = vmatpush.msra.mxu0 %v44_v14  ;;  %144 = vmatpush.msra.mxu2 %v44_v14 }
  0x16   :  { %68 = vmatpush.msra.mxu0 %v43_v19  ;;  %145 = vmatpush.msra.mxu2 %v43_v19 }
  0x18   :  { %69 = vmatpush.msra.mxu0 %v42_v20  ;;  %146 = vmatpush.msra.mxu2 %v42_v20 }
  0x1a   :  { %70 = vmatpush.msra.mxu0 %v41_v24  ;;  %147 = vmatpush.msra.mxu2 %v41_v24 }
  0x1c   :  { %71 = vmatpush.msra.mxu0 %v40_v25  ;;  %148 = vmatpush.msra.mxu2 %v40_v25 }
  0x1e   :  { %72 = vmatpush.msra.mxu0 %v39_v28  ;;  %149 = vmatpush.msra.mxu2 %v39_v28 }
  0x20   :  { %73 = vmatpush.msra.mxu0 %v38_v29  ;;  %150 = vmatpush.msra.mxu2 %v38_v29 }
  0x21   :  { %74 = vmatmul.f32.vlgmr.msra.gmra.mxu0 %v36_v30  ;;  %77 = vmatmul.f32.vlgmr.msra.gmra.mxu2 %v37_v31 }
  0x9e   :  { %v75_v36 = vpop.f32.mrf.mxu0 }
  0x9f   :  { %v76_v37 = vadd.f32 %v152_v35, %v75_v36 }
  0xa1   :  { %v81_v38 = vmax.f32 %v76_v37, 0.0 }
  0xa3   :  { %133 = vmatmul.msk.f32.vlgmr.msra.gmra.mxu1 %vm95_vm0, %v81_v38 }
  0xa4   :  { %v78_v39 = vpop.f32.mrf.mxu2 }
  0xa5   :  { %v79_v40 = vadd.f32 %v152_v35, %v78_v39 }
  0xa7   :  { %v82_v41 = vmax.f32 %v79_v40, 0.0 }
  0xab   :  { %134 = vmatmul.msk.f32.gmra.mxu1 %vm95_vm0, %v82_v41 }
 0x120   :  { %v119_v43 = vpop.f32.mrf.mxu1 }
 0x121   :  { %v120_v44 = vadd.f32 %v153_v42, %v119_v43 }
 0x123   :  { %125 = vst [vmem:[%s294_s6] sm:$0xff] %v120_v44 }
 0x128   :  { %v122_v45 = vpop.f32.mrf.mxu1 }
 0x129   :  { %v123_v46 = vadd.f32 %v153_v42, %v122_v45 }
 0x12b   :  { %126 = vst [vmem:[%s294_s6 + $0x8] sm:$0xff] %v123_v46 }

// kernel: basic_nn_forward.2
= control target key start
LH: loop header
LB: loop body
LE: loop exit
PB: predicated region body
PF: predicated region fallthrough
CT: control target
= control target key end

     0   :  { %s8857_s9 = smov 0   ;;  %s8859_s10 = smov 0   ;;  %s9803_s0 = inlined_call_operand.vmem [shape: bf16[16,49152], index: 0, kind: input, shape index: {}]   ;;  %s9804_s1 = inlined_call_operand.vmem [shape: bf16[49152,128], index: 1, kind: input, shape index: {}]   ;;  %s9805_s2 = inlined_call_operand.vmem [shape: f32[2,16,128], index: 2, kind: output, shape index: {}]  }
   0x1   :  { %s8861_s11 = smov 0   ;;  %s8863_s12 = smov 0  }
   0x2   :  { %s8865_s13 = smov 0   ;;  %s8867_s14 = smov 0  }
   0x3   :  { %s8869_s15 = smov 0  }
   0x4 LB: > { %s21_s16 = sadd.s32 1, %s8831_s13  ;;  %s24_s17 = sadd.s32 1, %s8835_s14  ;;  %s8839_s15 = sphi %s8869_s15, %s12_s15   ;;  %s8835_s14 = sphi %s8867_s14, %s9811_s14   ;;  %s8831_s13 = sphi %s8865_s13, %s9810_s13   ;;  %s8827_s12 = sphi %s8863_s12, %s9809_s12   ;;  %s8823_s11 = sphi %s8861_s11, %s9808_s11   ;;  %s8819_s10 = sphi %s8859_s10, %s9807_s10   ;;  %s8815_s9 = sphi %s8857_s9, %s9806_s9  }
   0x5   : > { %p22_p0 = scmp.ge.s32.totalorder %s21_s16, 3  ;;  %p42_p1 = scmp.ne.s32.totalorder %s8819_s10, %s8815_s9 }
   0x6   : > { %p43_p2 = scmp.eq.s32.totalorder %s8839_s15, 0  ;;  %s28_s18 = smul.u32 3, %s8835_s14 }
   0x7   : > { %s9813_s16 = smov (%p22_p0, %s21_s16), 0  ;;  %s9815_s17 = smov (!%p22_p0, %s24_s17), %s8835_s14 }
   0x8   : > { %p26_p3 = scmp.ge.s32.totalorder %s9815_s17, 2  ;;  %p44_p4 = por %p43_p2, %p42_p1 }
   0x9   : > { %s29_s19 = sadd.s32 %s8831_s13, %s28_s18  ;;  %s35_s23 = sadd.s32 1, %s8819_s10 }
   0xa   : > { %s9817_s17 = smov (%p26_p3, %s9815_s17), 0  ;;  %p5832_p6 = scmp.ge.s32.totalorder %s8839_s15, 6 }
   0xb   : > { %s30_s20 = smul.u32 3, %s9817_s17 }
   0xd   : > { %s31_s21 = sadd.s32 %s30_s20, %s9813_s16  ;;  %124 = sbr.rel (%p5832_p6) target bundleno = 86 (0x56), region = 16 }
   0xe   : > { %s32_s22 = ssub.s32 %s29_s19, %s31_s21 }
   0xf   : > { %p33_p5 = scmp.eq.s32.totalorder %s32_s22, 0 }
  0x11   : > { %s8908_s24 = scalar_select %p33_p5, %s8819_s10, %s35_s23  }
  0x12   : > { %127 = sbr.rel (!%p44_p4) target bundleno = 86 (0x56), region = 20  ;;  %s129_s25 = sand.u32 (%p44_p4), 1, %s8819_s10  }
  0x13   : > { %s8150_s26 = sshll.u32 (%p44_p4), %s29_s19, 8  ;;  %s5833_s27 = sshll.u32 (%p44_p4), %s129_s25, 9 }
  0x14   : > { %s8915_s30 = scalar_lea.vmem (%p44_p4), %s9803_s0, %s8150_s26  ;;  %s8920_s3 = scalar_lea.vmem (%p44_p4), [#allocation3], %s5833_s27 }
  0x15   : > { %v149_v0 = vld [vmem:[%s8915_s30] sm:$0xff] (%p44_p4)  ;;  %v151_v1 = vld [vmem:[%s8915_s30 + $0x8] sm:$0xff] (%p44_p4)  ;;  %v153_v2 = vld [vmem:[%s8915_s30 + $0x10] sm:$0xff] (%p44_p4) }
  0x16   : > { %150 = vst [vmem:[%s8920_s3] sm:$0xff] (%p44_p4), %v149_v0  ;;  %v155_v3 = vld [vmem:[%s8915_s30 + $0x18] sm:$0xff] (%p44_p4)  ;;  %v157_v4 = vld [vmem:[%s8915_s30 + $0x20] sm:$0xff] (%p44_p4)  ;;  %v159_v5 = vld [vmem:[%s8915_s30 + $0x28] sm:$0xff] (%p44_p4) }
  0x17   : > { %152 = vst [vmem:[%s8920_s3 + $0x8] sm:$0xff] %v151_v1  ;;  %v161_v6 = vld [vmem:[%s8915_s30 + $0x30] sm:$0xff]  ;;  %v163_v7 = vld [vmem:[%s8915_s30 + $0x38] sm:$0xff]  ;;  %v165_v8 = vld [vmem:[%s8915_s30 + $0x40] sm:$0xff] }
  0x18   : > { %154 = vst [vmem:[%s8920_s3 + $0x10] sm:$0xff] %v153_v2  ;;  %v167_v9 = vld [vmem:[%s8915_s30 + $0x48] sm:$0xff]  ;;  %v169_v10 = vld [vmem:[%s8915_s30 + $0x50] sm:$0xff]  ;;  %v171_v11 = vld [vmem:[%s8915_s30 + $0x58] sm:$0xff] }
  0x19   : > { %156 = vst [vmem:[%s8920_s3 + $0x18] sm:$0xff] %v155_v3  ;;  %v173_v12 = vld [vmem:[%s8915_s30 + $0x60] sm:$0xff]  ;;  %v175_v13 = vld [vmem:[%s8915_s30 + $0x68] sm:$0xff]  ;;  %v177_v14 = vld [vmem:[%s8915_s30 + $0x70] sm:$0xff] }
  0x1a   : > { %158 = vst [vmem:[%s8920_s3 + $0x20] sm:$0xff] %v157_v4  ;;  %v179_v15 = vld [vmem:[%s8915_s30 + $0x78] sm:$0xff]  ;;  %v181_v16 = vld [vmem:[%s8915_s30 + $0x80] sm:$0xff]  ;;  %v183_v17 = vld [vmem:[%s8915_s30 + $0x88] sm:$0xff] }
  0x1b   : > { %160 = vst [vmem:[%s8920_s3 + $0x28] sm:$0xff] %v159_v5  ;;  %v185_v18 = vld [vmem:[%s8915_s30 + $0x90] sm:$0xff]  ;;  %v187_v19 = vld [vmem:[%s8915_s30 + $0x98] sm:$0xff]  ;;  %v189_v20 = vld [vmem:[%s8915_s30 + $0xa0] sm:$0xff] }
  0x1c   : > { %162 = vst [vmem:[%s8920_s3 + $0x30] sm:$0xff] %v161_v6  ;;  %v191_v21 = vld [vmem:[%s8915_s30 + $0xa8] sm:$0xff]  ;;  %v193_v22 = vld [vmem:[%s8915_s30 + $0xb0] sm:$0xff]  ;;  %v195_v23 = vld [vmem:[%s8915_s30 + $0xb8] sm:$0xff] }
  0x1d   : > { %164 = vst [vmem:[%s8920_s3 + $0x38] sm:$0xff] %v163_v7  ;;  %v197_v24 = vld [vmem:[%s8915_s30 + $0xc0] sm:$0xff]  ;;  %v199_v25 = vld [vmem:[%s8915_s30 + $0xc8] sm:$0xff]  ;;  %v201_v26 = vld [vmem:[%s8915_s30 + $0xd0] sm:$0xff] }
  0x1e   : > { %166 = vst [vmem:[%s8920_s3 + $0x40] sm:$0xff] %v165_v8  ;;  %v203_v27 = vld [vmem:[%s8915_s30 + $0xd8] sm:$0xff]  ;;  %v205_v28 = vld [vmem:[%s8915_s30 + $0xe0] sm:$0xff]  ;;  %v207_v29 = vld [vmem:[%s8915_s30 + $0xe8] sm:$0xff] }
  0x1f   : > { %168 = vst [vmem:[%s8920_s3 + $0x48] sm:$0xff] %v167_v9  ;;  %v209_v30 = vld [vmem:[%s8915_s30 + $0xf0] sm:$0xff]  ;;  %v211_v31 = vld [vmem:[%s8915_s30 + $0xf8] sm:$0xff]  ;;  %v213_v32 = vld [vmem:[%s8915_s30 + $0x600] sm:$0xff] }
  0x20   : > { %170 = vst [vmem:[%s8920_s3 + $0x50] sm:$0xff] %v169_v10  ;;  %v215_v33 = vld [vmem:[%s8915_s30 + $0x608] sm:$0xff]  ;;  %v217_v34 = vld [vmem:[%s8915_s30 + $0x610] sm:$0xff]  ;;  %v219_v35 = vld [vmem:[%s8915_s30 + $0x618] sm:$0xff] }
  0x21   : > { %172 = vst [vmem:[%s8920_s3 + $0x58] sm:$0xff] %v171_v11  ;;  %v221_v36 = vld [vmem:[%s8915_s30 + $0x620] sm:$0xff]  ;;  %v223_v37 = vld [vmem:[%s8915_s30 + $0x628] sm:$0xff]  ;;  %v225_v38 = vld [vmem:[%s8915_s30 + $0x630] sm:$0xff] }
  0x22   : > { %174 = vst [vmem:[%s8920_s3 + $0x60] sm:$0xff] %v173_v12  ;;  %v227_v39 = vld [vmem:[%s8915_s30 + $0x638] sm:$0xff]  ;;  %v229_v40 = vld [vmem:[%s8915_s30 + $0x640] sm:$0xff]  ;;  %v231_v41 = vld [vmem:[%s8915_s30 + $0x648] sm:$0xff] }
  0x23   : > { %176 = vst [vmem:[%s8920_s3 + $0x68] sm:$0xff] %v175_v13  ;;  %v233_v42 = vld [vmem:[%s8915_s30 + $0x650] sm:$0xff]  ;;  %v235_v43 = vld [vmem:[%s8915_s30 + $0x658] sm:$0xff]  ;;  %v237_v44 = vld [vmem:[%s8915_s30 + $0x660] sm:$0xff] }
  0x24   : > { %178 = vst [vmem:[%s8920_s3 + $0x70] sm:$0xff] %v177_v14  ;;  %v239_v45 = vld [vmem:[%s8915_s30 + $0x668] sm:$0xff]  ;;  %v241_v46 = vld [vmem:[%s8915_s30 + $0x670] sm:$0xff]  ;;  %v243_v47 = vld [vmem:[%s8915_s30 + $0x678] sm:$0xff] }
  0x25   : > { %180 = vst [vmem:[%s8920_s3 + $0x78] sm:$0xff] %v179_v15  ;;  %v245_v48 = vld [vmem:[%s8915_s30 + $0x680] sm:$0xff]  ;;  %v247_v49 = vld [vmem:[%s8915_s30 + $0x688] sm:$0xff]  ;;  %v249_v50 = vld [vmem:[%s8915_s30 + $0x690] sm:$0xff] }
  0x26   : > { %182 = vst [vmem:[%s8920_s3 + $0x80] sm:$0xff] %v181_v16  ;;  %v251_v51 = vld [vmem:[%s8915_s30 + $0x698] sm:$0xff]  ;;  %v253_v52 = vld [vmem:[%s8915_s30 + $0x6a0] sm:$0xff]  ;;  %v255_v53 = vld [vmem:[%s8915_s30 + $0x6a8] sm:$0xff] }
  0x27   : > { %184 = vst [vmem:[%s8920_s3 + $0x88] sm:$0xff] %v183_v17  ;;  %v257_v54 = vld [vmem:[%s8915_s30 + $0x6b0] sm:$0xff]  ;;  %v259_v55 = vld [vmem:[%s8915_s30 + $0x6b8] sm:$0xff]  ;;  %v261_v56 = vld [vmem:[%s8915_s30 + $0x6c0] sm:$0xff] }
  0x28   : > { %186 = vst [vmem:[%s8920_s3 + $0x90] sm:$0xff] %v185_v18  ;;  %v263_v57 = vld [vmem:[%s8915_s30 + $0x6c8] sm:$0xff]  ;;  %v265_v58 = vld [vmem:[%s8915_s30 + $0x6d0] sm:$0xff]  ;;  %v267_v59 = vld [vmem:[%s8915_s30 + $0x6d8] sm:$0xff] }
  0x29   : > { %188 = vst [vmem:[%s8920_s3 + $0x98] sm:$0xff] %v187_v19  ;;  %v269_v60 = vld [vmem:[%s8915_s30 + $0x6e0] sm:$0xff]  ;;  %v271_v61 = vld [vmem:[%s8915_s30 + $0x6e8] sm:$0xff]  ;;  %v273_v62 = vld [vmem:[%s8915_s30 + $0x6f0] sm:$0xff] }
  0x2a   : > { %190 = vst [vmem:[%s8920_s3 + $0xa0] sm:$0xff] %v189_v20  ;;  %v275_v63 = vld [vmem:[%s8915_s30 + $0x6f8] sm:$0xff] }
  0x2b   : > { %192 = vst [vmem:[%s8920_s3 + $0xa8] sm:$0xff] %v191_v21 }
  0x2c   : > { %194 = vst [vmem:[%s8920_s3 + $0xb0] sm:$0xff] %v193_v22 }
  0x2d   : > { %196 = vst [vmem:[%s8920_s3 + $0xb8] sm:$0xff] %v195_v23 }
  0x2e   : > { %198 = vst [vmem:[%s8920_s3 + $0xc0] sm:$0xff] %v197_v24 }
  0x2f   : > { %200 = vst [vmem:[%s8920_s3 + $0xc8] sm:$0xff] %v199_v25 }
  0x30   : > { %202 = vst [vmem:[%s8920_s3 + $0xd0] sm:$0xff] %v201_v26 }
  0x31   : > { %204 = vst [vmem:[%s8920_s3 + $0xd8] sm:$0xff] %v203_v27 }
  0x32   : > { %206 = vst [vmem:[%s8920_s3 + $0xe0] sm:$0xff] %v205_v28 }
  0x33   : > { %208 = vst [vmem:[%s8920_s3 + $0xe8] sm:$0xff] %v207_v29 }
  0x34   : > { %210 = vst [vmem:[%s8920_s3 + $0xf0] sm:$0xff] %v209_v30 }
  0x35   : > { %212 = vst [vmem:[%s8920_s3 + $0xf8] sm:$0xff] %v211_v31 }
  0x36   : > { %214 = vst [vmem:[%s8920_s3 + $0x100] sm:$0xff] %v213_v32 }
  0x37   : > { %216 = vst [vmem:[%s8920_s3 + $0x108] sm:$0xff] %v215_v33 }
  0x38   : > { %218 = vst [vmem:[%s8920_s3 + $0x110] sm:$0xff] %v217_v34 }
  0x39   : > { %220 = vst [vmem:[%s8920_s3 + $0x118] sm:$0xff] %v219_v35 }
  0x3a   : > { %222 = vst [vmem:[%s8920_s3 + $0x120] sm:$0xff] %v221_v36 }
  0x3b   : > { %224 = vst [vmem:[%s8920_s3 + $0x128] sm:$0xff] %v223_v37 }
  0x3c   : > { %226 = vst [vmem:[%s8920_s3 + $0x130] sm:$0xff] %v225_v38 }
  0x3d   : > { %228 = vst [vmem:[%s8920_s3 + $0x138] sm:$0xff] %v227_v39 }
  0x3e   : > { %230 = vst [vmem:[%s8920_s3 + $0x140] sm:$0xff] %v229_v40 }
  0x3f   : > { %232 = vst [vmem:[%s8920_s3 + $0x148] sm:$0xff] %v231_v41 }
  0x40   : > { %234 = vst [vmem:[%s8920_s3 + $0x150] sm:$0xff] %v233_v42 }
  0x41   : > { %236 = vst [vmem:[%s8920_s3 + $0x158] sm:$0xff] %v235_v43 }
  0x42   : > { %238 = vst [vmem:[%s8920_s3 + $0x160] sm:$0xff] %v237_v44 }
  0x43   : > { %240 = vst [vmem:[%s8920_s3 + $0x168] sm:$0xff] %v239_v45 }
  0x44   : > { %242 = vst [vmem:[%s8920_s3 + $0x170] sm:$0xff] %v241_v46 }
  0x45   : > { %244 = vst [vmem:[%s8920_s3 + $0x178] sm:$0xff] %v243_v47 }
  0x46   : > { %246 = vst [vmem:[%s8920_s3 + $0x180] sm:$0xff] %v245_v48 }
  0x47   : > { %248 = vst [vmem:[%s8920_s3 + $0x188] sm:$0xff] %v247_v49 }
  0x48   : > { %250 = vst [vmem:[%s8920_s3 + $0x190] sm:$0xff] %v249_v50 }
  0x49   : > { %252 = vst [vmem:[%s8920_s3 + $0x198] sm:$0xff] %v251_v51 }
  0x4a   : > { %254 = vst [vmem:[%s8920_s3 + $0x1a0] sm:$0xff] %v253_v52 }
  0x4b   : > { %256 = vst [vmem:[%s8920_s3 + $0x1a8] sm:$0xff] %v255_v53 }
  0x4c   : > { %258 = vst [vmem:[%s8920_s3 + $0x1b0] sm:$0xff] %v257_v54 }
  0x4d   : > { %260 = vst [vmem:[%s8920_s3 + $0x1b8] sm:$0xff] %v259_v55 }
  0x4e   : > { %262 = vst [vmem:[%s8920_s3 + $0x1c0] sm:$0xff] %v261_v56 }
  0x4f   : > { %264 = vst [vmem:[%s8920_s3 + $0x1c8] sm:$0xff] %v263_v57 }
  0x50   : > { %266 = vst [vmem:[%s8920_s3 + $0x1d0] sm:$0xff] %v265_v58 }
  0x51   : > { %268 = vst [vmem:[%s8920_s3 + $0x1d8] sm:$0xff] %v267_v59 }
  0x52   : > { %270 = vst [vmem:[%s8920_s3 + $0x1e0] sm:$0xff] %v269_v60 }
  0x53   : > { %272 = vst [vmem:[%s8920_s3 + $0x1e8] sm:$0xff] %v271_v61 }
  0x54   : > { %274 = vst [vmem:[%s8920_s3 + $0x1f0] sm:$0xff] %v273_v62 }
  0x55   : > { %276 = vst [vmem:[%s8920_s3 + $0x1f8] sm:$0xff] %v275_v63 }
  0x56 PF: > { %p5836_p7 = scmp.ge.s32.totalorder %s8839_s15, 1  ;;  %p294_p8 = scmp.lt.s32.totalorder %s8839_s15, 7 }
  0x58   : > { %p295_p9 = pnand %p5836_p7, %p294_p8 }
  0x59   : > { %s301_s4 = sand.u32 (!%p295_p9), 1, %s8815_s9   ;;  %s332_s5 = smul.u32 (!%p295_p9), 3, %s8827_s12 }
  0x5a   : > { %298 = sbr.rel (%p295_p9) target bundleno = 775 (0x307), region = 47  ;;  %s5837_s6 = sshll.u32 (!%p295_p9), %s301_s4, 9 }
  0x5b   : > { %p342_p10 = scmp.lt.s32.totalorder (!%p295_p9), %s8827_s12, 1  ;;  %s333_s7 = sadd.s32 (!%p295_p9), %s8823_s11, %s332_s5 }
  0x5c   : > { %s5838_s8 = sshll.u32 (!%p295_p9), %s333_s7, 10  ;;  %s9064_s9 = scalar_lea.vmem (!%p295_p9), [#allocation3], %s5837_s6 }
  0x5d   : > { %p335_p11 = scmp.lt.s32.totalorder (!%p295_p9), %s5838_s8, 6143  ;;  %p5842_p12 = scmp.ne.s32.totalorder (!%p295_p9), %s8823_s11, 0 }
  0x5f   : > { %s9819_s12 = smov (!%p342_p10, %s8827_s12), 1  ;;  %s9821_s8 = smov (!%p335_p11, %s5838_s8), 6143 }
  0x60   : > { %s8151_s18 = sshll.u32 %s9819_s12, 4  ;;  %s5839_s19 = sshll.u32 %s9821_s8, 2 }
  0x61   : > { %s9057_s22 = scalar_lea.vmem %s9805_s2, %s8151_s18  ;;  %s9062_s26 = scalar_lea.vmem %s9804_s1, %s5839_s19 }
  0x62   : > { %350 = sbr.rel (%p5842_p12) target bundleno = 106 (0x6a), region = 55 }
  0x67   : > { %v8841_v0 = vmov 0.0  }
  0x68   : > { %351 = vst [vmem:[#allocation2] sm:$0xff] %v8841_v0 }
  0x69   : > { %352 = vst [vmem:[#allocation2 + $0x8] sm:$0xff] %v8841_v0 }
  0x6a PF: > { %v8223_v1 = vld [vmem:[%s9062_s26 + $0x38] sm:$0xff]  ;;  %v8222_v5 = vld [vmem:[%s9062_s26 + $0x30] sm:$0xff]  ;;  %v8221_v9 = vld [vmem:[%s9062_s26 + $0x28] sm:$0xff]  ;;  %p8147_p13 = scmp.ne.s32.totalorder %s8823_s11, 2 }
  0x6b   : > { %v8231_v2 = vld [vmem:[%s9062_s26 + $0x78] sm:$0xff]  ;;  %4835 = vmatpush.bf16.msra.mxu0 %v8223_v1  ;;  %v8230_v6 = vld [vmem:[%s9062_s26 + $0x70] sm:$0xff]  ;;  %v8229_v10 = vld [vmem:[%s9062_s26 + $0x68] sm:$0xff] }
  0x6c   : > { %v8239_v3 = vld [vmem:[%s9062_s26 + $0xb8] sm:$0xff]  ;;  %4849 = vmatpush.bf16.msra.mxu1 %v8231_v2  ;;  %v8238_v7 = vld [vmem:[%s9062_s26 + $0xb0] sm:$0xff]  ;;  %v8237_v11 = vld [vmem:[%s9062_s26 + $0xa8] sm:$0xff] }
  0x6d   : > { %v8247_v4 = vld [vmem:[%s9062_s26 + $0xf8] sm:$0xff]  ;;  %4863 = vmatpush.bf16.msra.mxu2 %v8239_v3  ;;  %v8246_v8 = vld [vmem:[%s9062_s26 + $0xf0] sm:$0xff]  ;;  %v8245_v12 = vld [vmem:[%s9062_s26 + $0xe8] sm:$0xff] }
  0x6e   : > { %4877 = vmatpush.bf16.msra.mxu3 %v8247_v4  ;;  %v8220_v13 = vld [vmem:[%s9062_s26 + $0x20] sm:$0xff]  ;;  %v8219_v17 = vld [vmem:[%s9062_s26 + $0x18] sm:$0xff]  ;;  %v8218_v21 = vld [vmem:[%s9062_s26 + $0x10] sm:$0xff] }
  0x6f   : > { %4836 = vmatpush.bf16.msra.mxu0 %v8222_v5  ;;  %v8228_v14 = vld [vmem:[%s9062_s26 + $0x60] sm:$0xff]  ;;  %v8227_v18 = vld [vmem:[%s9062_s26 + $0x58] sm:$0xff]  ;;  %v8226_v22 = vld [vmem:[%s9062_s26 + $0x50] sm:$0xff] }
  0x70   : > { %4850 = vmatpush.bf16.msra.mxu1 %v8230_v6  ;;  %v8236_v15 = vld [vmem:[%s9062_s26 + $0xa0] sm:$0xff]  ;;  %v8235_v19 = vld [vmem:[%s9062_s26 + $0x98] sm:$0xff]  ;;  %v8234_v23 = vld [vmem:[%s9062_s26 + $0x90] sm:$0xff] }
  0x71   : > { %4864 = vmatpush.bf16.msra.mxu2 %v8238_v7  ;;  %v8244_v16 = vld [vmem:[%s9062_s26 + $0xe0] sm:$0xff]  ;;  %v8243_v20 = vld [vmem:[%s9062_s26 + $0xd8] sm:$0xff]  ;;  %v8242_v24 = vld [vmem:[%s9062_s26 + $0xd0] sm:$0xff] }
  0x72   : > { %4878 = vmatpush.bf16.msra.mxu3 %v8246_v8  ;;  %v8217_v25 = vld [vmem:[%s9062_s26 + $0x8] sm:$0xff]  ;;  %v8216_v29 = vld [vmem:[%s9062_s26] sm:$0xff]  ;;  %v8255_v33 = vld [vmem:[%s9062_s26 + $0x138] sm:$0xff] }
  0x73   : > { %4837 = vmatpush.bf16.msra.mxu0 %v8221_v9  ;;  %v8225_v26 = vld [vmem:[%s9062_s26 + $0x48] sm:$0xff]  ;;  %v8224_v30 = vld [vmem:[%s9062_s26 + $0x40] sm:$0xff]  ;;  %v8263_v34 = vld [vmem:[%s9062_s26 + $0x178] sm:$0xff] }
  0x74   : > { %4851 = vmatpush.bf16.msra.mxu1 %v8229_v10  ;;  %v8233_v27 = vld [vmem:[%s9062_s26 + $0x88] sm:$0xff]  ;;  %v8232_v31 = vld [vmem:[%s9062_s26 + $0x80] sm:$0xff]  ;;  %v5845_v35 = vld [vmem:[%s9064_s9] sm:$0xf] }
  0x75   : > { %4865 = vmatpush.bf16.msra.mxu2 %v8237_v11  ;;  %v8241_v28 = vld [vmem:[%s9062_s26 + $0xc8] sm:$0xff]  ;;  %v8240_v32 = vld [vmem:[%s9062_s26 + $0xc0] sm:$0xff]  ;;  %v8184_v36 = vld [vmem:[%s9064_s9 + $0xfc] sm:$0xf0] }
  0x76   : > { %4879 = vmatpush.bf16.msra.mxu3 %v8245_v12  ;;  %v5853_v37 = vld [vmem:[%s9064_s9 + $0x8] sm:$0xf]  ;;  %v8152_v39 = vld [vmem:[%s9064_s9 + $0x4] sm:$0xf]  ;;  %v8153_v41 = vld [vmem:[%s9064_s9 + $0xc] sm:$0xf]  ;;  %v5846_v45 = vor.u32 %v8184_v36, %v5845_v35 }
  0x77   : > { %4838 = vmatpush.bf16.msra.mxu0 %v8220_v13  ;;  %v8185_v38 = vld [vmem:[%s9064_s9 + $0x104] sm:$0xf0]  ;;  %v5847_v40 = vld [vmem:[%s9064_s9 + $0x100] sm:$0xf0]  ;;  %v5855_v42 = vld [vmem:[%s9064_s9 + $0x108] sm:$0xf0] }
  0x78   : > { %4852 = vmatpush.bf16.msra.mxu1 %v8228_v14  ;;  %v8271_v43 = vld [vmem:[%s9062_s26 + $0x1b8] sm:$0xff]  ;;  %v5854_v46 = vor.u32 %v8185_v38, %v5853_v37  ;;  %v5850_v47 = vor.u32 %v8152_v39, %v5847_v40  ;;  %v5858_v48 = vor.u32 %v8153_v41, %v5855_v42  ;;  %v8254_v49 = vld [vmem:[%s9062_s26 + $0x130] sm:$0xff]  ;;  %v8253_v53 = vld [vmem:[%s9062_s26 + $0x128] sm:$0xff] }
  0x79   : > { %4866 = vmatpush.bf16.msra.mxu2 %v8236_v15  ;;  %v8279_v44 = vld [vmem:[%s9062_s26 + $0x1f8] sm:$0xff]  ;;  %v8262_v50 = vld [vmem:[%s9062_s26 + $0x170] sm:$0xff]  ;;  %v8261_v54 = vld [vmem:[%s9062_s26 + $0x168] sm:$0xff] }
  0x7a   : > { %4880 = vmatpush.bf16.msra.mxu3 %v8244_v16  ;;  %v8270_v51 = vld [vmem:[%s9062_s26 + $0x1b0] sm:$0xff]  ;;  %v8269_v55 = vld [vmem:[%s9062_s26 + $0x1a8] sm:$0xff]  ;;  %v8252_v57 = vld [vmem:[%s9062_s26 + $0x120] sm:$0xff] }
  0x7b   : > { %4839 = vmatpush.bf16.msra.mxu0 %v8219_v17  ;;  %v8278_v52 = vld [vmem:[%s9062_s26 + $0x1f0] sm:$0xff]  ;;  %v8277_v56 = vld [vmem:[%s9062_s26 + $0x1e8] sm:$0xff]  ;;  %v8260_v58 = vld [vmem:[%s9062_s26 + $0x160] sm:$0xff] }
  0x7c   : > { %4853 = vmatpush.bf16.msra.mxu1 %v8227_v18  ;;  %v8268_v59 = vld [vmem:[%s9062_s26 + $0x1a0] sm:$0xff]  ;;  %v8251_v61 = vld [vmem:[%s9062_s26 + $0x118] sm:$0xff]  ;;  %v8250_v1 = vld [vmem:[%s9062_s26 + $0x110] sm:$0xff] }
  0x7d   : > { %4867 = vmatpush.bf16.msra.mxu2 %v8235_v19  ;;  %v8276_v60 = vld [vmem:[%s9062_s26 + $0x1e0] sm:$0xff]  ;;  %v8259_v62 = vld [vmem:[%s9062_s26 + $0x158] sm:$0xff]  ;;  %v8258_v2 = vld [vmem:[%s9062_s26 + $0x150] sm:$0xff] }
  0x7e   : > { %4881 = vmatpush.bf16.msra.mxu3 %v8243_v20  ;;  %v8267_v63 = vld [vmem:[%s9062_s26 + $0x198] sm:$0xff]  ;;  %v8266_v3 = vld [vmem:[%s9062_s26 + $0x190] sm:$0xff]  ;;  %v8249_v5 = vld [vmem:[%s9062_s26 + $0x108] sm:$0xff] }
  0x7f   : > { %4840 = vmatpush.bf16.msra.mxu0 %v8218_v21  ;;  %v8275_v0 = vld [vmem:[%s9062_s26 + $0x1d8] sm:$0xff]  ;;  %v8274_v4 = vld [vmem:[%s9062_s26 + $0x1d0] sm:$0xff]  ;;  %v8257_v6 = vld [vmem:[%s9062_s26 + $0x148] sm:$0xff] }
  0x80   : > { %4854 = vmatpush.bf16.msra.mxu1 %v8226_v22  ;;  %v8265_v7 = vld [vmem:[%s9062_s26 + $0x188] sm:$0xff]  ;;  %v8248_v9 = vld [vmem:[%s9062_s26 + $0x100] sm:$0xff]  ;;  %v8287_v13 = vld [vmem:[%s9062_s26 + $0x238] sm:$0xff] }
  0x81   : > { %4868 = vmatpush.bf16.msra.mxu2 %v8234_v23  ;;  %v8273_v8 = vld [vmem:[%s9062_s26 + $0x1c8] sm:$0xff]  ;;  %v8256_v10 = vld [vmem:[%s9062_s26 + $0x140] sm:$0xff]  ;;  %v8295_v14 = vld [vmem:[%s9062_s26 + $0x278] sm:$0xff] }
  0x82   : > { %4882 = vmatpush.bf16.msra.mxu3 %v8242_v24  ;;  %v8264_v11 = vld [vmem:[%s9062_s26 + $0x180] sm:$0xff]  ;;  %v5869_v17 = vld [vmem:[%s9064_s9 + $0x18] sm:$0xf]  ;;  %v8155_v21 = vld [vmem:[%s9064_s9 + $0x1c] sm:$0xf] }
  0x83   : > { %4841 = vmatpush.bf16.msra.mxu0 %v8217_v25  ;;  %v8272_v12 = vld [vmem:[%s9062_s26 + $0x1c0] sm:$0xff]  ;;  %v8187_v18 = vld [vmem:[%s9064_s9 + $0x114] sm:$0xf0]  ;;  %v5871_v22 = vld [vmem:[%s9064_s9 + $0x118] sm:$0xf0] }
  0x84   : > { %4855 = vmatpush.bf16.msra.mxu1 %v8225_v26  ;;  %v5861_v15 = vld [vmem:[%s9064_s9 + $0x10] sm:$0xf]  ;;  %v8154_v19 = vld [vmem:[%s9064_s9 + $0x14] sm:$0xf]  ;;  %v8303_v23 = vld [vmem:[%s9062_s26 + $0x2b8] sm:$0xff]  ;;  %v5870_v26 = vor.u32 %v8187_v18, %v5869_v17 }
  0x85   : > { %4869 = vmatpush.bf16.msra.mxu2 %v8233_v27  ;;  %v8186_v16 = vld [vmem:[%s9064_s9 + $0x10c] sm:$0xf0]  ;;  %v5863_v20 = vld [vmem:[%s9064_s9 + $0x110] sm:$0xf0]  ;;  %v8311_v24 = vld [vmem:[%s9062_s26 + $0x2f8] sm:$0xff] }
  0x86   : > { %4883 = vmatpush.bf16.msra.mxu3 %v8241_v28  ;;  %v5862_v25 = vor.u32 %v8186_v16, %v5861_v15  ;;  %v5866_v27 = vor.u32 %v8154_v19, %v5863_v20  ;;  %v5874_v28 = vor.u32 %v8155_v21, %v5871_v22  ;;  %v8301_v35 = vld [vmem:[%s9062_s26 + $0x2a8] sm:$0xff]  ;;  %v8284_v37 = vld [vmem:[%s9062_s26 + $0x220] sm:$0xff]  ;;  %v8283_v41 = vld [vmem:[%s9062_s26 + $0x218] sm:$0xff] }
  0x87   : > { %4842 = vmatpush.bf16.msra.mxu0 %v8216_v29  ;;  %v8286_v29 = vld [vmem:[%s9062_s26 + $0x230] sm:$0xff]  ;;  %v8309_v36 = vld [vmem:[%s9062_s26 + $0x2e8] sm:$0xff]  ;;  %v8292_v38 = vld [vmem:[%s9062_s26 + $0x260] sm:$0xff] }
  0x88   : > { %4856 = vmatpush.bf16.msra.mxu1 %v8224_v30  ;;  %v8294_v30 = vld [vmem:[%s9062_s26 + $0x270] sm:$0xff]  ;;  %v8300_v39 = vld [vmem:[%s9062_s26 + $0x2a0] sm:$0xff]  ;;  %v8291_v42 = vld [vmem:[%s9062_s26 + $0x258] sm:$0xff] }
  0x89   : > { %4870 = vmatpush.bf16.msra.mxu2 %v8232_v31  ;;  %v8302_v31 = vld [vmem:[%s9062_s26 + $0x2b0] sm:$0xff]  ;;  %v8308_v40 = vld [vmem:[%s9062_s26 + $0x2e0] sm:$0xff]  ;;  %v8333_v15 = vld [vmem:[%s9062_s26 + $0x3a8] sm:$0xff] }
  0x8a   : > { %4884 = vmatpush.bf16.msra.mxu3 %v8240_v32  ;;  %4843 = vmatmul.bf16.vlgmr.msra.gmra.mxu0 %v5846_v45  ;;  %v8310_v32 = vld [vmem:[%s9062_s26 + $0x2f0] sm:$0xff]  ;;  %v8341_v16 = vld [vmem:[%s9062_s26 + $0x3e8] sm:$0xff]  ;;  %v8316_v17 = vld [vmem:[%s9062_s26 + $0x320] sm:$0xff] }
  0x8b   : > { %4891 = vmatpush.bf16.msrb.mxu0 %v8255_v33  ;;  %4857 = vmatmul.bf16.vlgmr.msra.gmra.mxu1 %v5850_v47  ;;  %v8285_v33 = vld [vmem:[%s9062_s26 + $0x228] sm:$0xff]  ;;  %v8282_v45 = vld [vmem:[%s9062_s26 + $0x210] sm:$0xff]  ;;  %v8324_v18 = vld [vmem:[%s9062_s26 + $0x360] sm:$0xff] }
  0x8c   : > { %4905 = vmatpush.bf16.msrb.mxu1 %v8263_v34  ;;  %4871 = vmatmul.bf16.vlgmr.msra.gmra.mxu2 %v5854_v46  ;;  %v8293_v34 = vld [vmem:[%s9062_s26 + $0x268] sm:$0xff]  ;;  %v8290_v46 = vld [vmem:[%s9062_s26 + $0x250] sm:$0xff]  ;;  %v8332_v19 = vld [vmem:[%s9062_s26 + $0x3a0] sm:$0xff] }
  0x8d   : > { %4919 = vmatpush.bf16.msrb.mxu2 %v8271_v43  ;;  %4885 = vmatmul.bf16.vlgmr.msra.gmra.mxu3 %v5858_v48  ;;  %v8299_v43 = vld [vmem:[%s9062_s26 + $0x298] sm:$0xff]  ;;  %v8298_v47 = vld [vmem:[%s9062_s26 + $0x290] sm:$0xff]  ;;  %v8340_v20 = vld [vmem:[%s9062_s26 + $0x3e0] sm:$0xff] }
  0x8e   : > { %4933 = vmatpush.bf16.msrb.mxu3 %v8279_v44  ;;  %v8307_v44 = vld [vmem:[%s9062_s26 + $0x2d8] sm:$0xff]  ;;  %v8306_v48 = vld [vmem:[%s9062_s26 + $0x2d0] sm:$0xff] }
  0x8f   : > { %4892 = vmatpush.bf16.msrb.mxu0 %v8254_v49  ;;  %v8281_v49 = vld [vmem:[%s9062_s26 + $0x208] sm:$0xff]  ;;  %v8315_v21 = vld [vmem:[%s9062_s26 + $0x318] sm:$0xff] }
  0x90   : > { %4906 = vmatpush.bf16.msrb.mxu1 %v8262_v50  ;;  %v8289_v50 = vld [vmem:[%s9062_s26 + $0x248] sm:$0xff]  ;;  %v8323_v22 = vld [vmem:[%s9062_s26 + $0x358] sm:$0xff] }
  0x91   : > { %4920 = vmatpush.bf16.msrb.mxu2 %v8270_v51  ;;  %v8297_v51 = vld [vmem:[%s9062_s26 + $0x288] sm:$0xff] }
  0x92   : > { %4934 = vmatpush.bf16.msrb.mxu3 %v8278_v52  ;;  %v8305_v52 = vld [vmem:[%s9062_s26 + $0x2c8] sm:$0xff] }
  0x93   : > { %4893 = vmatpush.bf16.msrb.mxu0 %v8253_v53  ;;  %v8280_v53 = vld [vmem:[%s9062_s26 + $0x200] sm:$0xff] }
  0x94   : > { %4907 = vmatpush.bf16.msrb.mxu1 %v8261_v54  ;;  %v8288_v54 = vld [vmem:[%s9062_s26 + $0x240] sm:$0xff] }
  0x95   : > { %4921 = vmatpush.bf16.msrb.mxu2 %v8269_v55  ;;  %v8296_v55 = vld [vmem:[%s9062_s26 + $0x280] sm:$0xff] }
  0x96   : > { %4935 = vmatpush.bf16.msrb.mxu3 %v8277_v56  ;;  %v8304_v56 = vld [vmem:[%s9062_s26 + $0x2c0] sm:$0xff] }
  0x97   : > { %4894 = vmatpush.bf16.msrb.mxu0 %v8252_v57  ;;  %v8319_v57 = vld [vmem:[%s9062_s26 + $0x338] sm:$0xff] }
  0x98   : > { %4908 = vmatpush.bf16.msrb.mxu1 %v8260_v58  ;;  %v8327_v58 = vld [vmem:[%s9062_s26 + $0x378] sm:$0xff] }
  0x99   : > { %4922 = vmatpush.bf16.msrb.mxu2 %v8268_v59  ;;  %v5877_v59 = vld [vmem:[%s9064_s9 + $0x20] sm:$0xf] }
  0x9a   : > { %4936 = vmatpush.bf16.msrb.mxu3 %v8276_v60  ;;  %v8188_v60 = vld [vmem:[%s9064_s9 + $0x11c] sm:$0xf0] }
  0x9b   : > { %4895 = vmatpush.bf16.msrb.mxu0 %v8251_v61  ;;  %v5885_v61 = vld [vmem:[%s9064_s9 + $0x28] sm:$0xf] }
  0x9c   : > { %4909 = vmatpush.bf16.msrb.mxu1 %v8259_v62  ;;  %v8189_v62 = vld [vmem:[%s9064_s9 + $0x124] sm:$0xf0] }
  0x9d   : > { %4923 = vmatpush.bf16.msrb.mxu2 %v8267_v63  ;;  %v8156_v63 = vld [vmem:[%s9064_s9 + $0x24] sm:$0xf] }
  0x9e   : > { %4937 = vmatpush.bf16.msrb.mxu3 %v8275_v0  ;;  %v5879_v0 = vld [vmem:[%s9064_s9 + $0x120] sm:$0xf0] }
  0x9f   : > { %4896 = vmatpush.bf16.msrb.mxu0 %v8250_v1  ;;  %v8157_v1 = vld [vmem:[%s9064_s9 + $0x2c] sm:$0xf] }
  0xa0   : > { %4910 = vmatpush.bf16.msrb.mxu1 %v8258_v2  ;;  %v5887_v2 = vld [vmem:[%s9064_s9 + $0x128] sm:$0xf0] }
  0xa1   : > { %4924 = vmatpush.bf16.msrb.mxu2 %v8266_v3  ;;  %v8335_v3 = vld [vmem:[%s9062_s26 + $0x3b8] sm:$0xff] }
  0xa2   : > { %4938 = vmatpush.bf16.msrb.mxu3 %v8274_v4  ;;  %v8343_v4 = vld [vmem:[%s9062_s26 + $0x3f8] sm:$0xff] }
  0xa3   : > { %4897 = vmatpush.bf16.msrb.mxu0 %v8249_v5  ;;  %v5878_v5 = vor.u32 %v8188_v60, %v5877_v59  ;;  %v8365_v59 = vld [vmem:[%s9062_s26 + $0x4a8] sm:$0xff] }
  0xa4   : > { %4911 = vmatpush.bf16.msrb.mxu1 %v8257_v6  ;;  %v5886_v6 = vor.u32 %v8189_v62, %v5885_v61  ;;  %v8373_v60 = vld [vmem:[%s9062_s26 + $0x4e8] sm:$0xff]  ;;  %v8348_v61 = vld [vmem:[%s9062_s26 + $0x420] sm:$0xff] }
  0xa5   : > { %4925 = vmatpush.bf16.msrb.mxu2 %v8265_v7  ;;  %v5882_v7 = vor.u32 %v8156_v63, %v5879_v0  ;;  %v8356_v62 = vld [vmem:[%s9062_s26 + $0x460] sm:$0xff] }
  0xa6   : > { %4939 = vmatpush.bf16.msrb.mxu3 %v8273_v8  ;;  %v5890_v8 = vor.u32 %v8157_v1, %v5887_v2  ;;  %v8364_v63 = vld [vmem:[%s9062_s26 + $0x4a0] sm:$0xff]  ;;  %v8347_v1 = vld [vmem:[%s9062_s26 + $0x418] sm:$0xff] }
  0xa7   : > { %4898 = vmatpush.bf16.msrb.mxu0 %v8248_v9  ;;  %v8318_v9 = vld [vmem:[%s9062_s26 + $0x330] sm:$0xff]  ;;  %v8372_v0 = vld [vmem:[%s9062_s26 + $0x4e0] sm:$0xff]  ;;  %v8355_v2 = vld [vmem:[%s9062_s26 + $0x458] sm:$0xff] }
  0xa8   : > { %4912 = vmatpush.bf16.msrb.mxu1 %v8256_v10  ;;  %v8326_v10 = vld [vmem:[%s9062_s26 + $0x370] sm:$0xff] }
  0xa9   : > { %4926 = vmatpush.bf16.msrb.mxu2 %v8264_v11  ;;  %v8334_v11 = vld [vmem:[%s9062_s26 + $0x3b0] sm:$0xff] }
  0xaa   : > { %4940 = vmatpush.bf16.msrb.mxu3 %v8272_v12  ;;  %4899 = vmatmul.bf16.vlgmr.msrb.gmra.mxu0 %v5862_v25  ;;  %v8342_v12 = vld [vmem:[%s9062_s26 + $0x3f0] sm:$0xff] }
  0xab   : > { %4947 = vmatpush.bf16.msra.mxu0 %v8287_v13  ;;  %4913 = vmatmul.bf16.vlgmr.msrb.gmra.mxu1 %v5866_v27  ;;  %v8317_v13 = vld [vmem:[%s9062_s26 + $0x328] sm:$0xff]  ;;  %v8314_v25 = vld [vmem:[%s9062_s26 + $0x310] sm:$0xff] }
  0xac   : > { %4961 = vmatpush.bf16.msra.mxu1 %v8295_v14  ;;  %4927 = vmatmul.bf16.vlgmr.msrb.gmra.mxu2 %v5870_v26  ;;  %v8325_v14 = vld [vmem:[%s9062_s26 + $0x368] sm:$0xff]  ;;  %v8322_v26 = vld [vmem:[%s9062_s26 + $0x350] sm:$0xff] }
  0xad   : > { %4975 = vmatpush.bf16.msra.mxu2 %v8303_v23  ;;  %4941 = vmatmul.bf16.vlgmr.msrb.gmra.mxu3 %v5874_v28  ;;  %v8331_v23 = vld [vmem:[%s9062_s26 + $0x398] sm:$0xff]  ;;  %v8330_v27 = vld [vmem:[%s9062_s26 + $0x390] sm:$0xff] }
  0xae   : > { %4989 = vmatpush.bf16.msra.mxu3 %v8311_v24  ;;  %v8339_v24 = vld [vmem:[%s9062_s26 + $0x3d8] sm:$0xff]  ;;  %v8338_v28 = vld [vmem:[%s9062_s26 + $0x3d0] sm:$0xff] }
  0xaf   : > { %4948 = vmatpush.bf16.msra.mxu0 %v8286_v29  ;;  %v8313_v29 = vld [vmem:[%s9062_s26 + $0x308] sm:$0xff] }
  0xb0   : > { %4962 = vmatpush.bf16.msra.mxu1 %v8294_v30  ;;  %v8321_v30 = vld [vmem:[%s9062_s26 + $0x348] sm:$0xff] }
  0xb1   : > { %4976 = vmatpush.bf16.msra.mxu2 %v8302_v31  ;;  %v8329_v31 = vld [vmem:[%s9062_s26 + $0x388] sm:$0xff] }
  0xb2   : > { %4990 = vmatpush.bf16.msra.mxu3 %v8310_v32  ;;  %v8337_v32 = vld [vmem:[%s9062_s26 + $0x3c8] sm:$0xff] }
  0xb3   : > { %4949 = vmatpush.bf16.msra.mxu0 %v8285_v33  ;;  %v8312_v33 = vld [vmem:[%s9062_s26 + $0x300] sm:$0xff] }
  0xb4   : > { %4963 = vmatpush.bf16.msra.mxu1 %v8293_v34  ;;  %v8320_v34 = vld [vmem:[%s9062_s26 + $0x340] sm:$0xff] }
  0xb5   : > { %4977 = vmatpush.bf16.msra.mxu2 %v8301_v35  ;;  %v8328_v35 = vld [vmem:[%s9062_s26 + $0x380] sm:$0xff] }
  0xb6   : > { %4991 = vmatpush.bf16.msra.mxu3 %v8309_v36  ;;  %v8336_v36 = vld [vmem:[%s9062_s26 + $0x3c0] sm:$0xff] }
  0xb7   : > { %4950 = vmatpush.bf16.msra.mxu0 %v8284_v37  ;;  %v8351_v37 = vld [vmem:[%s9062_s26 + $0x438] sm:$0xff] }
  0xb8   : > { %4964 = vmatpush.bf16.msra.mxu1 %v8292_v38  ;;  %v8359_v38 = vld [vmem:[%s9062_s26 + $0x478] sm:$0xff] }
  0xb9   : > { %4978 = vmatpush.bf16.msra.mxu2 %v8300_v39  ;;  %v5893_v39 = vld [vmem:[%s9064_s9 + $0x30] sm:$0xf] }
  0xba   : > { %4992 = vmatpush.bf16.msra.mxu3 %v8308_v40  ;;  %v8190_v40 = vld [vmem:[%s9064_s9 + $0x12c] sm:$0xf0] }
  0xbb   : > { %4951 = vmatpush.bf16.msra.mxu0 %v8283_v41  ;;  %v5901_v41 = vld [vmem:[%s9064_s9 + $0x38] sm:$0xf] }
  0xbc   : > { %4965 = vmatpush.bf16.msra.mxu1 %v8291_v42  ;;  %v8191_v42 = vld [vmem:[%s9064_s9 + $0x134] sm:$0xf0] }
  0xbd   : > { %4979 = vmatpush.bf16.msra.mxu2 %v8299_v43  ;;  %v8158_v43 = vld [vmem:[%s9064_s9 + $0x34] sm:$0xf] }
  0xbe   : > { %4993 = vmatpush.bf16.msra.mxu3 %v8307_v44  ;;  %v5895_v44 = vld [vmem:[%s9064_s9 + $0x130] sm:$0xf0] }
  0xbf   : > { %4952 = vmatpush.bf16.msra.mxu0 %v8282_v45  ;;  %v8159_v45 = vld [vmem:[%s9064_s9 + $0x3c] sm:$0xf] }
  0xc0   : > { %4966 = vmatpush.bf16.msra.mxu1 %v8290_v46  ;;  %v5903_v46 = vld [vmem:[%s9064_s9 + $0x138] sm:$0xf0] }
  0xc1   : > { %4980 = vmatpush.bf16.msra.mxu2 %v8298_v47  ;;  %v8367_v47 = vld [vmem:[%s9062_s26 + $0x4b8] sm:$0xff] }
  0xc2   : > { %4994 = vmatpush.bf16.msra.mxu3 %v8306_v48  ;;  %v8375_v48 = vld [vmem:[%s9062_s26 + $0x4f8] sm:$0xff] }
  0xc3   : > { %4953 = vmatpush.bf16.msra.mxu0 %v8281_v49  ;;  %v5894_v49 = vor.u32 %v8190_v40, %v5893_v39  ;;  %v8397_v39 = vld [vmem:[%s9062_s26 + $0x5a8] sm:$0xff] }
  0xc4   : > { %4967 = vmatpush.bf16.msra.mxu1 %v8289_v50  ;;  %v5902_v50 = vor.u32 %v8191_v42, %v5901_v41  ;;  %v8405_v40 = vld [vmem:[%s9062_s26 + $0x5e8] sm:$0xff]  ;;  %v8380_v41 = vld [vmem:[%s9062_s26 + $0x520] sm:$0xff] }
  0xc5   : > { %4981 = vmatpush.bf16.msra.mxu2 %v8297_v51  ;;  %v5898_v51 = vor.u32 %v8158_v43, %v5895_v44  ;;  %v8388_v42 = vld [vmem:[%s9062_s26 + $0x560] sm:$0xff] }
  0xc6   : > { %4995 = vmatpush.bf16.msra.mxu3 %v8305_v52  ;;  %v5906_v52 = vor.u32 %v8159_v45, %v5903_v46  ;;  %v8396_v45 = vld [vmem:[%s9062_s26 + $0x5a0] sm:$0xff] }
  0xc7   : > { %4954 = vmatpush.bf16.msra.mxu0 %v8280_v53  ;;  %v8350_v53 = vld [vmem:[%s9062_s26 + $0x430] sm:$0xff]  ;;  %v8404_v46 = vld [vmem:[%s9062_s26 + $0x5e0] sm:$0xff] }
  0xc8   : > { %4968 = vmatpush.bf16.msra.mxu1 %v8288_v54  ;;  %v8358_v54 = vld [vmem:[%s9062_s26 + $0x470] sm:$0xff] }
  0xc9   : > { %4982 = vmatpush.bf16.msra.mxu2 %v8296_v55  ;;  %v8366_v55 = vld [vmem:[%s9062_s26 + $0x4b0] sm:$0xff] }
  0xca   : > { %4996 = vmatpush.bf16.msra.mxu3 %v8304_v56  ;;  %4955 = vmatmul.bf16.vlgmr.msra.gmra.mxu0 %v5878_v5  ;;  %v8374_v56 = vld [vmem:[%s9062_s26 + $0x4f0] sm:$0xff] }
  0xcb   : > { %5003 = vmatpush.bf16.msrb.mxu0 %v8319_v57  ;;  %4969 = vmatmul.bf16.vlgmr.msra.gmra.mxu1 %v5882_v7  ;;  %v8349_v57 = vld [vmem:[%s9062_s26 + $0x428] sm:$0xff]  ;;  %v8346_v5 = vld [vmem:[%s9062_s26 + $0x410] sm:$0xff] }
  0xcc   : > { %5017 = vmatpush.bf16.msrb.mxu1 %v8327_v58  ;;  %4983 = vmatmul.bf16.vlgmr.msra.gmra.mxu2 %v5886_v6  ;;  %v8357_v58 = vld [vmem:[%s9062_s26 + $0x468] sm:$0xff]  ;;  %v8354_v6 = vld [vmem:[%s9062_s26 + $0x450] sm:$0xff] }
  0xcd   : > { %5031 = vmatpush.bf16.msrb.mxu2 %v8335_v3  ;;  %4997 = vmatmul.bf16.vlgmr.msra.gmra.mxu3 %v5890_v8  ;;  %v8363_v3 = vld [vmem:[%s9062_s26 + $0x498] sm:$0xff]  ;;  %v8362_v7 = vld [vmem:[%s9062_s26 + $0x490] sm:$0xff] }
  0xce   : > { %5045 = vmatpush.bf16.msrb.mxu3 %v8343_v4  ;;  %v8371_v4 = vld [vmem:[%s9062_s26 + $0x4d8] sm:$0xff]  ;;  %v8370_v8 = vld [vmem:[%s9062_s26 + $0x4d0] sm:$0xff] }
  0xcf   : > { %5004 = vmatpush.bf16.msrb.mxu0 %v8318_v9  ;;  %v8345_v9 = vld [vmem:[%s9062_s26 + $0x408] sm:$0xff] }
  0xd0   : > { %5018 = vmatpush.bf16.msrb.mxu1 %v8326_v10  ;;  %v8353_v10 = vld [vmem:[%s9062_s26 + $0x448] sm:$0xff] }
  0xd1   : > { %5032 = vmatpush.bf16.msrb.mxu2 %v8334_v11  ;;  %v8361_v11 = vld [vmem:[%s9062_s26 + $0x488] sm:$0xff] }
  0xd2   : > { %5046 = vmatpush.bf16.msrb.mxu3 %v8342_v12  ;;  %v8369_v12 = vld [vmem:[%s9062_s26 + $0x4c8] sm:$0xff] }
  0xd3   : > { %5005 = vmatpush.bf16.msrb.mxu0 %v8317_v13  ;;  %v8344_v13 = vld [vmem:[%s9062_s26 + $0x400] sm:$0xff] }
  0xd4   : > { %5019 = vmatpush.bf16.msrb.mxu1 %v8325_v14  ;;  %v8352_v14 = vld [vmem:[%s9062_s26 + $0x440] sm:$0xff] }
  0xd5   : > { %5033 = vmatpush.bf16.msrb.mxu2 %v8333_v15  ;;  %v8360_v15 = vld [vmem:[%s9062_s26 + $0x480] sm:$0xff] }
  0xd6   : > { %5047 = vmatpush.bf16.msrb.mxu3 %v8341_v16  ;;  %v8368_v16 = vld [vmem:[%s9062_s26 + $0x4c0] sm:$0xff] }
  0xd7   : > { %5006 = vmatpush.bf16.msrb.mxu0 %v8316_v17  ;;  %v8383_v17 = vld [vmem:[%s9062_s26 + $0x538] sm:$0xff] }
  0xd8   : > { %5020 = vmatpush.bf16.msrb.mxu1 %v8324_v18  ;;  %v8391_v18 = vld [vmem:[%s9062_s26 + $0x578] sm:$0xff] }
  0xd9   : > { %5034 = vmatpush.bf16.msrb.mxu2 %v8332_v19  ;;  %v5909_v19 = vld [vmem:[%s9064_s9 + $0x40] sm:$0xf] }
  0xda   : > { %5048 = vmatpush.bf16.msrb.mxu3 %v8340_v20  ;;  %v8192_v20 = vld [vmem:[%s9064_s9 + $0x13c] sm:$0xf0] }
  0xdb   : > { %5007 = vmatpush.bf16.msrb.mxu0 %v8315_v21  ;;  %v5917_v21 = vld [vmem:[%s9064_s9 + $0x48] sm:$0xf] }
  0xdc   : > { %5021 = vmatpush.bf16.msrb.mxu1 %v8323_v22  ;;  %v8193_v22 = vld [vmem:[%s9064_s9 + $0x144] sm:$0xf0] }
  0xdd   : > { %5035 = vmatpush.bf16.msrb.mxu2 %v8331_v23  ;;  %v8160_v23 = vld [vmem:[%s9064_s9 + $0x44] sm:$0xf] }
  0xde   : > { %5049 = vmatpush.bf16.msrb.mxu3 %v8339_v24  ;;  %v5911_v24 = vld [vmem:[%s9064_s9 + $0x140] sm:$0xf0] }
  0xdf   : > { %5008 = vmatpush.bf16.msrb.mxu0 %v8314_v25  ;;  %v8161_v25 = vld [vmem:[%s9064_s9 + $0x4c] sm:$0xf] }
  0xe0   : > { %5022 = vmatpush.bf16.msrb.mxu1 %v8322_v26  ;;  %v5919_v26 = vld [vmem:[%s9064_s9 + $0x148] sm:$0xf0] }
  0xe1   : > { %5036 = vmatpush.bf16.msrb.mxu2 %v8330_v27  ;;  %v8399_v27 = vld [vmem:[%s9062_s26 + $0x5b8] sm:$0xff] }
  0xe2   : > { %5050 = vmatpush.bf16.msrb.mxu3 %v8338_v28  ;;  %v8407_v28 = vld [vmem:[%s9062_s26 + $0x5f8] sm:$0xff] }
  0xe3   : > { %5009 = vmatpush.bf16.msrb.mxu0 %v8313_v29  ;;  %v5910_v29 = vor.u32 %v8192_v20, %v5909_v19 }
  0xe4   : > { %5023 = vmatpush.bf16.msrb.mxu1 %v8321_v30  ;;  %v5918_v30 = vor.u32 %v8193_v22, %v5917_v21  ;;  %v8414_v22 = vld [vmem:[%s9062_s26 + $0x630] sm:$0xff] }
  0xe5   : > { %5037 = vmatpush.bf16.msrb.mxu2 %v8329_v31  ;;  %v5914_v31 = vor.u32 %v8160_v23, %v5911_v24  ;;  %v8422_v23 = vld [vmem:[%s9062_s26 + $0x670] sm:$0xff] }
  0xe6   : > { %5051 = vmatpush.bf16.msrb.mxu3 %v8337_v32  ;;  %v5922_v32 = vor.u32 %v8161_v25, %v5919_v26  ;;  %v8430_v24 = vld [vmem:[%s9062_s26 + $0x6b0] sm:$0xff] }
  0xe7   : > { %5010 = vmatpush.bf16.msrb.mxu0 %v8312_v33  ;;  %v8382_v33 = vld [vmem:[%s9062_s26 + $0x530] sm:$0xff] }
  0xe8   : > { %5024 = vmatpush.bf16.msrb.mxu1 %v8320_v34  ;;  %v8390_v34 = vld [vmem:[%s9062_s26 + $0x570] sm:$0xff] }
  0xe9   : > { %5038 = vmatpush.bf16.msrb.mxu2 %v8328_v35  ;;  %v8398_v35 = vld [vmem:[%s9062_s26 + $0x5b0] sm:$0xff] }
  0xea   : > { %5052 = vmatpush.bf16.msrb.mxu3 %v8336_v36  ;;  %5011 = vmatmul.bf16.vlgmr.msrb.gmra.mxu0 %v5894_v49  ;;  %v8406_v36 = vld [vmem:[%s9062_s26 + $0x5f0] sm:$0xff]  ;;  %v8387_v49 = vld [vmem:[%s9062_s26 + $0x558] sm:$0xff] }
  0xeb   : > { %5059 = vmatpush.bf16.msra.mxu0 %v8351_v37  ;;  %5025 = vmatmul.bf16.vlgmr.msrb.gmra.mxu1 %v5898_v51  ;;  %v8381_v37 = vld [vmem:[%s9062_s26 + $0x528] sm:$0xff]  ;;  %v8403_v51 = vld [vmem:[%s9062_s26 + $0x5d8] sm:$0xff]  ;;  %v8438_v25 = vld [vmem:[%s9062_s26 + $0x6f0] sm:$0xff] }
  0xec   : > { %5073 = vmatpush.bf16.msra.mxu1 %v8359_v38  ;;  %5039 = vmatmul.bf16.vlgmr.msrb.gmra.mxu2 %v5902_v50  ;;  %v8389_v38 = vld [vmem:[%s9062_s26 + $0x568] sm:$0xff]  ;;  %v8395_v50 = vld [vmem:[%s9062_s26 + $0x598] sm:$0xff] }
  0xed   : > { %5087 = vmatpush.bf16.msra.mxu2 %v8367_v47  ;;  %5053 = vmatmul.bf16.vlgmr.msrb.gmra.mxu3 %v5906_v52 }
  0xee   : > { %5101 = vmatpush.bf16.msra.mxu3 %v8375_v48  ;;  %v8379_v48 = vld [vmem:[%s9062_s26 + $0x518] sm:$0xff] }
  0xef   : > { %5060 = vmatpush.bf16.msra.mxu0 %v8350_v53 }
  0xf0   : > { %5074 = vmatpush.bf16.msra.mxu1 %v8358_v54 }
  0xf1   : > { %5088 = vmatpush.bf16.msra.mxu2 %v8366_v55  ;;  %v8378_v55 = vld [vmem:[%s9062_s26 + $0x510] sm:$0xff] }
  0xf2   : > { %5102 = vmatpush.bf16.msra.mxu3 %v8374_v56  ;;  %v8386_v56 = vld [vmem:[%s9062_s26 + $0x550] sm:$0xff] }
  0xf3   : > { %5061 = vmatpush.bf16.msra.mxu0 %v8349_v57 }
  0xf4   : > { %5075 = vmatpush.bf16.msra.mxu1 %v8357_v58  ;;  %v8394_v58 = vld [vmem:[%s9062_s26 + $0x590] sm:$0xff] }
  0xf5   : > { %5089 = vmatpush.bf16.msra.mxu2 %v8365_v59  ;;  %v8402_v59 = vld [vmem:[%s9062_s26 + $0x5d0] sm:$0xff] }
  0xf6   : > { %5103 = vmatpush.bf16.msra.mxu3 %v8373_v60  ;;  %v8377_v60 = vld [vmem:[%s9062_s26 + $0x508] sm:$0xff] }
  0xf7   : > { %5062 = vmatpush.bf16.msra.mxu0 %v8348_v61  ;;  %v8385_v61 = vld [vmem:[%s9062_s26 + $0x548] sm:$0xff] }
  0xf8   : > { %5076 = vmatpush.bf16.msra.mxu1 %v8356_v62  ;;  %v8393_v62 = vld [vmem:[%s9062_s26 + $0x588] sm:$0xff] }
  0xf9   : > { %5090 = vmatpush.bf16.msra.mxu2 %v8364_v63  ;;  %v8401_v63 = vld [vmem:[%s9062_s26 + $0x5c8] sm:$0xff] }
  0xfa   : > { %5104 = vmatpush.bf16.msra.mxu3 %v8372_v0  ;;  %v8376_v0 = vld [vmem:[%s9062_s26 + $0x500] sm:$0xff] }
  0xfb   : > { %5063 = vmatpush.bf16.msra.mxu0 %v8347_v1  ;;  %v8384_v1 = vld [vmem:[%s9062_s26 + $0x540] sm:$0xff] }
  0xfc   : > { %5077 = vmatpush.bf16.msra.mxu1 %v8355_v2  ;;  %v8392_v2 = vld [vmem:[%s9062_s26 + $0x580] sm:$0xff] }
  0xfd   : > { %5091 = vmatpush.bf16.msra.mxu2 %v8363_v3  ;;  %v8400_v3 = vld [vmem:[%s9062_s26 + $0x5c0] sm:$0xff] }
  0xfe   : > { %5105 = vmatpush.bf16.msra.mxu3 %v8371_v4  ;;  %v8415_v4 = vld [vmem:[%s9062_s26 + $0x638] sm:$0xff] }
  0xff   : > { %5064 = vmatpush.bf16.msra.mxu0 %v8346_v5  ;;  %v8423_v5 = vld [vmem:[%s9062_s26 + $0x678] sm:$0xff] }
 0x100   : > { %5078 = vmatpush.bf16.msra.mxu1 %v8354_v6  ;;  %v5925_v6 = vld [vmem:[%s9064_s9 + $0x50] sm:$0xf] }
 0x101   : > { %5092 = vmatpush.bf16.msra.mxu2 %v8362_v7  ;;  %v8194_v7 = vld [vmem:[%s9064_s9 + $0x14c] sm:$0xf0] }
 0x102   : > { %5106 = vmatpush.bf16.msra.mxu3 %v8370_v8  ;;  %v5933_v8 = vld [vmem:[%s9064_s9 + $0x58] sm:$0xf] }
 0x103   : > { %5065 = vmatpush.bf16.msra.mxu0 %v8345_v9  ;;  %v8195_v9 = vld [vmem:[%s9064_s9 + $0x154] sm:$0xf0] }
 0x104   : > { %5079 = vmatpush.bf16.msra.mxu1 %v8353_v10  ;;  %v8162_v10 = vld [vmem:[%s9064_s9 + $0x54] sm:$0xf] }
 0x105   : > { %5093 = vmatpush.bf16.msra.mxu2 %v8361_v11  ;;  %v5927_v11 = vld [vmem:[%s9064_s9 + $0x150] sm:$0xf0] }
 0x106   : > { %5107 = vmatpush.bf16.msra.mxu3 %v8369_v12  ;;  %v8163_v12 = vld [vmem:[%s9064_s9 + $0x5c] sm:$0xf]  ;;  %v5930_v19 = vor.u32 %v8162_v10, %v5927_v11 }
 0x107   : > { %5066 = vmatpush.bf16.msra.mxu0 %v8344_v13  ;;  %v4844_v43 = vpop.f32.mrf.mxu0  ;;  %v5935_v13 = vld [vmem:[%s9064_s9 + $0x158] sm:$0xf0] }
 0x108   : > { %5080 = vmatpush.bf16.msra.mxu1 %v8352_v14  ;;  %v4858_v44 = vpop.f32.mrf.mxu1  ;;  %v8431_v14 = vld [vmem:[%s9062_s26 + $0x6b8] sm:$0xff]  ;;  %v5938_v20 = vor.u32 %v8163_v12, %v5935_v13 }
 0x109   : > { %5094 = vmatpush.bf16.msra.mxu2 %v8360_v15  ;;  %v4859_v47 = vadd.f32 %v4858_v44, %v4844_v43  ;;  %v8439_v15 = vld [vmem:[%s9062_s26 + $0x6f8] sm:$0xff] }
 0x10a   : > { %5108 = vmatpush.bf16.msra.mxu3 %v8368_v16  ;;  %5067 = vmatmul.bf16.vlgmr.msra.gmra.mxu0 %v5910_v29  ;;  %v8429_v29 = vld [vmem:[%s9062_s26 + $0x6a8] sm:$0xff]  ;;  %v8435_v43 = vld [vmem:[%s9062_s26 + $0x6d8] sm:$0xff] }
 0x10b   : > { %5115 = vmatpush.bf16.msrb.mxu0 %v8383_v17  ;;  %5081 = vmatmul.bf16.vlgmr.msra.gmra.mxu1 %v5914_v31  ;;  %v5926_v17 = vor.u32 %v8194_v7, %v5925_v6  ;;  %v8463_v6 = vld [vmem:[%s9062_s26 + $0x7b8] sm:$0xff] }
 0x10c   : > { %5129 = vmatpush.bf16.msrb.mxu1 %v8391_v18  ;;  %5095 = vmatmul.bf16.vlgmr.msra.gmra.mxu2 %v5918_v30  ;;  %v5934_v18 = vor.u32 %v8195_v9, %v5933_v8  ;;  %v8437_v30 = vld [vmem:[%s9062_s26 + $0x6e8] sm:$0xff]  ;;  %v8471_v7 = vld [vmem:[%s9062_s26 + $0x7f8] sm:$0xff] }
 0x10d   : > { %5143 = vmatpush.bf16.msrb.mxu2 %v8399_v27  ;;  %5109 = vmatmul.bf16.vlgmr.msra.gmra.mxu3 %v5922_v32  ;;  %v8413_v27 = vld [vmem:[%s9062_s26 + $0x628] sm:$0xff] }
 0x10e   : > { %5157 = vmatpush.bf16.msrb.mxu3 %v8407_v28  ;;  %v8421_v28 = vld [vmem:[%s9062_s26 + $0x668] sm:$0xff] }
 0x10f   : > { %5116 = vmatpush.bf16.msrb.mxu0 %v8382_v33  ;;  %v4872_v52 = vpop.f32.mrf.mxu2  ;;  %v9313_v16 = vpop.f32.mrf.mxu0 }
 0x110   : > { %5130 = vmatpush.bf16.msrb.mxu1 %v8390_v34  ;;  %v4873_v53 = vadd.f32 %v4872_v52, %v4859_v47  ;;  %v4886_v54 = vpop.f32.mrf.mxu3  ;;  %v9315_v21 = vpop.f32.mrf.mxu1  ;;  %v8412_v34 = vld [vmem:[%s9062_s26 + $0x620] sm:$0xff]  ;;  %v8409_v52 = vld [vmem:[%s9062_s26 + $0x608] sm:$0xff] }
 0x111   : > { %5144 = vmatpush.bf16.msrb.mxu2 %v8398_v35  ;;  %v8420_v35 = vld [vmem:[%s9062_s26 + $0x660] sm:$0xff] }
 0x112   : > { %5158 = vmatpush.bf16.msrb.mxu3 %v8406_v36  ;;  %v9289_v57 = vadd.f32 %v4886_v54, %v4873_v53  ;;  %v8428_v36 = vld [vmem:[%s9062_s26 + $0x6a0] sm:$0xff]  ;;  %v8417_v53 = vld [vmem:[%s9062_s26 + $0x648] sm:$0xff] }
 0x113   : > { %5117 = vmatpush.bf16.msrb.mxu0 %v8381_v37  ;;  %v8436_v37 = vld [vmem:[%s9062_s26 + $0x6e0] sm:$0xff]  ;;  %v8425_v54 = vld [vmem:[%s9062_s26 + $0x688] sm:$0xff] }
 0x114   : > { %5131 = vmatpush.bf16.msrb.mxu1 %v8389_v38 }
 0x115   : > { %5145 = vmatpush.bf16.msrb.mxu2 %v8397_v39 }
 0x116   : > { %5159 = vmatpush.bf16.msrb.mxu3 %v8405_v40  ;;  %v8411_v40 = vld [vmem:[%s9062_s26 + $0x618] sm:$0xff] }
 0x117   : > { %5118 = vmatpush.bf16.msrb.mxu0 %v8380_v41  ;;  %v9321_v26 = vpop.f32.mrf.mxu2  ;;  %v8419_v41 = vld [vmem:[%s9062_s26 + $0x658] sm:$0xff] }
 0x118   : > { %5132 = vmatpush.bf16.msrb.mxu1 %v8388_v42  ;;  %v9327_v31 = vpop.f32.mrf.mxu3  ;;  %v8427_v42 = vld [vmem:[%s9062_s26 + $0x698] sm:$0xff] }
 0x119   : > { %5146 = vmatpush.bf16.msrb.mxu2 %v8396_v45 }
 0x11a   : > { %5160 = vmatpush.bf16.msrb.mxu3 %v8404_v46 }
 0x11b   : > { %5119 = vmatpush.bf16.msrb.mxu0 %v8379_v48  ;;  %v8410_v48 = vld [vmem:[%s9062_s26 + $0x610] sm:$0xff] }
 0x11c   : > { %5133 = vmatpush.bf16.msrb.mxu1 %v8387_v49  ;;  %v8418_v49 = vld [vmem:[%s9062_s26 + $0x650] sm:$0xff] }
 0x11d   : > { %5147 = vmatpush.bf16.msrb.mxu2 %v8395_v50  ;;  %v8426_v50 = vld [vmem:[%s9062_s26 + $0x690] sm:$0xff] }
 0x11e   : > { %5161 = vmatpush.bf16.msrb.mxu3 %v8403_v51  ;;  %v8434_v51 = vld [vmem:[%s9062_s26 + $0x6d0] sm:$0xff] }
 0x11f   : > { %5120 = vmatpush.bf16.msrb.mxu0 %v8378_v55  ;;  %v8433_v55 = vld [vmem:[%s9062_s26 + $0x6c8] sm:$0xff] }
 0x120   : > { %5134 = vmatpush.bf16.msrb.mxu1 %v8386_v56  ;;  %v8408_v56 = vld [vmem:[%s9062_s26 + $0x600] sm:$0xff] }
 0x121   : > { %5148 = vmatpush.bf16.msrb.mxu2 %v8394_v58  ;;  %v8424_v58 = vld [vmem:[%s9062_s26 + $0x680] sm:$0xff] }
 0x122   : > { %5162 = vmatpush.bf16.msrb.mxu3 %v8402_v59  ;;  %v8432_v59 = vld [vmem:[%s9062_s26 + $0x6c0] sm:$0xff] }
 0x123   : > { %5121 = vmatpush.bf16.msrb.mxu0 %v8377_v60  ;;  %v8447_v60 = vld [vmem:[%s9062_s26 + $0x738] sm:$0xff] }
 0x124   : > { %5135 = vmatpush.bf16.msrb.mxu1 %v8385_v61  ;;  %v8455_v61 = vld [vmem:[%s9062_s26 + $0x778] sm:$0xff] }
 0x125   : > { %5149 = vmatpush.bf16.msrb.mxu2 %v8393_v62  ;;  %v5941_v62 = vld [vmem:[%s9064_s9 + $0x60] sm:$0xf] }
 0x126   : > { %5163 = vmatpush.bf16.msrb.mxu3 %v8401_v63  ;;  %v8196_v63 = vld [vmem:[%s9064_s9 + $0x15c] sm:$0xf0] }
 0x127   : > { %5122 = vmatpush.bf16.msrb.mxu0 %v8376_v0  ;;  %v4900_v32 = vpop.f32.mrf.mxu0  ;;  %v5949_v0 = vld [vmem:[%s9064_s9 + $0x68] sm:$0xf]  ;;  %v5942_v8 = vor.u32 %v8196_v63, %v5941_v62  ;;  %v8166_v62 = vld [vmem:[%s9064_s9 + $0x74] sm:$0xf] }
 0x128   : > { %5136 = vmatpush.bf16.msrb.mxu1 %v8384_v1  ;;  %v4901_v33 = vadd.f32 %v4900_v32, %v9289_v57  ;;  %v4914_v38 = vpop.f32.mrf.mxu1  ;;  %v8416_v57 = vld [vmem:[%s9062_s26 + $0x640] sm:$0xff]  ;;  %v8197_v1 = vld [vmem:[%s9064_s9 + $0x164] sm:$0xf0] }
 0x129   : > { %5150 = vmatpush.bf16.msrb.mxu2 %v8392_v2  ;;  %v8164_v2 = vld [vmem:[%s9064_s9 + $0x64] sm:$0xf]  ;;  %v5950_v9 = vor.u32 %v8197_v1, %v5949_v0  ;;  %v5959_v63 = vld [vmem:[%s9064_s9 + $0x170] sm:$0xf0]  ;;  %v8167_v0 = vld [vmem:[%s9064_s9 + $0x7c] sm:$0xf] }
 0x12a   : > { %5164 = vmatpush.bf16.msrb.mxu3 %v8400_v3  ;;  %5123 = vmatmul.bf16.vlgmr.msrb.gmra.mxu0 %v5926_v17  ;;  %v4915_v39 = vadd.f32 %v4914_v38, %v4901_v33  ;;  %v5943_v3 = vld [vmem:[%s9064_s9 + $0x160] sm:$0xf0]  ;;  %v8460_v33 = vld [vmem:[%s9062_s26 + $0x7a0] sm:$0xff]  ;;  %v8459_v38 = vld [vmem:[%s9062_s26 + $0x798] sm:$0xff] }
 0x12b   : > { %5171 = vmatpush.bf16.msra.mxu0 %v8415_v4  ;;  %5137 = vmatmul.bf16.vlgmr.msrb.gmra.mxu1 %v5930_v19  ;;  %v8165_v4 = vld [vmem:[%s9064_s9 + $0x6c] sm:$0xf]  ;;  %v5946_v11 = vor.u32 %v8164_v2, %v5943_v3  ;;  %v8462_v17 = vld [vmem:[%s9062_s26 + $0x7b0] sm:$0xff]  ;;  %v8445_v19 = vld [vmem:[%s9062_s26 + $0x728] sm:$0xff] }
 0x12c   : > { %5185 = vmatpush.bf16.msra.mxu1 %v8423_v5  ;;  %5151 = vmatmul.bf16.vlgmr.msrb.gmra.mxu2 %v5934_v18  ;;  %v5951_v5 = vld [vmem:[%s9064_s9 + $0x168] sm:$0xf0]  ;;  %v8470_v18 = vld [vmem:[%s9062_s26 + $0x7f0] sm:$0xff]  ;;  %v5967_v1 = vld [vmem:[%s9064_s9 + $0x178] sm:$0xf0] }
 0x12d   : > { %5199 = vmatpush.bf16.msra.mxu2 %v8431_v14  ;;  %5165 = vmatmul.bf16.vlgmr.msrb.gmra.mxu3 %v5938_v20  ;;  %v5954_v12 = vor.u32 %v8165_v4, %v5951_v5  ;;  %v8446_v14 = vld [vmem:[%s9062_s26 + $0x730] sm:$0xff]  ;;  %v8453_v20 = vld [vmem:[%s9062_s26 + $0x768] sm:$0xff]  ;;  %v8495_v2 = vld [vmem:[%s9062_s26 + $0x8b8] sm:$0xff] }
 0x12e   : > { %5213 = vmatpush.bf16.msra.mxu3 %v8439_v15  ;;  %v8454_v15 = vld [vmem:[%s9062_s26 + $0x770] sm:$0xff]  ;;  %v8503_v3 = vld [vmem:[%s9062_s26 + $0x8f8] sm:$0xff] }
 0x12f   : > { %5172 = vmatpush.bf16.msra.mxu0 %v8414_v22  ;;  %v4928_v44 = vpop.f32.mrf.mxu2  ;;  %v9364_v10 = vpop.f32.mrf.mxu0 }
 0x130   : > { %5186 = vmatpush.bf16.msra.mxu1 %v8422_v23  ;;  %v4929_v45 = vadd.f32 %v4928_v44, %v4915_v39  ;;  %v4942_v46 = vpop.f32.mrf.mxu3  ;;  %v9366_v13 = vpop.f32.mrf.mxu1  ;;  %v8461_v23 = vld [vmem:[%s9062_s26 + $0x7a8] sm:$0xff]  ;;  %v8467_v39 = vld [vmem:[%s9062_s26 + $0x7d8] sm:$0xff]  ;;  %v8442_v44 = vld [vmem:[%s9062_s26 + $0x710] sm:$0xff] }
 0x131   : > { %5200 = vmatpush.bf16.msra.mxu2 %v8430_v24  ;;  %v8469_v24 = vld [vmem:[%s9062_s26 + $0x7e8] sm:$0xff] }
 0x132   : > { %5214 = vmatpush.bf16.msra.mxu3 %v8438_v25  ;;  %v9338_v47 = vadd.f32 %v4942_v46, %v4929_v45  ;;  %v8450_v45 = vld [vmem:[%s9062_s26 + $0x750] sm:$0xff] }
 0x133   : > { %5173 = vmatpush.bf16.msra.mxu0 %v8413_v27  ;;  %v8458_v46 = vld [vmem:[%s9062_s26 + $0x790] sm:$0xff] }
 0x134   : > { %5187 = vmatpush.bf16.msra.mxu1 %v8421_v28 }
 0x135   : > { %5201 = vmatpush.bf16.msra.mxu2 %v8429_v29  ;;  %v8444_v29 = vld [vmem:[%s9062_s26 + $0x720] sm:$0xff] }
 0x136   : > { %5215 = vmatpush.bf16.msra.mxu3 %v8437_v30  ;;  %v8452_v30 = vld [vmem:[%s9062_s26 + $0x760] sm:$0xff] }
 0x137   : > { %5174 = vmatpush.bf16.msra.mxu0 %v8412_v34  ;;  %v9374_v22 = vpop.f32.mrf.mxu2  ;;  %v8468_v34 = vld [vmem:[%s9062_s26 + $0x7e0] sm:$0xff] }
 0x138   : > { %5188 = vmatpush.bf16.msra.mxu1 %v8420_v35  ;;  %v9378_v25 = vpop.f32.mrf.mxu3 }
 0x139   : > { %5202 = vmatpush.bf16.msra.mxu2 %v8428_v36  ;;  %v8443_v36 = vld [vmem:[%s9062_s26 + $0x718] sm:$0xff] }
 0x13a   : > { %5216 = vmatpush.bf16.msra.mxu3 %v8436_v37  ;;  %v8451_v37 = vld [vmem:[%s9062_s26 + $0x758] sm:$0xff] }
 0x13b   : > { %5175 = vmatpush.bf16.msra.mxu0 %v8411_v40 }
 0x13c   : > { %5189 = vmatpush.bf16.msra.mxu1 %v8419_v41 }
 0x13d   : > { %5203 = vmatpush.bf16.msra.mxu2 %v8427_v42 }
 0x13e   : > { %5217 = vmatpush.bf16.msra.mxu3 %v8435_v43 }
 0x13f   : > { %5176 = vmatpush.bf16.msra.mxu0 %v8410_v48  ;;  %v8441_v48 = vld [vmem:[%s9062_s26 + $0x708] sm:$0xff] }
 0x140   : > { %5190 = vmatpush.bf16.msra.mxu1 %v8418_v49  ;;  %v8449_v49 = vld [vmem:[%s9062_s26 + $0x748] sm:$0xff] }
 0x141   : > { %5204 = vmatpush.bf16.msra.mxu2 %v8426_v50  ;;  %v8457_v50 = vld [vmem:[%s9062_s26 + $0x788] sm:$0xff] }
 0x142   : > { %5218 = vmatpush.bf16.msra.mxu3 %v8434_v51  ;;  %v8465_v51 = vld [vmem:[%s9062_s26 + $0x7c8] sm:$0xff] }
 0x143   : > { %5177 = vmatpush.bf16.msra.mxu0 %v8409_v52  ;;  %v8440_v52 = vld [vmem:[%s9062_s26 + $0x700] sm:$0xff] }
 0x144   : > { %5191 = vmatpush.bf16.msra.mxu1 %v8417_v53  ;;  %v8448_v53 = vld [vmem:[%s9062_s26 + $0x740] sm:$0xff] }
 0x145   : > { %5205 = vmatpush.bf16.msra.mxu2 %v8425_v54  ;;  %v8456_v54 = vld [vmem:[%s9062_s26 + $0x780] sm:$0xff] }
 0x146   : > { %5219 = vmatpush.bf16.msra.mxu3 %v8433_v55  ;;  %v8464_v55 = vld [vmem:[%s9062_s26 + $0x7c0] sm:$0xff] }
 0x147   : > { %5178 = vmatpush.bf16.msra.mxu0 %v8408_v56  ;;  %v4956_v27 = vpop.f32.mrf.mxu0  ;;  %v8479_v56 = vld [vmem:[%s9062_s26 + $0x838] sm:$0xff] }
 0x148   : > { %5192 = vmatpush.bf16.msra.mxu1 %v8416_v57  ;;  %v4957_v28 = vadd.f32 %v4956_v27, %v9338_v47  ;;  %v4970_v32 = vpop.f32.mrf.mxu1  ;;  %v8466_v47 = vld [vmem:[%s9062_s26 + $0x7d0] sm:$0xff]  ;;  %v8487_v57 = vld [vmem:[%s9062_s26 + $0x878] sm:$0xff] }
 0x149   : > { %5206 = vmatpush.bf16.msra.mxu2 %v8424_v58  ;;  %v5957_v58 = vld [vmem:[%s9064_s9 + $0x70] sm:$0xf] }
 0x14a   : > { %5220 = vmatpush.bf16.msra.mxu3 %v8432_v59  ;;  %5179 = vmatmul.bf16.vlgmr.msra.gmra.mxu0 %v5942_v8  ;;  %v4971_v35 = vadd.f32 %v4970_v32, %v4957_v28  ;;  %v8198_v59 = vld [vmem:[%s9064_s9 + $0x16c] sm:$0xf0]  ;;  %v5970_v8 = vor.u32 %v8167_v0, %v5967_v1  ;;  %v5975_v0 = vld [vmem:[%s9064_s9 + $0x180] sm:$0xf0]  ;;  %v8169_v1 = vld [vmem:[%s9064_s9 + $0x8c] sm:$0xf] }
 0x14b   : > { %5227 = vmatpush.bf16.msrb.mxu0 %v8447_v60  ;;  %5193 = vmatmul.bf16.vlgmr.msra.gmra.mxu1 %v5946_v11  ;;  %v5965_v60 = vld [vmem:[%s9064_s9 + $0x78] sm:$0xf]  ;;  %v5958_v4 = vor.u32 %v8198_v59, %v5957_v58  ;;  %v5973_v58 = vld [vmem:[%s9064_s9 + $0x80] sm:$0xf] }
 0x14c   : > { %5241 = vmatpush.bf16.msrb.mxu1 %v8455_v61  ;;  %5207 = vmatmul.bf16.vlgmr.msra.gmra.mxu2 %v5950_v9  ;;  %v8199_v61 = vld [vmem:[%s9064_s9 + $0x174] sm:$0xf0]  ;;  %v4861_v9 = vadd.f32 %v9315_v21, %v9313_v16  ;;  %v8200_v59 = vld [vmem:[%s9064_s9 + $0x17c] sm:$0xf0] }
 0x14d   : > { %5255 = vmatpush.bf16.msrb.mxu2 %v8463_v6  ;;  %5221 = vmatmul.bf16.vlgmr.msra.gmra.mxu3 %v5954_v12  ;;  %v5966_v5 = vor.u32 %v8199_v61, %v5965_v60  ;;  %v8478_v12 = vld [vmem:[%s9062_s26 + $0x830] sm:$0xff]  ;;  %v8477_v21 = vld [vmem:[%s9062_s26 + $0x828] sm:$0xff]  ;;  %v5981_v60 = vld [vmem:[%s9064_s9 + $0x88] sm:$0xf] }
 0x14e   : > { %5269 = vmatpush.bf16.msrb.mxu3 %v8471_v7  ;;  %v5962_v7 = vor.u32 %v8166_v62, %v5959_v63  ;;  %v4875_v16 = vadd.f32 %v9321_v26, %v4861_v9  ;;  %v8201_v61 = vld [vmem:[%s9064_s9 + $0x184] sm:$0xf0]  ;;  %v8168_v62 = vld [vmem:[%s9064_s9 + $0x84] sm:$0xf] }
 0x14f   : > { %5228 = vmatpush.bf16.msrb.mxu0 %v8446_v14  ;;  %v4984_v40 = vpop.f32.mrf.mxu2  ;;  %v9415_v6 = vpop.f32.mrf.mxu0  ;;  %v8486_v14 = vld [vmem:[%s9062_s26 + $0x870] sm:$0xff]  ;;  %v5978_v9 = vor.u32 %v8168_v62, %v5975_v0  ;;  %v8551_v0 = vld [vmem:[%s9062_s26 + $0xa78] sm:$0xff] }
 0x150   : > { %5242 = vmatpush.bf16.msrb.mxu1 %v8454_v15  ;;  %v4985_v41 = vadd.f32 %v4984_v40, %v4971_v35  ;;  %v4998_v42 = vpop.f32.mrf.mxu3  ;;  %v9419_v11 = vpop.f32.mrf.mxu1  ;;  %v8494_v15 = vld [vmem:[%s9062_s26 + $0x8b0] sm:$0xff]  ;;  %v4889_v26 = vadd.f32 %v9327_v31, %v4875_v16  ;;  %v8475_v31 = vld [vmem:[%s9062_s26 + $0x818] sm:$0xff] }
 0x151   : > { %5256 = vmatpush.bf16.msrb.mxu2 %v8462_v17  ;;  %v8502_v17 = vld [vmem:[%s9062_s26 + $0x8f0] sm:$0xff] }
 0x152   : > { %5270 = vmatpush.bf16.msrb.mxu3 %v8470_v18  ;;  %v9389_v43 = vadd.f32 %v4998_v42, %v4985_v41  ;;  %v8485_v18 = vld [vmem:[%s9062_s26 + $0x868] sm:$0xff]  ;;  %v4903_v35 = vadd.f32 %v9364_v10, %v4889_v26  ;;  %v8534_v16 = vld [vmem:[%s9062_s26 + $0x9f0] sm:$0xff] }
 0x153   : > { %5229 = vmatpush.bf16.msrb.mxu0 %v8445_v19  ;;  %v8533_v26 = vld [vmem:[%s9062_s26 + $0x9e8] sm:$0xff] }
 0x154   : > { %5243 = vmatpush.bf16.msrb.mxu1 %v8453_v20  ;;  %v8493_v20 = vld [vmem:[%s9062_s26 + $0x8a8] sm:$0xff]  ;;  %v4917_v41 = vadd.f32 %v9366_v13, %v4903_v35  ;;  %v8490_v13 = vld [vmem:[%s9062_s26 + $0x890] sm:$0xff]  ;;  %v8524_v35 = vld [vmem:[%s9062_s26 + $0x9a0] sm:$0xff] }
 0x155   : > { %5257 = vmatpush.bf16.msrb.mxu2 %v8461_v23  ;;  %v8501_v23 = vld [vmem:[%s9062_s26 + $0x8e8] sm:$0xff] }
 0x156   : > { %5271 = vmatpush.bf16.msrb.mxu3 %v8469_v24 }
 0x157   : > { %5230 = vmatpush.bf16.msrb.mxu0 %v8444_v29  ;;  %v9428_v19 = vpop.f32.mrf.mxu2  ;;  %v8476_v29 = vld [vmem:[%s9062_s26 + $0x820] sm:$0xff] }
 0x158   : > { %5244 = vmatpush.bf16.msrb.mxu1 %v8452_v30  ;;  %v9432_v24 = vpop.f32.mrf.mxu3  ;;  %v8484_v30 = vld [vmem:[%s9062_s26 + $0x860] sm:$0xff] }
 0x159   : > { %5258 = vmatpush.bf16.msrb.mxu2 %v8460_v33  ;;  %v8492_v33 = vld [vmem:[%s9062_s26 + $0x8a0] sm:$0xff] }
 0x15a   : > { %5272 = vmatpush.bf16.msrb.mxu3 %v8468_v34  ;;  %v8500_v34 = vld [vmem:[%s9062_s26 + $0x8e0] sm:$0xff] }
 0x15b   : > { %5231 = vmatpush.bf16.msrb.mxu0 %v8443_v36 }
 0x15c   : > { %5245 = vmatpush.bf16.msrb.mxu1 %v8451_v37  ;;  %v8483_v37 = vld [vmem:[%s9062_s26 + $0x858] sm:$0xff] }
 0x15d   : > { %5259 = vmatpush.bf16.msrb.mxu2 %v8459_v38  ;;  %v8491_v38 = vld [vmem:[%s9062_s26 + $0x898] sm:$0xff] }
 0x15e   : > { %5273 = vmatpush.bf16.msrb.mxu3 %v8467_v39  ;;  %v8499_v39 = vld [vmem:[%s9062_s26 + $0x8d8] sm:$0xff] }
 0x15f   : > { %5232 = vmatpush.bf16.msrb.mxu0 %v8442_v44 }
 0x160   : > { %5246 = vmatpush.bf16.msrb.mxu1 %v8450_v45  ;;  %v8474_v45 = vld [vmem:[%s9062_s26 + $0x810] sm:$0xff] }
 0x161   : > { %5260 = vmatpush.bf16.msrb.mxu2 %v8458_v46  ;;  %v8482_v46 = vld [vmem:[%s9062_s26 + $0x850] sm:$0xff] }
 0x162   : > { %5274 = vmatpush.bf16.msrb.mxu3 %v8466_v47  ;;  %v8498_v47 = vld [vmem:[%s9062_s26 + $0x8d0] sm:$0xff] }
 0x163   : > { %5233 = vmatpush.bf16.msrb.mxu0 %v8441_v48 }
 0x164   : > { %5247 = vmatpush.bf16.msrb.mxu1 %v8449_v49  ;;  %v8481_v49 = vld [vmem:[%s9062_s26 + $0x848] sm:$0xff] }
 0x165   : > { %5261 = vmatpush.bf16.msrb.mxu2 %v8457_v50  ;;  %v8489_v50 = vld [vmem:[%s9062_s26 + $0x888] sm:$0xff] }
 0x166   : > { %5275 = vmatpush.bf16.msrb.mxu3 %v8465_v51  ;;  %v8497_v51 = vld [vmem:[%s9062_s26 + $0x8c8] sm:$0xff] }
 0x167   : > { %5234 = vmatpush.bf16.msrb.mxu0 %v8440_v52  ;;  %v5012_v27 = vpop.f32.mrf.mxu0 }
 0x168   : > { %5248 = vmatpush.bf16.msrb.mxu1 %v8448_v53  ;;  %v5013_v28 = vadd.f32 %v5012_v27, %v9389_v43  ;;  %v5026_v32 = vpop.f32.mrf.mxu1  ;;  %v4931_v43 = vadd.f32 %v9374_v22, %v4917_v41  ;;  %v8473_v22 = vld [vmem:[%s9062_s26 + $0x808] sm:$0xff]  ;;  %v8472_v53 = vld [vmem:[%s9062_s26 + $0x800] sm:$0xff]  ;;  %v8531_v41 = vld [vmem:[%s9062_s26 + $0x9d8] sm:$0xff] }
 0x169   : > { %5262 = vmatpush.bf16.msrb.mxu2 %v8456_v54  ;;  %v8488_v54 = vld [vmem:[%s9062_s26 + $0x880] sm:$0xff]  ;;  %v8525_v27 = vld [vmem:[%s9062_s26 + $0x9a8] sm:$0xff] }
 0x16a   : > { %5276 = vmatpush.bf16.msrb.mxu3 %v8464_v55  ;;  %5235 = vmatmul.bf16.vlgmr.msrb.gmra.mxu0 %v5958_v4  ;;  %v5027_v36 = vadd.f32 %v5026_v32, %v5013_v28  ;;  %v4945_v48 = vadd.f32 %v9378_v25, %v4931_v43  ;;  %v8480_v25 = vld [vmem:[%s9062_s26 + $0x840] sm:$0xff]  ;;  %v8535_v4 = vld [vmem:[%s9062_s26 + $0x9f8] sm:$0xff] }
 0x16b   : > { %5283 = vmatpush.bf16.msra.mxu0 %v8479_v56  ;;  %5249 = vmatmul.bf16.vlgmr.msrb.gmra.mxu1 %v5962_v7  ;;  %v8496_v55 = vld [vmem:[%s9062_s26 + $0x8c0] sm:$0xff]  ;;  %v8511_v56 = vld [vmem:[%s9062_s26 + $0x938] sm:$0xff]  ;;  %v5982_v7 = vor.u32 %v8201_v61, %v5981_v60 }
 0x16c   : > { %5297 = vmatpush.bf16.msra.mxu1 %v8487_v57  ;;  %5263 = vmatmul.bf16.vlgmr.msrb.gmra.mxu2 %v5966_v5  ;;  %v4959_v52 = vadd.f32 %v9415_v6, %v4945_v48  ;;  %v8519_v57 = vld [vmem:[%s9062_s26 + $0x978] sm:$0xff]  ;;  %v5974_v6 = vor.u32 %v8200_v59, %v5973_v58  ;;  %v8508_v32 = vld [vmem:[%s9062_s26 + $0x920] sm:$0xff]  ;;  %v8514_v48 = vld [vmem:[%s9062_s26 + $0x950] sm:$0xff] }
 0x16d   : > { %5311 = vmatpush.bf16.msra.mxu2 %v8495_v2  ;;  %5277 = vmatmul.bf16.vlgmr.msrb.gmra.mxu3 %v5970_v8  ;;  %v5983_v2 = vld [vmem:[%s9064_s9 + $0x188] sm:$0xf0]  ;;  %v8504_v58 = vld [vmem:[%s9062_s26 + $0x900] sm:$0xff] }
 0x16e   : > { %5325 = vmatpush.bf16.msra.mxu3 %v8503_v3  ;;  %v4973_v63 = vadd.f32 %v9419_v11, %v4959_v52  ;;  %v8527_v3 = vld [vmem:[%s9062_s26 + $0x9b8] sm:$0xff]  ;;  %v5986_v11 = vor.u32 %v8169_v1, %v5983_v2  ;;  %v8505_v52 = vld [vmem:[%s9062_s26 + $0x908] sm:$0xff]  ;;  %v8512_v59 = vld [vmem:[%s9062_s26 + $0x940] sm:$0xff] }
 0x16f   : > { %5284 = vmatpush.bf16.msra.mxu0 %v8478_v12  ;;  %v5040_v40 = vpop.f32.mrf.mxu2  ;;  %v5014_v8 = vpop.f32.mrf.mxu0  ;;  %v8520_v60 = vld [vmem:[%s9062_s26 + $0x980] sm:$0xff] }
 0x170   : > { %5298 = vmatpush.bf16.msra.mxu1 %v8486_v14  ;;  %v5041_v42 = vadd.f32 %v5040_v40, %v5027_v36  ;;  %v5054_v10 = vpop.f32.mrf.mxu3  ;;  %v4987_v5 = vadd.f32 %v9428_v19, %v4973_v63  ;;  %v5028_v12 = vpop.f32.mrf.mxu1  ;;  %v8510_v14 = vld [vmem:[%s9062_s26 + $0x930] sm:$0xff]  ;;  %v8509_v19 = vld [vmem:[%s9062_s26 + $0x928] sm:$0xff]  ;;  %v8532_v36 = vld [vmem:[%s9062_s26 + $0x9e0] sm:$0xff] }
 0x171   : > { %5312 = vmatpush.bf16.msra.mxu2 %v8494_v15  ;;  %v8518_v15 = vld [vmem:[%s9062_s26 + $0x970] sm:$0xff]  ;;  %v8523_v40 = vld [vmem:[%s9062_s26 + $0x998] sm:$0xff]  ;;  %v8528_v61 = vld [vmem:[%s9062_s26 + $0x9c0] sm:$0xff] }
 0x172   : > { %5326 = vmatpush.bf16.msra.mxu3 %v8502_v17  ;;  %v9447_v44 = vadd.f32 %v5054_v10, %v5041_v42  ;;  %v8526_v17 = vld [vmem:[%s9062_s26 + $0x9b0] sm:$0xff]  ;;  %v8543_v63 = vld [vmem:[%s9062_s26 + $0xa38] sm:$0xff]  ;;  %v5989_v1 = vld [vmem:[%s9064_s9 + $0x90] sm:$0xf] }
 0x173   : > { %5285 = vmatpush.bf16.msra.mxu0 %v8477_v21  ;;  %v5001_v21 = vadd.f32 %v9432_v24, %v4987_v5  ;;  %v8202_v2 = vld [vmem:[%s9064_s9 + $0x18c] sm:$0xf0]  ;;  %v8170_v5 = vld [vmem:[%s9064_s9 + $0x94] sm:$0xf] }
 0x174   : > { %5299 = vmatpush.bf16.msra.mxu1 %v8485_v18 }
 0x175   : > { %5313 = vmatpush.bf16.msra.mxu2 %v8493_v20  ;;  %v5015_v18 = vadd.f32 %v5014_v8, %v5001_v21  ;;  %v8517_v20 = vld [vmem:[%s9062_s26 + $0x968] sm:$0xff]  ;;  %v8550_v21 = vld [vmem:[%s9062_s26 + $0xa70] sm:$0xff] }
 0x176   : > { %5327 = vmatpush.bf16.msra.mxu3 %v8501_v23  ;;  %v5999_v8 = vld [vmem:[%s9064_s9 + $0x198] sm:$0xf0] }
 0x177   : > { %5286 = vmatpush.bf16.msra.mxu0 %v8476_v29  ;;  %v5042_v23 = vpop.f32.mrf.mxu2  ;;  %v5029_v29 = vadd.f32 %v5028_v12, %v5015_v18  ;;  %v5990_v12 = vor.u32 %v8202_v2, %v5989_v1  ;;  %v8558_v18 = vld [vmem:[%s9062_s26 + $0xab0] sm:$0xff] }
 0x178   : > { %5300 = vmatpush.bf16.msra.mxu1 %v8484_v30  ;;  %v5056_v28 = vpop.f32.mrf.mxu3  ;;  %v8172_v1 = vld [vmem:[%s9064_s9 + $0xa4] sm:$0xf] }
 0x179   : > { %5314 = vmatpush.bf16.msra.mxu2 %v8492_v33  ;;  %v8516_v33 = vld [vmem:[%s9062_s26 + $0x960] sm:$0xff]  ;;  %v6007_v2 = vld [vmem:[%s9064_s9 + $0x1a0] sm:$0xf0] }
 0x17a   : > { %5328 = vmatpush.bf16.msra.mxu3 %v8500_v34 }
 0x17b   : > { %5287 = vmatpush.bf16.msra.mxu0 %v8475_v31  ;;  %v5043_v31 = vadd.f32 %v5042_v23, %v5029_v29  ;;  %v8549_v23 = vld [vmem:[%s9062_s26 + $0xa68] sm:$0xff]  ;;  %v8540_v29 = vld [vmem:[%s9062_s26 + $0xa20] sm:$0xff] }
 0x17c   : > { %5301 = vmatpush.bf16.msra.mxu1 %v8483_v37 }
 0x17d   : > { %5315 = vmatpush.bf16.msra.mxu2 %v8491_v38  ;;  %v8507_v38 = vld [vmem:[%s9062_s26 + $0x918] sm:$0xff]  ;;  %v5057_v10 = vadd.f32 %v5056_v28, %v5043_v31 }
 0x17e   : > { %5329 = vmatpush.bf16.msra.mxu3 %v8499_v39  ;;  %v8515_v39 = vld [vmem:[%s9062_s26 + $0x958] sm:$0xff] }
 0x17f   : > { %5288 = vmatpush.bf16.msra.mxu0 %v8474_v45  ;;  %v8547_v31 = vld [vmem:[%s9062_s26 + $0xa58] sm:$0xff] }
 0x180   : > { %5302 = vmatpush.bf16.msra.mxu1 %v8482_v46 }
 0x181   : > { %5316 = vmatpush.bf16.msra.mxu2 %v8490_v13 }
 0x182   : > { %5330 = vmatpush.bf16.msra.mxu3 %v8498_v47  ;;  %v8506_v47 = vld [vmem:[%s9062_s26 + $0x910] sm:$0xff] }
 0x183   : > { %5289 = vmatpush.bf16.msra.mxu0 %v8473_v22 }
 0x184   : > { %5303 = vmatpush.bf16.msra.mxu1 %v8481_v49  ;;  %v8522_v49 = vld [vmem:[%s9062_s26 + $0x990] sm:$0xff] }
 0x185   : > { %5317 = vmatpush.bf16.msra.mxu2 %v8489_v50  ;;  %v8530_v50 = vld [vmem:[%s9062_s26 + $0x9d0] sm:$0xff] }
 0x186   : > { %5331 = vmatpush.bf16.msra.mxu3 %v8497_v51 }
 0x187   : > { %5290 = vmatpush.bf16.msra.mxu0 %v8472_v53  ;;  %v5068_v24 = vpop.f32.mrf.mxu0  ;;  %v8513_v53 = vld [vmem:[%s9062_s26 + $0x948] sm:$0xff] }
 0x188   : > { %5304 = vmatpush.bf16.msra.mxu1 %v8480_v25  ;;  %v5069_v30 = vadd.f32 %v5068_v24, %v9447_v44  ;;  %v5082_v34 = vpop.f32.mrf.mxu1  ;;  %v8521_v25 = vld [vmem:[%s9062_s26 + $0x988] sm:$0xff] }
 0x189   : > { %5318 = vmatpush.bf16.msra.mxu2 %v8488_v54  ;;  %v8529_v54 = vld [vmem:[%s9062_s26 + $0x9c8] sm:$0xff] }
 0x18a   : > { %5332 = vmatpush.bf16.msra.mxu3 %v8496_v55  ;;  %5291 = vmatmul.bf16.vlgmr.msra.gmra.mxu0 %v5974_v6  ;;  %v5083_v37 = vadd.f32 %v5082_v34, %v5069_v30  ;;  %v5991_v6 = vld [vmem:[%s9064_s9 + $0x190] sm:$0xf0] }
 0x18b   : > { %5339 = vmatpush.bf16.msrb.mxu0 %v8511_v56  ;;  %5305 = vmatmul.bf16.vlgmr.msra.gmra.mxu1 %v5978_v9  ;;  %v8559_v9 = vld [vmem:[%s9062_s26 + $0xab8] sm:$0xff]  ;;  %v8548_v30 = vld [vmem:[%s9062_s26 + $0xa60] sm:$0xff] }
 0x18c   : > { %5353 = vmatpush.bf16.msrb.mxu1 %v8519_v57  ;;  %5319 = vmatmul.bf16.vlgmr.msra.gmra.mxu2 %v5982_v7  ;;  %v8171_v7 = vld [vmem:[%s9064_s9 + $0x9c] sm:$0xf]  ;;  %v8564_v34 = vld [vmem:[%s9062_s26 + $0xae0] sm:$0xff] }
 0x18d   : > { %5367 = vmatpush.bf16.msrb.mxu2 %v8527_v3  ;;  %5333 = vmatmul.bf16.vlgmr.msra.gmra.mxu3 %v5986_v11  ;;  %v5997_v3 = vld [vmem:[%s9064_s9 + $0x98] sm:$0xf]  ;;  %v8567_v11 = vld [vmem:[%s9062_s26 + $0xaf8] sm:$0xff] }
 0x18e   : > { %5381 = vmatpush.bf16.msrb.mxu3 %v8535_v4  ;;  %v8203_v4 = vld [vmem:[%s9064_s9 + $0x194] sm:$0xf0] }
 0x18f   : > { %5340 = vmatpush.bf16.msrb.mxu0 %v8510_v14  ;;  %v5096_v42 = vpop.f32.mrf.mxu2  ;;  %v5070_v45 = vpop.f32.mrf.mxu0  ;;  %v5998_v14 = vor.u32 %v8203_v4, %v5997_v3  ;;  %v8173_v3 = vld [vmem:[%s9064_s9 + $0xac] sm:$0xf] }
 0x190   : > { %5354 = vmatpush.bf16.msrb.mxu1 %v8518_v15  ;;  %v5097_v43 = vadd.f32 %v5096_v42, %v5083_v37  ;;  %v5110_v44 = vpop.f32.mrf.mxu3  ;;  %v5071_v46 = vadd.f32 %v5070_v45, %v5057_v10  ;;  %v5084_v22 = vpop.f32.mrf.mxu1  ;;  %v5994_v15 = vor.u32 %v8170_v5, %v5991_v6  ;;  %v8555_v37 = vld [vmem:[%s9062_s26 + $0xa98] sm:$0xff]  ;;  %v8546_v45 = vld [vmem:[%s9062_s26 + $0xa50] sm:$0xff] }
 0x191   : > { %5368 = vmatpush.bf16.msrb.mxu2 %v8526_v17  ;;  %v6002_v17 = vor.u32 %v8171_v7, %v5999_v8  ;;  %v6015_v4 = vld [vmem:[%s9064_s9 + $0x1a8] sm:$0xf0] }
 0x192   : > { %5382 = vmatpush.bf16.msrb.mxu3 %v8534_v16  ;;  %v9495_v13 = vadd.f32 %v5110_v44, %v5097_v43  ;;  %v5085_v51 = vadd.f32 %v5084_v22, %v5071_v46  ;;  %v8542_v16 = vld [vmem:[%s9062_s26 + $0xa30] sm:$0xff]  ;;  %v8537_v22 = vld [vmem:[%s9062_s26 + $0xa08] sm:$0xff]  ;;  %v8591_v5 = vld [vmem:[%s9062_s26 + $0xbb8] sm:$0xff] }
 0x193   : > { %5341 = vmatpush.bf16.msrb.mxu0 %v8509_v19  ;;  %v8566_v19 = vld [vmem:[%s9062_s26 + $0xaf0] sm:$0xff]  ;;  %v8599_v6 = vld [vmem:[%s9062_s26 + $0xbf8] sm:$0xff] }
 0x194   : > { %5355 = vmatpush.bf16.msrb.mxu1 %v8517_v20  ;;  %v8541_v20 = vld [vmem:[%s9062_s26 + $0xa28] sm:$0xff]  ;;  %v8538_v44 = vld [vmem:[%s9062_s26 + $0xa10] sm:$0xff] }
 0x195   : > { %5369 = vmatpush.bf16.msrb.mxu2 %v8525_v27  ;;  %v8557_v27 = vld [vmem:[%s9062_s26 + $0xaa8] sm:$0xff] }
 0x196   : > { %5383 = vmatpush.bf16.msrb.mxu3 %v8533_v26  ;;  %v8565_v26 = vld [vmem:[%s9062_s26 + $0xae8] sm:$0xff] }
 0x197   : > { %5342 = vmatpush.bf16.msrb.mxu0 %v8508_v32  ;;  %v5098_v55 = vpop.f32.mrf.mxu2 }
 0x198   : > { %5356 = vmatpush.bf16.msrb.mxu1 %v8516_v33  ;;  %v5099_v56 = vadd.f32 %v5098_v55, %v5085_v51  ;;  %v5112_v57 = vpop.f32.mrf.mxu3  ;;  %v8556_v33 = vld [vmem:[%s9062_s26 + $0xaa0] sm:$0xff]  ;;  %v8561_v51 = vld [vmem:[%s9062_s26 + $0xac8] sm:$0xff] }
 0x199   : > { %5370 = vmatpush.bf16.msrb.mxu2 %v8524_v35  ;;  %v8544_v55 = vld [vmem:[%s9062_s26 + $0xa40] sm:$0xff] }
 0x19a   : > { %5384 = vmatpush.bf16.msrb.mxu3 %v8532_v36  ;;  %v9509_v62 = vadd.f32 %v5112_v57, %v5099_v56  ;;  %v8539_v36 = vld [vmem:[%s9062_s26 + $0xa18] sm:$0xff]  ;;  %v8552_v56 = vld [vmem:[%s9062_s26 + $0xa80] sm:$0xff] }
 0x19b   : > { %5343 = vmatpush.bf16.msrb.mxu0 %v8507_v38  ;;  %v8563_v38 = vld [vmem:[%s9062_s26 + $0xad8] sm:$0xff]  ;;  %v8560_v57 = vld [vmem:[%s9062_s26 + $0xac0] sm:$0xff] }
 0x19c   : > { %5357 = vmatpush.bf16.msrb.mxu1 %v8515_v39 }
 0x19d   : > { %5371 = vmatpush.bf16.msrb.mxu2 %v8523_v40 }
 0x19e   : > { %5385 = vmatpush.bf16.msrb.mxu3 %v8531_v41 }
 0x19f   : > { %5344 = vmatpush.bf16.msrb.mxu0 %v8506_v47  ;;  %v8562_v47 = vld [vmem:[%s9062_s26 + $0xad0] sm:$0xff] }
 0x1a0   : > { %5358 = vmatpush.bf16.msrb.mxu1 %v8514_v48 }
 0x1a1   : > { %5372 = vmatpush.bf16.msrb.mxu2 %v8522_v49  ;;  %v8545_v49 = vld [vmem:[%s9062_s26 + $0xa48] sm:$0xff] }
 0x1a2   : > { %5386 = vmatpush.bf16.msrb.mxu3 %v8530_v50  ;;  %v8553_v50 = vld [vmem:[%s9062_s26 + $0xa88] sm:$0xff] }
 0x1a3   : > { %5345 = vmatpush.bf16.msrb.mxu0 %v8505_v52 }
 0x1a4   : > { %5359 = vmatpush.bf16.msrb.mxu1 %v8513_v53 }
 0x1a5   : > { %5373 = vmatpush.bf16.msrb.mxu2 %v8521_v25 }
 0x1a6   : > { %5387 = vmatpush.bf16.msrb.mxu3 %v8529_v54  ;;  %v8536_v54 = vld [vmem:[%s9062_s26 + $0xa00] sm:$0xff] }
 0x1a7   : > { %5346 = vmatpush.bf16.msrb.mxu0 %v8504_v58  ;;  %v5124_v28 = vpop.f32.mrf.mxu0 }
 0x1a8   : > { %5360 = vmatpush.bf16.msrb.mxu1 %v8512_v59  ;;  %v5125_v24 = vadd.f32 %v5124_v28, %v9495_v13  ;;  %v5138_v32 = vpop.f32.mrf.mxu1  ;;  %v8554_v13 = vld [vmem:[%s9062_s26 + $0xa90] sm:$0xff]  ;;  %v8575_v59 = vld [vmem:[%s9062_s26 + $0xb38] sm:$0xff] }
 0x1a9   : > { %5374 = vmatpush.bf16.msrb.mxu2 %v8520_v60  ;;  %v8583_v60 = vld [vmem:[%s9062_s26 + $0xb78] sm:$0xff] }
 0x1aa   : > { %5388 = vmatpush.bf16.msrb.mxu3 %v8528_v61  ;;  %5347 = vmatmul.bf16.vlgmr.msrb.gmra.mxu0 %v5990_v12  ;;  %v5139_v35 = vadd.f32 %v5138_v32, %v5125_v24  ;;  %v6005_v61 = vld [vmem:[%s9064_s9 + $0xa0] sm:$0xf]  ;;  %v8588_v24 = vld [vmem:[%s9062_s26 + $0xba0] sm:$0xff]  ;;  %v8571_v32 = vld [vmem:[%s9062_s26 + $0xb18] sm:$0xff] }
 0x1ab   : > { %5395 = vmatpush.bf16.msra.mxu0 %v8543_v63  ;;  %5361 = vmatmul.bf16.vlgmr.msrb.gmra.mxu1 %v5994_v15  ;;  %v6013_v63 = vld [vmem:[%s9064_s9 + $0xa8] sm:$0xf]  ;;  %v8574_v12 = vld [vmem:[%s9062_s26 + $0xb30] sm:$0xff] }
 0x1ac   : > { %5409 = vmatpush.bf16.msra.mxu1 %v8551_v0  ;;  %5375 = vmatmul.bf16.vlgmr.msrb.gmra.mxu2 %v5998_v14  ;;  %v8205_v0 = vld [vmem:[%s9064_s9 + $0x1a4] sm:$0xf0]  ;;  %v8582_v14 = vld [vmem:[%s9062_s26 + $0xb70] sm:$0xff] }
 0x1ad   : > { %5423 = vmatpush.bf16.msra.mxu2 %v8559_v9  ;;  %5389 = vmatmul.bf16.vlgmr.msrb.gmra.mxu3 %v6002_v17  ;;  %v6014_v8 = vor.u32 %v8205_v0, %v6013_v63  ;;  %v6010_v9 = vor.u32 %v8172_v1, %v6007_v2  ;;  %v8590_v15 = vld [vmem:[%s9062_s26 + $0xbb0] sm:$0xff]  ;;  %v8175_v63 = vld [vmem:[%s9064_s9 + $0xbc] sm:$0xf]  ;;  %v8623_v1 = vld [vmem:[%s9062_s26 + $0xcb8] sm:$0xff] }
 0x1ae   : > { %5437 = vmatpush.bf16.msra.mxu3 %v8567_v11  ;;  %v6018_v11 = vor.u32 %v8173_v3, %v6015_v4  ;;  %v8598_v17 = vld [vmem:[%s9062_s26 + $0xbf0] sm:$0xff]  ;;  %v6031_v0 = vld [vmem:[%s9064_s9 + $0x1b8] sm:$0xf0]  ;;  %v8631_v2 = vld [vmem:[%s9062_s26 + $0xcf8] sm:$0xff] }
 0x1af   : > { %5396 = vmatpush.bf16.msra.mxu0 %v8542_v16  ;;  %v5152_v39 = vpop.f32.mrf.mxu2  ;;  %v5126_v42 = vpop.f32.mrf.mxu0  ;;  %v8573_v16 = vld [vmem:[%s9062_s26 + $0xb28] sm:$0xff] }
 0x1b0   : > { %5410 = vmatpush.bf16.msra.mxu1 %v8550_v21  ;;  %v5153_v40 = vadd.f32 %v5152_v39, %v5139_v35  ;;  %v5166_v41 = vpop.f32.mrf.mxu3  ;;  %v5127_v10 = vadd.f32 %v5126_v42, %v9509_v62  ;;  %v5140_v46 = vpop.f32.mrf.mxu1  ;;  %v8204_v62 = vld [vmem:[%s9064_s9 + $0x19c] sm:$0xf0]  ;;  %v8581_v21 = vld [vmem:[%s9062_s26 + $0xb68] sm:$0xff]  ;;  %v8595_v35 = vld [vmem:[%s9062_s26 + $0xbd8] sm:$0xff] }
 0x1b1   : > { %5424 = vmatpush.bf16.msra.mxu2 %v8558_v18  ;;  %v6006_v7 = vor.u32 %v8204_v62, %v6005_v61  ;;  %v8589_v18 = vld [vmem:[%s9062_s26 + $0xba8] sm:$0xff]  ;;  %v8578_v42 = vld [vmem:[%s9062_s26 + $0xb50] sm:$0xff]  ;;  %v8174_v61 = vld [vmem:[%s9064_s9 + $0xb4] sm:$0xf] }
 0x1b2   : > { %5438 = vmatpush.bf16.msra.mxu3 %v8566_v19  ;;  %v9541_v43 = vadd.f32 %v5166_v41, %v5153_v40  ;;  %v5141_v48 = vadd.f32 %v5140_v46, %v5127_v10  ;;  %v8597_v19 = vld [vmem:[%s9062_s26 + $0xbe8] sm:$0xff]  ;;  %v8570_v41 = vld [vmem:[%s9062_s26 + $0xb10] sm:$0xff]  ;;  %v6023_v62 = vld [vmem:[%s9064_s9 + $0x1b0] sm:$0xf0] }
 0x1b3   : > { %5397 = vmatpush.bf16.msra.mxu0 %v8541_v20  ;;  %v8569_v46 = vld [vmem:[%s9062_s26 + $0xb08] sm:$0xff] }
 0x1b4   : > { %5411 = vmatpush.bf16.msra.mxu1 %v8549_v23 }
 0x1b5   : > { %5425 = vmatpush.bf16.msra.mxu2 %v8557_v27  ;;  %v8572_v27 = vld [vmem:[%s9062_s26 + $0xb20] sm:$0xff] }
 0x1b6   : > { %5439 = vmatpush.bf16.msra.mxu3 %v8565_v26  ;;  %v8580_v26 = vld [vmem:[%s9062_s26 + $0xb60] sm:$0xff] }
 0x1b7   : > { %5398 = vmatpush.bf16.msra.mxu0 %v8540_v29  ;;  %v5154_v52 = vpop.f32.mrf.mxu2  ;;  %v8596_v29 = vld [vmem:[%s9062_s26 + $0xbe0] sm:$0xff] }
 0x1b8   : > { %5412 = vmatpush.bf16.msra.mxu1 %v8548_v30  ;;  %v5155_v53 = vadd.f32 %v5154_v52, %v5141_v48  ;;  %v5168_v25 = vpop.f32.mrf.mxu3  ;;  %v8593_v48 = vld [vmem:[%s9062_s26 + $0xbc8] sm:$0xff]  ;;  %v8576_v52 = vld [vmem:[%s9062_s26 + $0xb40] sm:$0xff] }
 0x1b9   : > { %5426 = vmatpush.bf16.msra.mxu2 %v8556_v33  ;;  %v8579_v33 = vld [vmem:[%s9062_s26 + $0xb58] sm:$0xff] }
 0x1ba   : > { %5440 = vmatpush.bf16.msra.mxu3 %v8564_v34  ;;  %v9555_v58 = vadd.f32 %v5168_v25, %v5155_v53  ;;  %v8587_v34 = vld [vmem:[%s9062_s26 + $0xb98] sm:$0xff]  ;;  %v8584_v53 = vld [vmem:[%s9062_s26 + $0xb80] sm:$0xff] }
 0x1bb   : > { %5399 = vmatpush.bf16.msra.mxu0 %v8539_v36  ;;  %v8592_v25 = vld [vmem:[%s9062_s26 + $0xbc0] sm:$0xff] }
 0x1bc   : > { %5413 = vmatpush.bf16.msra.mxu1 %v8547_v31 }
 0x1bd   : > { %5427 = vmatpush.bf16.msra.mxu2 %v8555_v37 }
 0x1be   : > { %5441 = vmatpush.bf16.msra.mxu3 %v8563_v38 }
 0x1bf   : > { %5400 = vmatpush.bf16.msra.mxu0 %v8538_v44  ;;  %v8594_v44 = vld [vmem:[%s9062_s26 + $0xbd0] sm:$0xff] }
 0x1c0   : > { %5414 = vmatpush.bf16.msra.mxu1 %v8546_v45 }
 0x1c1   : > { %5428 = vmatpush.bf16.msra.mxu2 %v8554_v13  ;;  %v8577_v13 = vld [vmem:[%s9062_s26 + $0xb48] sm:$0xff] }
 0x1c2   : > { %5442 = vmatpush.bf16.msra.mxu3 %v8562_v47  ;;  %v8585_v47 = vld [vmem:[%s9062_s26 + $0xb88] sm:$0xff] }
 0x1c3   : > { %5401 = vmatpush.bf16.msra.mxu0 %v8537_v22 }
 0x1c4   : > { %5415 = vmatpush.bf16.msra.mxu1 %v8545_v49 }
 0x1c5   : > { %5429 = vmatpush.bf16.msra.mxu2 %v8553_v50 }
 0x1c6   : > { %5443 = vmatpush.bf16.msra.mxu3 %v8561_v51  ;;  %v8568_v51 = vld [vmem:[%s9062_s26 + $0xb00] sm:$0xff] }
 0x1c7   : > { %5402 = vmatpush.bf16.msra.mxu0 %v8536_v54  ;;  %v5180_v20 = vpop.f32.mrf.mxu0 }
 0x1c8   : > { %5416 = vmatpush.bf16.msra.mxu1 %v8544_v55  ;;  %v5181_v23 = vadd.f32 %v5180_v20, %v9541_v43  ;;  %v5194_v28 = vpop.f32.mrf.mxu1  ;;  %v8586_v43 = vld [vmem:[%s9062_s26 + $0xb90] sm:$0xff]  ;;  %v8607_v55 = vld [vmem:[%s9062_s26 + $0xc38] sm:$0xff] }
 0x1c9   : > { %5430 = vmatpush.bf16.msra.mxu2 %v8552_v56  ;;  %v8615_v56 = vld [vmem:[%s9062_s26 + $0xc78] sm:$0xff] }
 0x1ca   : > { %5444 = vmatpush.bf16.msra.mxu3 %v8560_v57  ;;  %5403 = vmatmul.bf16.vlgmr.msra.gmra.mxu0 %v6006_v7  ;;  %v5195_v30 = vadd.f32 %v5194_v28, %v5181_v23  ;;  %v6021_v57 = vld [vmem:[%s9064_s9 + $0xb0] sm:$0xf]  ;;  %v8606_v7 = vld [vmem:[%s9062_s26 + $0xc30] sm:$0xff]  ;;  %v8603_v28 = vld [vmem:[%s9062_s26 + $0xc18] sm:$0xff] }
 0x1cb   : > { %5451 = vmatpush.bf16.msrb.mxu0 %v8575_v59  ;;  %5417 = vmatmul.bf16.vlgmr.msra.gmra.mxu1 %v6010_v9  ;;  %v6029_v59 = vld [vmem:[%s9064_s9 + $0xb8] sm:$0xf]  ;;  %v8622_v9 = vld [vmem:[%s9062_s26 + $0xcb0] sm:$0xff]  ;;  %v8620_v23 = vld [vmem:[%s9062_s26 + $0xca0] sm:$0xff] }
 0x1cc   : > { %5465 = vmatpush.bf16.msrb.mxu1 %v8583_v60  ;;  %5431 = vmatmul.bf16.vlgmr.msra.gmra.mxu2 %v6014_v8  ;;  %v8207_v60 = vld [vmem:[%s9064_s9 + $0x1b4] sm:$0xf0]  ;;  %v8614_v8 = vld [vmem:[%s9062_s26 + $0xc70] sm:$0xff] }
 0x1cd   : > { %5479 = vmatpush.bf16.msrb.mxu2 %v8591_v5  ;;  %5445 = vmatmul.bf16.vlgmr.msra.gmra.mxu3 %v6018_v11  ;;  %v6030_v4 = vor.u32 %v8207_v60, %v6029_v59  ;;  %v6026_v5 = vor.u32 %v8174_v61, %v6023_v62  ;;  %v8630_v11 = vld [vmem:[%s9062_s26 + $0xcf0] sm:$0xff]  ;;  %v8177_v59 = vld [vmem:[%s9064_s9 + $0xcc] sm:$0xf] }
 0x1ce   : > { %5493 = vmatpush.bf16.msrb.mxu3 %v8599_v6  ;;  %v6034_v6 = vor.u32 %v8175_v63, %v6031_v0  ;;  %v6047_v60 = vld [vmem:[%s9064_s9 + $0x1c8] sm:$0xf0] }
 0x1cf   : > { %5452 = vmatpush.bf16.msrb.mxu0 %v8574_v12  ;;  %v5208_v36 = vpop.f32.mrf.mxu2  ;;  %v5182_v38 = vpop.f32.mrf.mxu0  ;;  %v8605_v12 = vld [vmem:[%s9062_s26 + $0xc28] sm:$0xff]  ;;  %v8655_v61 = vld [vmem:[%s9062_s26 + $0xdb8] sm:$0xff] }
 0x1d0   : > { %5466 = vmatpush.bf16.msrb.mxu1 %v8582_v14  ;;  %v5209_v31 = vadd.f32 %v5208_v36, %v5195_v30  ;;  %v5222_v37 = vpop.f32.mrf.mxu3  ;;  %v5183_v39 = vadd.f32 %v5182_v38, %v9555_v58  ;;  %v5196_v10 = vpop.f32.mrf.mxu1  ;;  %v8206_v58 = vld [vmem:[%s9064_s9 + $0x1ac] sm:$0xf0]  ;;  %v8613_v14 = vld [vmem:[%s9062_s26 + $0xc68] sm:$0xff]  ;;  %v8627_v30 = vld [vmem:[%s9062_s26 + $0xcd8] sm:$0xff] }
 0x1d1   : > { %5480 = vmatpush.bf16.msrb.mxu2 %v8590_v15  ;;  %v6022_v3 = vor.u32 %v8206_v58, %v6021_v57  ;;  %v8621_v15 = vld [vmem:[%s9062_s26 + $0xca8] sm:$0xff]  ;;  %v8610_v38 = vld [vmem:[%s9062_s26 + $0xc50] sm:$0xff]  ;;  %v8663_v62 = vld [vmem:[%s9062_s26 + $0xdf8] sm:$0xff] }
 0x1d2   : > { %5494 = vmatpush.bf16.msrb.mxu3 %v8598_v17  ;;  %v9587_v40 = vadd.f32 %v5222_v37, %v5209_v31  ;;  %v5197_v45 = vadd.f32 %v5196_v10, %v5183_v39  ;;  %v8629_v17 = vld [vmem:[%s9062_s26 + $0xce8] sm:$0xff]  ;;  %v8602_v37 = vld [vmem:[%s9062_s26 + $0xc10] sm:$0xff] }
 0x1d3   : > { %5453 = vmatpush.bf16.msrb.mxu0 %v8573_v16  ;;  %v8601_v10 = vld [vmem:[%s9062_s26 + $0xc08] sm:$0xff]  ;;  %v8176_v57 = vld [vmem:[%s9064_s9 + $0xc4] sm:$0xf] }
 0x1d4   : > { %5467 = vmatpush.bf16.msrb.mxu1 %v8581_v21  ;;  %v6039_v58 = vld [vmem:[%s9064_s9 + $0x1c0] sm:$0xf0] }
 0x1d5   : > { %5481 = vmatpush.bf16.msrb.mxu2 %v8589_v18  ;;  %v8604_v18 = vld [vmem:[%s9062_s26 + $0xc20] sm:$0xff] }
 0x1d6   : > { %5495 = vmatpush.bf16.msrb.mxu3 %v8597_v19  ;;  %v8612_v19 = vld [vmem:[%s9062_s26 + $0xc60] sm:$0xff] }
 0x1d7   : > { %5454 = vmatpush.bf16.msrb.mxu0 %v8572_v27  ;;  %v5210_v22 = vpop.f32.mrf.mxu2  ;;  %v8628_v27 = vld [vmem:[%s9062_s26 + $0xce0] sm:$0xff] }
 0x1d8   : > { %5468 = vmatpush.bf16.msrb.mxu1 %v8580_v26  ;;  %v5211_v49 = vadd.f32 %v5210_v22, %v5197_v45  ;;  %v5224_v50 = vpop.f32.mrf.mxu3  ;;  %v8625_v45 = vld [vmem:[%s9062_s26 + $0xcc8] sm:$0xff]  ;;  %v8608_v22 = vld [vmem:[%s9062_s26 + $0xc40] sm:$0xff] }
 0x1d9   : > { %5482 = vmatpush.bf16.msrb.mxu2 %v8588_v24  ;;  %v8611_v24 = vld [vmem:[%s9062_s26 + $0xc58] sm:$0xff] }
 0x1da   : > { %5496 = vmatpush.bf16.msrb.mxu3 %v8596_v29  ;;  %v9601_v54 = vadd.f32 %v5224_v50, %v5211_v49  ;;  %v8619_v29 = vld [vmem:[%s9062_s26 + $0xc98] sm:$0xff]  ;;  %v8616_v49 = vld [vmem:[%s9062_s26 + $0xc80] sm:$0xff] }
 0x1db   : > { %5455 = vmatpush.bf16.msrb.mxu0 %v8571_v32  ;;  %v8624_v50 = vld [vmem:[%s9062_s26 + $0xcc0] sm:$0xff] }
 0x1dc   : > { %5469 = vmatpush.bf16.msrb.mxu1 %v8579_v33 }
 0x1dd   : > { %5483 = vmatpush.bf16.msrb.mxu2 %v8587_v34 }
 0x1de   : > { %5497 = vmatpush.bf16.msrb.mxu3 %v8595_v35 }
 0x1df   : > { %5456 = vmatpush.bf16.msrb.mxu0 %v8570_v41  ;;  %v8626_v41 = vld [vmem:[%s9062_s26 + $0xcd0] sm:$0xff] }
 0x1e0   : > { %5470 = vmatpush.bf16.msrb.mxu1 %v8578_v42 }
 0x1e1   : > { %5484 = vmatpush.bf16.msrb.mxu2 %v8586_v43  ;;  %v8609_v43 = vld [vmem:[%s9062_s26 + $0xc48] sm:$0xff] }
 0x1e2   : > { %5498 = vmatpush.bf16.msrb.mxu3 %v8594_v44  ;;  %v8617_v44 = vld [vmem:[%s9062_s26 + $0xc88] sm:$0xff] }
 0x1e3   : > { %5457 = vmatpush.bf16.msrb.mxu0 %v8569_v46 }
 0x1e4   : > { %5471 = vmatpush.bf16.msrb.mxu1 %v8577_v13 }
 0x1e5   : > { %5485 = vmatpush.bf16.msrb.mxu2 %v8585_v47 }
 0x1e6   : > { %5499 = vmatpush.bf16.msrb.mxu3 %v8593_v48  ;;  %v8600_v48 = vld [vmem:[%s9062_s26 + $0xc00] sm:$0xff] }
 0x1e7   : > { %5458 = vmatpush.bf16.msrb.mxu0 %v8568_v51  ;;  %v5236_v16 = vpop.f32.mrf.mxu0 }
 0x1e8   : > { %5472 = vmatpush.bf16.msrb.mxu1 %v8576_v52  ;;  %v5237_v21 = vadd.f32 %v5236_v16, %v9587_v40  ;;  %v5250_v20 = vpop.f32.mrf.mxu1  ;;  %v8618_v40 = vld [vmem:[%s9062_s26 + $0xc90] sm:$0xff]  ;;  %v8639_v52 = vld [vmem:[%s9062_s26 + $0xd38] sm:$0xff] }
 0x1e9   : > { %5486 = vmatpush.bf16.msrb.mxu2 %v8584_v53  ;;  %v8647_v53 = vld [vmem:[%s9062_s26 + $0xd78] sm:$0xff] }
 0x1ea   : > { %5500 = vmatpush.bf16.msrb.mxu3 %v8592_v25  ;;  %5459 = vmatmul.bf16.vlgmr.msrb.gmra.mxu0 %v6022_v3  ;;  %v5251_v26 = vadd.f32 %v5250_v20, %v5237_v21  ;;  %v6037_v25 = vld [vmem:[%s9064_s9 + $0xc0] sm:$0xf]  ;;  %v8635_v16 = vld [vmem:[%s9062_s26 + $0xd18] sm:$0xff] }
 0x1eb   : > { %5507 = vmatpush.bf16.msra.mxu0 %v8607_v55  ;;  %5473 = vmatmul.bf16.vlgmr.msrb.gmra.mxu1 %v6026_v5  ;;  %v6045_v55 = vld [vmem:[%s9064_s9 + $0xc8] sm:$0xf]  ;;  %v8638_v3 = vld [vmem:[%s9062_s26 + $0xd30] sm:$0xff] }
 0x1ec   : > { %5521 = vmatpush.bf16.msra.mxu1 %v8615_v56  ;;  %5487 = vmatmul.bf16.vlgmr.msrb.gmra.mxu2 %v6030_v4  ;;  %v8209_v56 = vld [vmem:[%s9064_s9 + $0x1c4] sm:$0xf0]  ;;  %v8646_v4 = vld [vmem:[%s9062_s26 + $0xd70] sm:$0xff] }
 0x1ed   : > { %5535 = vmatpush.bf16.msra.mxu2 %v8623_v1  ;;  %5501 = vmatmul.bf16.vlgmr.msrb.gmra.mxu3 %v6034_v6  ;;  %v6046_v0 = vor.u32 %v8209_v56, %v6045_v55  ;;  %v6042_v1 = vor.u32 %v8176_v57, %v6039_v58  ;;  %v8654_v5 = vld [vmem:[%s9062_s26 + $0xdb0] sm:$0xff]  ;;  %v8643_v21 = vld [vmem:[%s9062_s26 + $0xd58] sm:$0xff]  ;;  %v8685_v55 = vld [vmem:[%s9062_s26 + $0xea8] sm:$0xff] }
 0x1ee   : > { %5549 = vmatpush.bf16.msra.mxu3 %v8631_v2  ;;  %v6050_v2 = vor.u32 %v8177_v59, %v6047_v60  ;;  %v8662_v6 = vld [vmem:[%s9062_s26 + $0xdf0] sm:$0xff]  ;;  %v8693_v56 = vld [vmem:[%s9062_s26 + $0xee8] sm:$0xff]  ;;  %v8668_v57 = vld [vmem:[%s9062_s26 + $0xe20] sm:$0xff] }
 0x1ef   : > { %5508 = vmatpush.bf16.msra.mxu0 %v8606_v7  ;;  %v5264_v32 = vpop.f32.mrf.mxu2  ;;  %v5238_v35 = vpop.f32.mrf.mxu0  ;;  %v8637_v7 = vld [vmem:[%s9062_s26 + $0xd28] sm:$0xff]  ;;  %v8634_v20 = vld [vmem:[%s9062_s26 + $0xd10] sm:$0xff]  ;;  %v8676_v58 = vld [vmem:[%s9062_s26 + $0xe60] sm:$0xff] }
 0x1f0   : > { %5522 = vmatpush.bf16.msra.mxu1 %v8614_v8  ;;  %v5265_v33 = vadd.f32 %v5264_v32, %v5251_v26  ;;  %v5278_v34 = vpop.f32.mrf.mxu3  ;;  %v5239_v36 = vadd.f32 %v5238_v35, %v9601_v54  ;;  %v5252_v39 = vpop.f32.mrf.mxu1  ;;  %v8208_v54 = vld [vmem:[%s9064_s9 + $0x1bc] sm:$0xf0]  ;;  %v8645_v8 = vld [vmem:[%s9062_s26 + $0xd68] sm:$0xff]  ;;  %v8632_v32 = vld [vmem:[%s9062_s26 + $0xd00] sm:$0xff] }
 0x1f1   : > { %5536 = vmatpush.bf16.msra.mxu2 %v8622_v9  ;;  %v6038_v63 = vor.u32 %v8208_v54, %v6037_v25  ;;  %v8653_v9 = vld [vmem:[%s9062_s26 + $0xda8] sm:$0xff]  ;;  %v8658_v26 = vld [vmem:[%s9062_s26 + $0xdd0] sm:$0xff]  ;;  %v8656_v35 = vld [vmem:[%s9062_s26 + $0xdc0] sm:$0xff] }
 0x1f2   : > { %5550 = vmatpush.bf16.msra.mxu3 %v8630_v11  ;;  %v9633_v31 = vadd.f32 %v5278_v34, %v5265_v33  ;;  %v5253_v42 = vadd.f32 %v5252_v39, %v5239_v36  ;;  %v8661_v11 = vld [vmem:[%s9062_s26 + $0xde8] sm:$0xff]  ;;  %v8640_v33 = vld [vmem:[%s9062_s26 + $0xd40] sm:$0xff]  ;;  %v8671_v36 = vld [vmem:[%s9062_s26 + $0xe38] sm:$0xff] }
 0x1f3   : > { %5509 = vmatpush.bf16.msra.mxu0 %v8605_v12  ;;  %v8636_v12 = vld [vmem:[%s9062_s26 + $0xd20] sm:$0xff]  ;;  %v8669_v25 = vld [vmem:[%s9062_s26 + $0xe28] sm:$0xff] }
 0x1f4   : > { %5523 = vmatpush.bf16.msra.mxu1 %v8613_v14  ;;  %v8644_v14 = vld [vmem:[%s9062_s26 + $0xd60] sm:$0xff]  ;;  %v8677_v54 = vld [vmem:[%s9062_s26 + $0xe68] sm:$0xff] }
 0x1f5   : > { %5537 = vmatpush.bf16.msra.mxu2 %v8621_v15  ;;  %v8652_v15 = vld [vmem:[%s9062_s26 + $0xda0] sm:$0xff] }
 0x1f6   : > { %5551 = vmatpush.bf16.msra.mxu3 %v8629_v17  ;;  %v8660_v17 = vld [vmem:[%s9062_s26 + $0xde0] sm:$0xff] }
 0x1f7   : > { %5510 = vmatpush.bf16.msra.mxu0 %v8604_v18  ;;  %v5266_v46 = vpop.f32.mrf.mxu2  ;;  %v8651_v18 = vld [vmem:[%s9062_s26 + $0xd98] sm:$0xff]  ;;  %v8648_v34 = vld [vmem:[%s9062_s26 + $0xd80] sm:$0xff] }
 0x1f8   : > { %5524 = vmatpush.bf16.msra.mxu1 %v8612_v19  ;;  %v5267_v13 = vadd.f32 %v5266_v46, %v5253_v42  ;;  %v5280_v47 = vpop.f32.mrf.mxu3  ;;  %v8659_v19 = vld [vmem:[%s9062_s26 + $0xdd8] sm:$0xff]  ;;  %v8210_v39 = vld [vmem:[%s9064_s9 + $0x1cc] sm:$0xf0]  ;;  %v8178_v42 = vld [vmem:[%s9064_s9 + $0xd4] sm:$0xf] }
 0x1f9   : > { %5538 = vmatpush.bf16.msra.mxu2 %v8620_v23  ;;  %v8642_v23 = vld [vmem:[%s9062_s26 + $0xd50] sm:$0xff]  ;;  %v8695_v46 = vld [vmem:[%s9062_s26 + $0xef8] sm:$0xff]  ;;  %v8684_v59 = vld [vmem:[%s9062_s26 + $0xea0] sm:$0xff] }
 0x1fa   : > { %5552 = vmatpush.bf16.msra.mxu3 %v8628_v27  ;;  %v9647_v51 = vadd.f32 %v5280_v47, %v5267_v13  ;;  %v8650_v27 = vld [vmem:[%s9062_s26 + $0xd90] sm:$0xff]  ;;  %v8692_v60 = vld [vmem:[%s9062_s26 + $0xee0] sm:$0xff] }
 0x1fb   : > { %5511 = vmatpush.bf16.msra.mxu0 %v8603_v28  ;;  %v8633_v28 = vld [vmem:[%s9062_s26 + $0xd08] sm:$0xff] }
 0x1fc   : > { %5525 = vmatpush.bf16.msra.mxu1 %v8611_v24  ;;  %v8641_v24 = vld [vmem:[%s9062_s26 + $0xd48] sm:$0xff] }
 0x1fd   : > { %5539 = vmatpush.bf16.msra.mxu2 %v8619_v29  ;;  %v8649_v29 = vld [vmem:[%s9062_s26 + $0xd88] sm:$0xff] }
 0x1fe   : > { %5553 = vmatpush.bf16.msra.mxu3 %v8627_v30  ;;  %v8657_v30 = vld [vmem:[%s9062_s26 + $0xdc8] sm:$0xff] }
 0x1ff   : > { %5512 = vmatpush.bf16.msra.mxu0 %v8602_v37  ;;  %v8679_v37 = vld [vmem:[%s9062_s26 + $0xe78] sm:$0xff] }
 0x200   : > { %5526 = vmatpush.bf16.msra.mxu1 %v8610_v38  ;;  %v6053_v38 = vld [vmem:[%s9064_s9 + $0xd0] sm:$0xf] }
 0x201   : > { %5540 = vmatpush.bf16.msra.mxu2 %v8618_v40  ;;  %v6061_v40 = vld [vmem:[%s9064_s9 + $0xd8] sm:$0xf]  ;;  %v6054_v13 = vor.u32 %v8210_v39, %v6053_v38 }
 0x202   : > { %5554 = vmatpush.bf16.msra.mxu3 %v8626_v41  ;;  %v8211_v41 = vld [vmem:[%s9064_s9 + $0x1d4] sm:$0xf0] }
 0x203   : > { %5513 = vmatpush.bf16.msra.mxu0 %v8601_v10  ;;  %v6055_v10 = vld [vmem:[%s9064_s9 + $0x1d0] sm:$0xf0]  ;;  %v6062_v47 = vor.u32 %v8211_v41, %v6061_v40  ;;  %v8701_v38 = vld [vmem:[%s9062_s26 + $0xf28] sm:$0xff] }
 0x204   : > { %5527 = vmatpush.bf16.msra.mxu1 %v8609_v43  ;;  %v8179_v43 = vld [vmem:[%s9064_s9 + $0xdc] sm:$0xf] }
 0x205   : > { %5541 = vmatpush.bf16.msra.mxu2 %v8617_v44  ;;  %v6063_v44 = vld [vmem:[%s9064_s9 + $0x1d8] sm:$0xf0] }
 0x206   : > { %5555 = vmatpush.bf16.msra.mxu3 %v8625_v45  ;;  %v8687_v45 = vld [vmem:[%s9062_s26 + $0xeb8] sm:$0xff]  ;;  %v8709_v39 = vld [vmem:[%s9062_s26 + $0xf68] sm:$0xff] }
 0x207   : > { %5514 = vmatpush.bf16.msra.mxu0 %v8600_v48  ;;  %v6058_v48 = vor.u32 %v8178_v42, %v6055_v10  ;;  %v8717_v40 = vld [vmem:[%s9062_s26 + $0xfa8] sm:$0xff]  ;;  %v8700_v42 = vld [vmem:[%s9062_s26 + $0xf20] sm:$0xff] }
 0x208   : > { %5528 = vmatpush.bf16.msra.mxu1 %v8608_v22  ;;  %v6066_v22 = vor.u32 %v8179_v43, %v6063_v44  ;;  %v8725_v41 = vld [vmem:[%s9062_s26 + $0xfe8] sm:$0xff]  ;;  %v8708_v10 = vld [vmem:[%s9062_s26 + $0xf60] sm:$0xff] }
 0x209   : > { %5542 = vmatpush.bf16.msra.mxu2 %v8616_v49  ;;  %v8670_v49 = vld [vmem:[%s9062_s26 + $0xe30] sm:$0xff]  ;;  %v8716_v43 = vld [vmem:[%s9062_s26 + $0xfa0] sm:$0xff] }
 0x20a   : > { %5556 = vmatpush.bf16.msra.mxu3 %v8624_v50  ;;  %5515 = vmatmul.bf16.vlgmr.msra.gmra.mxu0 %v6038_v63  ;;  %v8678_v50 = vld [vmem:[%s9062_s26 + $0xe70] sm:$0xff]  ;;  %v8683_v63 = vld [vmem:[%s9062_s26 + $0xe98] sm:$0xff]  ;;  %v8724_v44 = vld [vmem:[%s9062_s26 + $0xfe0] sm:$0xff] }
 0x20b   : > { %5563 = vmatpush.bf16.msrb.mxu0 %v8639_v52  ;;  %5529 = vmatmul.bf16.vlgmr.msra.gmra.mxu1 %v6042_v1  ;;  %v8686_v52 = vld [vmem:[%s9062_s26 + $0xeb0] sm:$0xff] }
 0x20c   : > { %5577 = vmatpush.bf16.msrb.mxu1 %v8647_v53  ;;  %5543 = vmatmul.bf16.vlgmr.msra.gmra.mxu2 %v6046_v0  ;;  %v8694_v53 = vld [vmem:[%s9062_s26 + $0xef0] sm:$0xff]  ;;  %v8691_v0 = vld [vmem:[%s9062_s26 + $0xed8] sm:$0xff] }
 0x20d   : > { %5591 = vmatpush.bf16.msrb.mxu2 %v8655_v61  ;;  %5557 = vmatmul.bf16.vlgmr.msra.gmra.mxu3 %v6050_v2  ;;  %v8667_v61 = vld [vmem:[%s9062_s26 + $0xe18] sm:$0xff]  ;;  %v8666_v1 = vld [vmem:[%s9062_s26 + $0xe10] sm:$0xff] }
 0x20e   : > { %5605 = vmatpush.bf16.msrb.mxu3 %v8663_v62  ;;  %v8675_v62 = vld [vmem:[%s9062_s26 + $0xe58] sm:$0xff]  ;;  %v8674_v2 = vld [vmem:[%s9062_s26 + $0xe50] sm:$0xff] }
 0x20f   : > { %5564 = vmatpush.bf16.msrb.mxu0 %v8638_v3  ;;  %v8682_v3 = vld [vmem:[%s9062_s26 + $0xe90] sm:$0xff] }
 0x210   : > { %5578 = vmatpush.bf16.msrb.mxu1 %v8646_v4  ;;  %v8690_v4 = vld [vmem:[%s9062_s26 + $0xed0] sm:$0xff] }
 0x211   : > { %5592 = vmatpush.bf16.msrb.mxu2 %v8654_v5  ;;  %v8665_v5 = vld [vmem:[%s9062_s26 + $0xe08] sm:$0xff] }
 0x212   : > { %5606 = vmatpush.bf16.msrb.mxu3 %v8662_v6  ;;  %v8673_v6 = vld [vmem:[%s9062_s26 + $0xe48] sm:$0xff] }
 0x213   : > { %5565 = vmatpush.bf16.msrb.mxu0 %v8637_v7  ;;  %v8681_v7 = vld [vmem:[%s9062_s26 + $0xe88] sm:$0xff] }
 0x214   : > { %5579 = vmatpush.bf16.msrb.mxu1 %v8645_v8  ;;  %v8689_v8 = vld [vmem:[%s9062_s26 + $0xec8] sm:$0xff] }
 0x215   : > { %5593 = vmatpush.bf16.msrb.mxu2 %v8653_v9  ;;  %v8664_v9 = vld [vmem:[%s9062_s26 + $0xe00] sm:$0xff] }
 0x216   : > { %5607 = vmatpush.bf16.msrb.mxu3 %v8661_v11  ;;  %v8672_v11 = vld [vmem:[%s9062_s26 + $0xe40] sm:$0xff] }
 0x217   : > { %5566 = vmatpush.bf16.msrb.mxu0 %v8636_v12  ;;  %v8680_v12 = vld [vmem:[%s9062_s26 + $0xe80] sm:$0xff] }
 0x218   : > { %5580 = vmatpush.bf16.msrb.mxu1 %v8644_v14  ;;  %v8688_v14 = vld [vmem:[%s9062_s26 + $0xec0] sm:$0xff] }
 0x219   : > { %5594 = vmatpush.bf16.msrb.mxu2 %v8652_v15  ;;  %v8703_v15 = vld [vmem:[%s9062_s26 + $0xf38] sm:$0xff] }
 0x21a   : > { %5608 = vmatpush.bf16.msrb.mxu3 %v8660_v17  ;;  %v8711_v17 = vld [vmem:[%s9062_s26 + $0xf78] sm:$0xff] }
 0x21b   : > { %5567 = vmatpush.bf16.msrb.mxu0 %v8635_v16  ;;  %v6069_v16 = vld [vmem:[%s9064_s9 + $0xe0] sm:$0xf] }
 0x21c   : > { %5581 = vmatpush.bf16.msrb.mxu1 %v8643_v21  ;;  %v8212_v21 = vld [vmem:[%s9064_s9 + $0x1dc] sm:$0xf0] }
 0x21d   : > { %5595 = vmatpush.bf16.msrb.mxu2 %v8651_v18  ;;  %v6077_v18 = vld [vmem:[%s9064_s9 + $0xe8] sm:$0xf] }
 0x21e   : > { %5609 = vmatpush.bf16.msrb.mxu3 %v8659_v19  ;;  %v8213_v19 = vld [vmem:[%s9064_s9 + $0x1e4] sm:$0xf0] }
 0x21f   : > { %5568 = vmatpush.bf16.msrb.mxu0 %v8634_v20  ;;  %v8180_v20 = vld [vmem:[%s9064_s9 + $0xe4] sm:$0xf] }
 0x220   : > { %5582 = vmatpush.bf16.msrb.mxu1 %v8642_v23  ;;  %v6071_v23 = vld [vmem:[%s9064_s9 + $0x1e0] sm:$0xf0] }
 0x221   : > { %5596 = vmatpush.bf16.msrb.mxu2 %v8650_v27  ;;  %v8181_v27 = vld [vmem:[%s9064_s9 + $0xec] sm:$0xf] }
 0x222   : > { %5610 = vmatpush.bf16.msrb.mxu3 %v8658_v26  ;;  %v6079_v26 = vld [vmem:[%s9064_s9 + $0x1e8] sm:$0xf0] }
 0x223   : > { %5569 = vmatpush.bf16.msrb.mxu0 %v8633_v28  ;;  %v8719_v28 = vld [vmem:[%s9062_s26 + $0xfb8] sm:$0xff] }
 0x224   : > { %5583 = vmatpush.bf16.msrb.mxu1 %v8641_v24  ;;  %v8727_v24 = vld [vmem:[%s9062_s26 + $0xff8] sm:$0xff] }
 0x225   : > { %5597 = vmatpush.bf16.msrb.mxu2 %v8649_v29  ;;  %v6070_v29 = vor.u32 %v8212_v21, %v6069_v16 }
 0x226   : > { %5611 = vmatpush.bf16.msrb.mxu3 %v8657_v30  ;;  %v6078_v30 = vor.u32 %v8213_v19, %v6077_v18 }
 0x227   : > { %5570 = vmatpush.bf16.msrb.mxu0 %v8632_v32  ;;  %v6074_v32 = vor.u32 %v8180_v20, %v6071_v23 }
 0x228   : > { %5584 = vmatpush.bf16.msrb.mxu1 %v8640_v33  ;;  %v6082_v33 = vor.u32 %v8181_v27, %v6079_v26 }
 0x229   : > { %5598 = vmatpush.bf16.msrb.mxu2 %v8648_v34  ;;  %v8702_v34 = vld [vmem:[%s9062_s26 + $0xf30] sm:$0xff] }
 0x22a   : > { %5612 = vmatpush.bf16.msrb.mxu3 %v8656_v35  ;;  %5571 = vmatmul.bf16.vlgmr.msrb.gmra.mxu0 %v6054_v13  ;;  %v8710_v35 = vld [vmem:[%s9062_s26 + $0xf70] sm:$0xff]  ;;  %v8715_v13 = vld [vmem:[%s9062_s26 + $0xf98] sm:$0xff] }
 0x22b   : > { %5619 = vmatpush.bf16.msra.mxu0 %v8671_v36  ;;  %5585 = vmatmul.bf16.vlgmr.msrb.gmra.mxu1 %v6058_v48  ;;  %v8718_v36 = vld [vmem:[%s9062_s26 + $0xfb0] sm:$0xff] }
 0x22c   : > { %5633 = vmatpush.bf16.msra.mxu1 %v8679_v37  ;;  %5599 = vmatmul.bf16.vlgmr.msrb.gmra.mxu2 %v6062_v47  ;;  %v8726_v37 = vld [vmem:[%s9062_s26 + $0xff0] sm:$0xff]  ;;  %v8723_v47 = vld [vmem:[%s9062_s26 + $0xfd8] sm:$0xff] }
 0x22d   : > { %5647 = vmatpush.bf16.msra.mxu2 %v8687_v45  ;;  %5613 = vmatmul.bf16.vlgmr.msrb.gmra.mxu3 %v6066_v22  ;;  %v8699_v45 = vld [vmem:[%s9062_s26 + $0xf18] sm:$0xff]  ;;  %v8698_v48 = vld [vmem:[%s9062_s26 + $0xf10] sm:$0xff] }
 0x22e   : > { %5661 = vmatpush.bf16.msra.mxu3 %v8695_v46  ;;  %v8707_v46 = vld [vmem:[%s9062_s26 + $0xf58] sm:$0xff]  ;;  %v8706_v22 = vld [vmem:[%s9062_s26 + $0xf50] sm:$0xff] }
 0x22f   : > { %5620 = vmatpush.bf16.msra.mxu0 %v8670_v49  ;;  %v8714_v49 = vld [vmem:[%s9062_s26 + $0xf90] sm:$0xff] }
 0x230   : > { %5634 = vmatpush.bf16.msra.mxu1 %v8678_v50  ;;  %v8722_v50 = vld [vmem:[%s9062_s26 + $0xfd0] sm:$0xff] }
 0x231   : > { %5648 = vmatpush.bf16.msra.mxu2 %v8686_v52  ;;  %v8697_v52 = vld [vmem:[%s9062_s26 + $0xf08] sm:$0xff] }
 0x232   : > { %5662 = vmatpush.bf16.msra.mxu3 %v8694_v53  ;;  %v8705_v53 = vld [vmem:[%s9062_s26 + $0xf48] sm:$0xff] }
 0x233   : > { %5621 = vmatpush.bf16.msra.mxu0 %v8669_v25  ;;  %v8713_v25 = vld [vmem:[%s9062_s26 + $0xf88] sm:$0xff] }
 0x234   : > { %5635 = vmatpush.bf16.msra.mxu1 %v8677_v54  ;;  %v8721_v54 = vld [vmem:[%s9062_s26 + $0xfc8] sm:$0xff] }
 0x235   : > { %5649 = vmatpush.bf16.msra.mxu2 %v8685_v55  ;;  %v8696_v55 = vld [vmem:[%s9062_s26 + $0xf00] sm:$0xff] }
 0x236   : > { %5663 = vmatpush.bf16.msra.mxu3 %v8693_v56  ;;  %v8704_v56 = vld [vmem:[%s9062_s26 + $0xf40] sm:$0xff] }
 0x237   : > { %5622 = vmatpush.bf16.msra.mxu0 %v8668_v57  ;;  %v8712_v57 = vld [vmem:[%s9062_s26 + $0xf80] sm:$0xff] }
 0x238   : > { %5636 = vmatpush.bf16.msra.mxu1 %v8676_v58  ;;  %v8720_v58 = vld [vmem:[%s9062_s26 + $0xfc0] sm:$0xff] }
 0x239   : > { %5650 = vmatpush.bf16.msra.mxu2 %v8684_v59  ;;  %v6085_v59 = vld [vmem:[%s9064_s9 + $0xf0] sm:$0xf] }
 0x23a   : > { %5664 = vmatpush.bf16.msra.mxu3 %v8692_v60  ;;  %v8214_v60 = vld [vmem:[%s9064_s9 + $0x1ec] sm:$0xf0] }
 0x23b   : > { %5623 = vmatpush.bf16.msra.mxu0 %v8667_v61  ;;  %v8182_v61 = vld [vmem:[%s9064_s9 + $0xf4] sm:$0xf] }
 0x23c   : > { %5637 = vmatpush.bf16.msra.mxu1 %v8675_v62  ;;  %v6087_v62 = vld [vmem:[%s9064_s9 + $0x1f0] sm:$0xf0] }
 0x23d   : > { %5651 = vmatpush.bf16.msra.mxu2 %v8683_v63  ;;  %v6093_v63 = vld [vmem:[%s9064_s9 + $0xf8] sm:$0xf] }
 0x23e   : > { %5665 = vmatpush.bf16.msra.mxu3 %v8691_v0  ;;  %v8215_v0 = vld [vmem:[%s9064_s9 + $0x1f4] sm:$0xf0] }
 0x23f   : > { %5624 = vmatpush.bf16.msra.mxu0 %v8666_v1  ;;  %v8183_v1 = vld [vmem:[%s9064_s9 + $0xfc] sm:$0xf] }
 0x240   : > { %5638 = vmatpush.bf16.msra.mxu1 %v8674_v2  ;;  %v6095_v2 = vld [vmem:[%s9064_s9 + $0x1f8] sm:$0xf0] }
 0x241   : > { %5652 = vmatpush.bf16.msra.mxu2 %v8682_v3  ;;  %v6086_v3 = vor.u32 %v8214_v60, %v6085_v59 }
 0x242   : > { %5666 = vmatpush.bf16.msra.mxu3 %v8690_v4  ;;  %v6090_v4 = vor.u32 %v8182_v61, %v6087_v62 }
 0x243   : > { %5625 = vmatpush.bf16.msra.mxu0 %v8665_v5  ;;  %v6094_v5 = vor.u32 %v8215_v0, %v6093_v63 }
 0x244   : > { %5639 = vmatpush.bf16.msra.mxu1 %v8673_v6  ;;  %v6098_v6 = vor.u32 %v8183_v1, %v6095_v2 }
 0x245   : > { %5653 = vmatpush.bf16.msra.mxu2 %v8681_v7  ;;  %v5292_v7 = vpop.f32.mrf.mxu0 }
 0x246   : > { %5667 = vmatpush.bf16.msra.mxu3 %v8689_v8  ;;  %v5306_v8 = vpop.f32.mrf.mxu1 }
 0x247   : > { %5626 = vmatpush.bf16.msra.mxu0 %v8664_v9  ;;  %v5320_v9 = vpop.f32.mrf.mxu2 }
 0x248   : > { %5640 = vmatpush.bf16.msra.mxu1 %v8672_v11  ;;  %v5334_v11 = vpop.f32.mrf.mxu3 }
 0x249   : > { %5654 = vmatpush.bf16.msra.mxu2 %v8680_v12 }
 0x24a   : > { %5668 = vmatpush.bf16.msra.mxu3 %v8688_v14  ;;  %5627 = vmatmul.bf16.vlgmr.msra.gmra.mxu0 %v6070_v29 }
 0x24b   : > { %5675 = vmatpush.bf16.msrb.mxu0 %v8703_v15  ;;  %5641 = vmatmul.bf16.vlgmr.msra.gmra.mxu1 %v6074_v32  ;;  %v5293_v32 = vadd.f32 %v5292_v7, %v9633_v31 }
 0x24c   : > { %5689 = vmatpush.bf16.msrb.mxu1 %v8711_v17  ;;  %5655 = vmatmul.bf16.vlgmr.msra.gmra.mxu2 %v6078_v30 }
 0x24d   : > { %5703 = vmatpush.bf16.msrb.mxu2 %v8719_v28  ;;  %5669 = vmatmul.bf16.vlgmr.msra.gmra.mxu3 %v6082_v33  ;;  %v5294_v12 = vpop.f32.mrf.mxu0 }
 0x24e   : > { %5717 = vmatpush.bf16.msrb.mxu3 %v8727_v24  ;;  %v5308_v14 = vpop.f32.mrf.mxu1 }
 0x24f   : > { %5676 = vmatpush.bf16.msrb.mxu0 %v8702_v34  ;;  %v5322_v15 = vpop.f32.mrf.mxu2  ;;  %v5307_v34 = vadd.f32 %v5306_v8, %v5293_v32 }
 0x250   : > { %5690 = vmatpush.bf16.msrb.mxu1 %v8710_v35  ;;  %v5336_v17 = vpop.f32.mrf.mxu3 }
 0x251   : > { %5704 = vmatpush.bf16.msrb.mxu2 %v8718_v36  ;;  %v5321_v36 = vadd.f32 %v5320_v9, %v5307_v34 }
 0x252   : > { %5718 = vmatpush.bf16.msrb.mxu3 %v8726_v37  ;;  %v5295_v37 = vadd.f32 %v5294_v12, %v9647_v51 }
 0x253   : > { %5677 = vmatpush.bf16.msrb.mxu0 %v8701_v38 }
 0x254   : > { %5691 = vmatpush.bf16.msrb.mxu1 %v8709_v39 }
 0x255   : > { %5705 = vmatpush.bf16.msrb.mxu2 %v8717_v40  ;;  %v5348_v16 = vpop.f32.mrf.mxu0  ;;  %v5335_v40 = vadd.f32 %v5334_v11, %v5321_v36 }
 0x256   : > { %5719 = vmatpush.bf16.msrb.mxu3 %v8725_v41  ;;  %v5362_v21 = vpop.f32.mrf.mxu1 }
 0x257   : > { %5678 = vmatpush.bf16.msrb.mxu0 %v8700_v42  ;;  %v5376_v18 = vpop.f32.mrf.mxu2  ;;  %v5309_v42 = vadd.f32 %v5308_v14, %v5295_v37 }
 0x258   : > { %5692 = vmatpush.bf16.msrb.mxu1 %v8708_v10  ;;  %v5390_v19 = vpop.f32.mrf.mxu3  ;;  %v5349_v10 = vadd.f32 %v5348_v16, %v5335_v40 }
 0x259   : > { %5706 = vmatpush.bf16.msrb.mxu2 %v8716_v43 }
 0x25a   : > { %5720 = vmatpush.bf16.msrb.mxu3 %v8724_v44  ;;  %v5323_v44 = vadd.f32 %v5322_v15, %v5309_v42 }
 0x25b   : > { %5679 = vmatpush.bf16.msrb.mxu0 %v8699_v45  ;;  %v5363_v45 = vadd.f32 %v5362_v21, %v5349_v10 }
 0x25c   : > { %5693 = vmatpush.bf16.msrb.mxu1 %v8707_v46 }
 0x25d   : > { %5707 = vmatpush.bf16.msrb.mxu2 %v8715_v13  ;;  %v5350_v20 = vpop.f32.mrf.mxu0 }
 0x25e   : > { %5721 = vmatpush.bf16.msrb.mxu3 %v8723_v47  ;;  %v5364_v23 = vpop.f32.mrf.mxu1  ;;  %v5337_v47 = vadd.f32 %v5336_v17, %v5323_v44 }
 0x25f   : > { %5680 = vmatpush.bf16.msrb.mxu0 %v8698_v48  ;;  %v5378_v27 = vpop.f32.mrf.mxu2  ;;  %v5377_v48 = vadd.f32 %v5376_v18, %v5363_v45 }
 0x260   : > { %5694 = vmatpush.bf16.msrb.mxu1 %v8706_v22  ;;  %v5392_v26 = vpop.f32.mrf.mxu3  ;;  %v5351_v31 = vadd.f32 %v5350_v20, %v5337_v47 }
 0x261   : > { %5708 = vmatpush.bf16.msrb.mxu2 %v8714_v49  ;;  %v5391_v49 = vadd.f32 %v5390_v19, %v5377_v48 }
 0x262   : > { %5722 = vmatpush.bf16.msrb.mxu3 %v8722_v50 }
 0x263   : > { %5681 = vmatpush.bf16.msrb.mxu0 %v8697_v52  ;;  %v5365_v52 = vadd.f32 %v5364_v23, %v5351_v31 }
 0x264   : > { %5695 = vmatpush.bf16.msrb.mxu1 %v8705_v53 }
 0x265   : > { %5709 = vmatpush.bf16.msrb.mxu2 %v8713_v25  ;;  %v5404_v28 = vpop.f32.mrf.mxu0  ;;  %v5379_v51 = vadd.f32 %v5378_v27, %v5365_v52 }
 0x266   : > { %5723 = vmatpush.bf16.msrb.mxu3 %v8721_v54  ;;  %v5418_v24 = vpop.f32.mrf.mxu1  ;;  %v5405_v53 = vadd.f32 %v5404_v28, %v5391_v49 }
 0x267   : > { %5682 = vmatpush.bf16.msrb.mxu0 %v8696_v55  ;;  %v5432_v29 = vpop.f32.mrf.mxu2 }
 0x268   : > { %5696 = vmatpush.bf16.msrb.mxu1 %v8704_v56  ;;  %v5446_v30 = vpop.f32.mrf.mxu3  ;;  %v5419_v55 = vadd.f32 %v5418_v24, %v5405_v53 }
 0x269   : > { %5710 = vmatpush.bf16.msrb.mxu2 %v8712_v57  ;;  %v5393_v57 = vadd.f32 %v5392_v26, %v5379_v51 }
 0x26a   : > { %5724 = vmatpush.bf16.msrb.mxu3 %v8720_v58  ;;  %5683 = vmatmul.bf16.vlgmr.msrb.gmra.mxu0 %v6086_v3  ;;  %v5433_v58 = vadd.f32 %v5432_v29, %v5419_v55 }
 0x26b   : > { %5697 = vmatmul.bf16.vlgmr.msrb.gmra.mxu1 %v6090_v4 }
 0x26c   : > { %5711 = vmatmul.bf16.vlgmr.msrb.gmra.mxu2 %v6094_v5  ;;  %v5447_v61 = vadd.f32 %v5446_v30, %v5433_v58 }
 0x26d   : > { %5725 = vmatmul.bf16.vlgmr.msrb.gmra.mxu3 %v6098_v6  ;;  %v5406_v33 = vpop.f32.mrf.mxu0 }
 0x26e   : > { %v5420_v35 = vpop.f32.mrf.mxu1  ;;  %v5407_v60 = vadd.f32 %v5406_v33, %v5393_v57 }
 0x26f   : > { %v5434_v38 = vpop.f32.mrf.mxu2 }
 0x270   : > { %v5448_v39 = vpop.f32.mrf.mxu3  ;;  %v5421_v0 = vadd.f32 %v5420_v35, %v5407_v60 }
 0x272   : > { %v5435_v2 = vadd.f32 %v5434_v38, %v5421_v0 }
 0x274   : > { %v5449_v6 = vadd.f32 %v5448_v39, %v5435_v2 }
 0x275   : > { %v5460_v41 = vpop.f32.mrf.mxu0 }
 0x276   : > { %v5474_v43 = vpop.f32.mrf.mxu1  ;;  %v5461_v1 = vadd.f32 %v5460_v41, %v5447_v61 }
 0x277   : > { %v5488_v46 = vpop.f32.mrf.mxu2 }
 0x278   : > { %v5502_v13 = vpop.f32.mrf.mxu3  ;;  %v5475_v4 = vadd.f32 %v5474_v43, %v5461_v1 }
 0x27a   : > { %v5489_v7 = vadd.f32 %v5488_v46, %v5475_v4 }
 0x27c   : > { %v5503_v12 = vadd.f32 %v5502_v13, %v5489_v7  ;;  %v354_v7 = vld [vmem:[#allocation2 + $0x8] sm:$0xff] }
 0x27d   : > { %v5462_v22 = vpop.f32.mrf.mxu0 }
 0x27e   : > { %v5476_v50 = vpop.f32.mrf.mxu1  ;;  %v5463_v8 = vadd.f32 %v5462_v22, %v5449_v6 }
 0x27f   : > { %v5490_v25 = vpop.f32.mrf.mxu2 }
 0x280   : > { %v5504_v54 = vpop.f32.mrf.mxu3  ;;  %v5477_v15 = vadd.f32 %v5476_v50, %v5463_v8 }
 0x282   : > { %v5491_v21 = vadd.f32 %v5490_v25, %v5477_v15 }
 0x284   : > { %v5505_v23 = vadd.f32 %v5504_v54, %v5491_v21 }
 0x287   : > { %v5516_v56 = vpop.f32.mrf.mxu0 }
 0x288   : > { %v5530_v59 = vpop.f32.mrf.mxu1  ;;  %v5517_v17 = vadd.f32 %v5516_v56, %v5503_v12 }
 0x28a   : > { %v5531_v18 = vadd.f32 %v5530_v59, %v5517_v17 }
 0x28f   : > { %v5544_v62 = vpop.f32.mrf.mxu2  ;;  %v5518_v3 = vpop.f32.mrf.mxu0 }
 0x290   : > { %v5558_v63 = vpop.f32.mrf.mxu3  ;;  %v5532_v5 = vpop.f32.mrf.mxu1  ;;  %v5545_v27 = vadd.f32 %v5544_v62, %v5531_v18  ;;  %v5519_v26 = vadd.f32 %v5518_v3, %v5505_v23 }
 0x292   : > { %v5559_v24 = vadd.f32 %v5558_v63, %v5545_v27  ;;  %v5533_v30 = vadd.f32 %v5532_v5, %v5519_v26  ;;  %v353_v63 = vld [vmem:[#allocation2] sm:$0xff] }
 0x297   : > { %v5546_v9 = vpop.f32.mrf.mxu2 }
 0x298   : > { %v5560_v11 = vpop.f32.mrf.mxu3  ;;  %v5547_v33 = vadd.f32 %v5546_v9, %v5533_v30 }
 0x29a   : > { %v5561_v38 = vadd.f32 %v5560_v11, %v5547_v33 }
 0x2a7   : > { %v5572_v14 = vpop.f32.mrf.mxu0 }
 0x2a8   : > { %v5586_v16 = vpop.f32.mrf.mxu1  ;;  %v5573_v32 = vadd.f32 %v5572_v14, %v5559_v24 }
 0x2aa   : > { %v5587_v36 = vadd.f32 %v5586_v16, %v5573_v32 }
 0x2af   : > { %v5600_v19 = vpop.f32.mrf.mxu2  ;;  %v5574_v28 = vpop.f32.mrf.mxu0 }
 0x2b0   : > { %v5614_v20 = vpop.f32.mrf.mxu3  ;;  %v5588_v29 = vpop.f32.mrf.mxu1  ;;  %v5601_v39 = vadd.f32 %v5600_v19, %v5587_v36  ;;  %v5575_v41 = vadd.f32 %v5574_v28, %v5561_v38 }
 0x2b2   : > { %v5615_v42 = vadd.f32 %v5614_v20, %v5601_v39  ;;  %v5589_v44 = vadd.f32 %v5588_v29, %v5575_v41 }
 0x2b7   : > { %v5602_v34 = vpop.f32.mrf.mxu2 }
 0x2b8   : > { %v5616_v35 = vpop.f32.mrf.mxu3  ;;  %v5603_v46 = vadd.f32 %v5602_v34, %v5589_v44 }
 0x2ba   : > { %v5617_v31 = vadd.f32 %v5616_v35, %v5603_v46 }
 0x2c7   : > { %v5628_v37 = vpop.f32.mrf.mxu0 }
 0x2c8   : > { %v5642_v40 = vpop.f32.mrf.mxu1  ;;  %v5629_v45 = vadd.f32 %v5628_v37, %v5615_v42 }
 0x2ca   : > { %v5643_v47 = vadd.f32 %v5642_v40, %v5629_v45 }
 0x2cf   : > { %v5656_v10 = vpop.f32.mrf.mxu2  ;;  %v5630_v13 = vpop.f32.mrf.mxu0 }
 0x2d0   : > { %v5670_v43 = vpop.f32.mrf.mxu3  ;;  %v5644_v48 = vpop.f32.mrf.mxu1  ;;  %v5657_v22 = vadd.f32 %v5656_v10, %v5643_v47  ;;  %v5631_v49 = vadd.f32 %v5630_v13, %v5617_v31 }
 0x2d2   : > { %v5671_v53 = vadd.f32 %v5670_v43, %v5657_v22  ;;  %v5645_v25 = vadd.f32 %v5644_v48, %v5631_v49 }
 0x2d7   : > { %v5658_v50 = vpop.f32.mrf.mxu2 }
 0x2d8   : > { %v5672_v52 = vpop.f32.mrf.mxu3  ;;  %v5659_v56 = vadd.f32 %v5658_v50, %v5645_v25 }
 0x2da   : > { %v5673_v60 = vadd.f32 %v5672_v52, %v5659_v56 }
 0x2e7   : > { %v5684_v51 = vpop.f32.mrf.mxu0 }
 0x2e8   : > { %v5685_v54 = vadd.f32 %v5684_v51, %v5671_v53  ;;  %v5698_v55 = vpop.f32.mrf.mxu1 }
 0x2ea   : > { %v5699_v57 = vadd.f32 %v5698_v55, %v5685_v54 }
 0x2ef   : > { %v5712_v58 = vpop.f32.mrf.mxu2  ;;  %v5686_v62 = vpop.f32.mrf.mxu0 }
 0x2f0   : > { %v5726_v59 = vpop.f32.mrf.mxu3  ;;  %v5713_v61 = vadd.f32 %v5712_v58, %v5699_v57  ;;  %v5687_v1 = vadd.f32 %v5686_v62, %v5673_v60  ;;  %v5700_v3 = vpop.f32.mrf.mxu1 }
 0x2f2   : > { %v5727_v0 = vadd.f32 %v5726_v59, %v5713_v61  ;;  %v5701_v4 = vadd.f32 %v5700_v3, %v5687_v1 }
 0x2f4   : > { %v5731_v2 = vadd.f32 %v5727_v0, %v353_v63 }
 0x2f6   : > { %5733 = vst [vmem:[#allocation2] sm:$0xff] %v5731_v2 }
 0x2f7   : > { %v5714_v5 = vpop.f32.mrf.mxu2 }
 0x2f8   : > { %v5715_v6 = vadd.f32 %v5714_v5, %v5701_v4  ;;  %v5728_v8 = vpop.f32.mrf.mxu3 }
 0x2fa   : > { %v5729_v9 = vadd.f32 %v5728_v8, %v5715_v6  ;;  %5738 = sbr.rel (%p8147_p13) target bundleno = 775 (0x307), region = 59 }
 0x2fc   : > { %v5732_v11 = vadd.f32 %v5729_v9, %v354_v7 }
 0x2fe   : > { %5734 = vst [vmem:[#allocation2 + $0x8] sm:$0xff] %v5732_v11 }
 0x2ff   : > { %v5739_v12 = vld [vmem:[#allocation2] sm:$0xff] }
 0x300   : > { %5741 = vst [vmem:[%s9057_s22] sm:$0xff] %v5739_v12 }
 0x305   : > { %v5740_v14 = vld [vmem:[#allocation2 + $0x8] sm:$0xff] }
 0x306   : > { %5742 = vst [vmem:[%s9057_s22 + $0x8] sm:$0xff] %v5740_v14 }
 0x307 PF: > { %s12_s15 = sadd.s32 1, %s8839_s15   ;;  %s9806_s9 = smov %s8819_s10 }
 0x308   : > { %p9_p0 = scmp.ge.s32.totalorder %s12_s15, 8   ;;  %s9807_s10 = smov %s8908_s24 }
 0x309   : > { %s9808_s11 = smov %s8831_s13  ;;  %s9809_s12 = smov %s8835_s14 }
 0x30a   : > { %s9810_s13 = smov %s9813_s16  ;;  %s9811_s14 = smov %s9817_s17 }
 0x30b   :  { %11 = sbr.rel (!%p9_p0) target bundleno = 4 (0x4), region = 97 }

</bundles_post_ra>
